<compile_context>
chip_gen: v6e
topology: v6e:2x2x1
jax: 0.10.0
libtpu: 0.0.40
codegen_flags: <defaults>
</compile_context>

<pallas_src>
import functools

import jax
import jax.numpy as jnp
from jax.experimental import pallas as pl
from jax.experimental.pallas import tpu as pltpu

# ---- hyperparameters (match the PyTorch module constants) ----
N_EMBD = 384
N_HEAD = 4
N_LAYER = 4
BLOCK_SIZE = 256
HEAD_SIZE = N_EMBD // N_HEAD      # 96
HEAD_PAD = 128                    # zero-padded head size (lane-aligned, exact)
LN_EPS = 1e-5                     # torch.nn.LayerNorm default
VMEM_LIMIT = 48 * 1024 * 1024     # explicit scoped-VMEM budget (ok on v5e/v6e/v7x)


# ----------------------------- helpers ----------------------------------

def _ln(x, g, b):
    """LayerNorm in f32 (biased variance, like torch.nn.LayerNorm)."""
    mean = jnp.mean(x, axis=-1, keepdims=True)
    var = jnp.mean(jnp.square(x - mean), axis=-1, keepdims=True)
    return (x - mean) * jax.lax.rsqrt(var + LN_EPS) * g + b


def _row_tile(m):
    for t in (1024, 512, 256, 128, 64, 32, 16, 8):
        if m % t == 0:
            return t
    return m


def _col_tile(n):
    # n is always a multiple of 128 here (vocab is padded); cap at 2048 so the
    # f32 output tile stays comfortable inside v7x's smaller VMEM.
    for t in (2048, 1024, 512, 256, 128):
        if n % t == 0:
            return t
    return n


# ----------------------------- kernels ----------------------------------

def _layer_kernel(x_ref, ln1g_ref, ln1b_ref, wqkv_ref, projw_ref, projb_ref,
                  ln2g_ref, ln2b_ref, w1_ref, b1_ref, w2_ref, b2_ref, o_ref,
                  *, n_head, hs_pad):
    """One pre-LN transformer block applied to the residual carried in o_ref.

    grid = (batch, layer); the o_ref block index depends only on batch, so it
    is resident across the layer axis and the residual never leaves VMEM.
    """
    @pl.when(pl.program_id(1) == 0)
    def _():
        o_ref[...] = x_ref[...]                       # residual <- tok+pos emb

    x = o_ref[...]                                    # (T, C) f32
    t = x.shape[0]

    # ---- attention sub-block: x + proj(multi_head(LN1(x))) ----
    xn = _ln(x, ln1g_ref[...], ln1b_ref[...]).astype(jnp.bfloat16)
    qkv = jnp.dot(xn, wqkv_ref[...], preferred_element_type=jnp.float32)

    row = jax.lax.broadcasted_iota(jnp.int32, (t, t), 0)
    col = jax.lax.broadcasted_iota(jnp.int32, (t, t), 1)
    causal = col <= row

    hp = n_head * hs_pad
    head_outs = []
    for h in range(n_head):                           # static unroll (4 heads)
        q = qkv[:, h * hs_pad:(h + 1) * hs_pad].astype(jnp.bfloat16)
        k = qkv[:, hp + h * hs_pad: hp + (h + 1) * hs_pad].astype(jnp.bfloat16)
        v = qkv[:, 2 * hp + h * hs_pad: 2 * hp + (h + 1) * hs_pad].astype(jnp.bfloat16)

        # Reference scale (C = n_embd)**-0.5 is folded into the Q weights.
        s = jax.lax.dot_general(q, k, (((1,), (1,)), ((), ())),
                                preferred_element_type=jnp.float32)
        s = jnp.where(causal, s, -1e30)               # finite mask (safe)
        m = jnp.max(s, axis=-1, keepdims=True)
        p = jnp.exp(s - m)
        p = p * pl.reciprocal(jnp.sum(p, axis=-1, keepdims=True), approx=True)
        head_outs.append(jnp.dot(p.astype(jnp.bfloat16), v,
                                 preferred_element_type=jnp.float32
                                 ).astype(jnp.bfloat16))

    # Single K = n_head*hs_pad = 512 output-projection dot (full MXU depth)
    heads = jnp.concatenate(head_outs, axis=-1)       # (T, 512) bf16
    attn = jnp.dot(heads, projw_ref[...], preferred_element_type=jnp.float32)
    x = x + attn + projb_ref[...]

    # ---- FFN sub-block: x + W2(relu(W1(LN2(x)))) ----
    xn2 = _ln(x, ln2g_ref[...], ln2b_ref[...]).astype(jnp.bfloat16)
    hpre = jnp.dot(xn2, w1_ref[...], preferred_element_type=jnp.float32) + b1_ref[...]
    hact = jnp.maximum(hpre, 0.0).astype(jnp.bfloat16)
    y = jnp.dot(hact, w2_ref[...], preferred_element_type=jnp.float32) + b2_ref[...]

    o_ref[...] = x + y


def _lm_head_kernel(x_ref, w_ref, b_ref, o_ref):
    o_ref[...] = jnp.dot(x_ref[...], w_ref[...],
                         preferred_element_type=jnp.float32) + b_ref[...]


# --------------------------- pallas wrappers -----------------------------

def transformer_stack(x, layers):
    """All N_LAYER transformer blocks in a single pallas_call."""
    b, t, c = x.shape
    hp = N_HEAD * HEAD_PAD
    kernel = functools.partial(_layer_kernel, n_head=N_HEAD, hs_pad=HEAD_PAD)
    per_layer = lambda b_, l_: (l_, 0, 0)             # layer-indexed params
    per_batch = lambda b_, l_: (b_, 0, 0)             # batch-indexed activations
    return pl.pallas_call(
        kernel,
        grid=(b, N_LAYER),
        in_specs=[
            pl.BlockSpec((None, t, c), per_batch),            # tok+pos embeddings
            pl.BlockSpec((None, 1, c), per_layer),            # ln1 gamma
            pl.BlockSpec((None, 1, c), per_layer),            # ln1 beta
            pl.BlockSpec((None, c, 3 * hp), per_layer),       # fused QKV weight
            pl.BlockSpec((None, hp, c), per_layer),           # proj weight
            pl.BlockSpec((None, 1, c), per_layer),            # proj bias
            pl.BlockSpec((None, 1, c), per_layer),            # ln2 gamma
            pl.BlockSpec((None, 1, c), per_layer),            # ln2 beta
            pl.BlockSpec((None, c, 4 * c), per_layer),        # ffn w1
            pl.BlockSpec((None, 1, 4 * c), per_layer),        # ffn b1
            pl.BlockSpec((None, 4 * c, c), per_layer),        # ffn w2
            pl.BlockSpec((None, 1, c), per_layer),            # ffn b2
        ],
        out_specs=pl.BlockSpec((None, t, c), per_batch),
        out_shape=jax.ShapeDtypeStruct((b, t, c), jnp.float32),
        compiler_params=pltpu.CompilerParams(
            dimension_semantics=("parallel", "arbitrary"),
            vmem_limit_bytes=VMEM_LIMIT),
    )(x, layers["ln1_g"], layers["ln1_b"], layers["wqkv"], layers["proj_w"],
      layers["proj_b"], layers["ln2_g"], layers["ln2_b"], layers["w1"],
      layers["b1"], layers["w2"], layers["b2"])


def lm_head(x2d, w, b):
    """x2d: (M, C) bf16, w: (C, Vpad) bf16, b: (1, Vpad) f32 -> (M, Vpad) f32."""
    m, c = x2d.shape
    vp = w.shape[1]
    tm = _row_tile(m)
    tn = _col_tile(vp)
    # Vocab axis outer, row axis inner: the (C, tn) weight tile stays resident
    # across row tiles; only the small activation tile streams.
    return pl.pallas_call(
        _lm_head_kernel,
        grid=(vp // tn, m // tm),
        in_specs=[
            pl.BlockSpec((tm, c), lambda i, j: (j, 0)),
            pl.BlockSpec((c, tn), lambda i, j: (0, i)),
            pl.BlockSpec((1, tn), lambda i, j: (0, i)),
        ],
        out_specs=pl.BlockSpec((tm, tn), lambda i, j: (j, i)),
        out_shape=jax.ShapeDtypeStruct((m, vp), jnp.float32),
        compiler_params=pltpu.CompilerParams(
            dimension_semantics=("parallel", "parallel"),
            vmem_limit_bytes=VMEM_LIMIT),
    )(x2d, w, b)


# --------------------------- model (glue) -------------------------------

def init_params(key, vocab_size):
    def nrm(k, shape, std=0.02):
        return std * jax.random.normal(k, shape, dtype=jnp.float32)

    keys = iter(jax.random.split(key, 4 + 8 * N_LAYER))

    c = N_EMBD
    hp = N_HEAD * HEAD_PAD
    vpad = ((vocab_size + 127) // 128) * 128           # lane-dense lm_head tiles

    def padded_heads(k, scale=1.0):
        # per-head (C, hs) weights, zero-padded along the output dim to HEAD_PAD
        w = nrm(k, (c, N_HEAD, HEAD_SIZE)) * scale
        w = jnp.pad(w, ((0, 0), (0, 0), (0, HEAD_PAD - HEAD_SIZE)))
        return w.reshape(c, hp)

    ln1_g, ln1_b, wqkv, proj_w, proj_b = [], [], [], [], []
    ln2_g, ln2_b, w1, b1, w2, b2 = [], [], [], [], [], []
    for _ in range(N_LAYER):
        # Attention scale (n_embd**-0.5, as in the reference) folded into Q weights.
        wq = padded_heads(next(keys), scale=c ** (-0.5))
        wk = padded_heads(next(keys))
        wv = padded_heads(next(keys))
        wqkv.append(jnp.concatenate([wq, wk, wv], axis=1))

        pw = nrm(next(keys), (N_HEAD, HEAD_SIZE, c))
        pw = jnp.pad(pw, ((0, 0), (0, HEAD_PAD - HEAD_SIZE), (0, 0)))
        proj_w.append(pw.reshape(hp, c))

        ln1_g.append(jnp.ones((1, c), jnp.float32))
        ln1_b.append(jnp.zeros((1, c), jnp.float32))
        proj_b.append(jnp.zeros((1, c), jnp.float32))
        ln2_g.append(jnp.ones((1, c), jnp.float32))
        ln2_b.append(jnp.zeros((1, c), jnp.float32))
        w1.append(nrm(next(keys), (c, 4 * c)))
        b1.append(jnp.zeros((1, 4 * c), jnp.float32))
        w2.append(nrm(next(keys), (4 * c, c)))
        b2.append(jnp.zeros((1, c), jnp.float32))

    stack = lambda xs: jnp.stack(xs, axis=0)
    lm_w = jnp.pad(nrm(next(keys), (c, vocab_size)), ((0, 0), (0, vpad - vocab_size)))

    params = {
        "tok_emb": nrm(next(keys), (vocab_size, c)),
        "pos_emb": nrm(next(keys), (BLOCK_SIZE, c)),
        "lm_w": lm_w.astype(jnp.bfloat16),
        "lm_b": jnp.zeros((1, vpad), jnp.float32),
        "layers": {
            "ln1_g": stack(ln1_g), "ln1_b": stack(ln1_b),
            "wqkv": stack(wqkv).astype(jnp.bfloat16),
            "proj_w": stack(proj_w).astype(jnp.bfloat16),
            "proj_b": stack(proj_b),
            "ln2_g": stack(ln2_g), "ln2_b": stack(ln2_b),
            "w1": stack(w1).astype(jnp.bfloat16), "b1": stack(b1),
            "w2": stack(w2).astype(jnp.bfloat16), "b2": stack(b2),
        },
    }
    # self.ln_f exists in the reference module but is never used in forward().
    return params


def bigram_forward(params, idx):
    """Forward pass. idx: int32 [B, T]. Returns (logits [B, T, V], None)."""
    b, t = idx.shape
    c = N_EMBD

    # token-embedding gather + positional add done in plain JAX.
    # TODO(synk): arbitrary-row embedding gather has no clean rectangular
    # BlockSpec Pallas equivalent; cost is negligible.
    x = jnp.take(params["tok_emb"], idx, axis=0) + params["pos_emb"][:t]

    # All 4 transformer blocks in one fused kernel (residual stays in VMEM).
    x = transformer_stack(x, params["layers"])                     # (B, T, C) f32

    # Cast activations to bf16 once (not per vocab tile) before lm_head.
    x2d = x.reshape(b * t, c).astype(jnp.bfloat16)
    logits = lm_head(x2d, params["lm_w"], params["lm_b"])          # (B*T, Vpad)

    v = params["tok_emb"].shape[0]                                 # true vocab (static)
    logits = logits[:, :v].reshape(b, t, v)
    # TODO(synk): targets path (F.cross_entropy) not exercised here; loss = None.
    return logits, None


if __name__ == "__main__":
    key = jax.random.PRNGKey(0)
    k_param, k_idx = jax.random.split(key)

    VOCAB = 128   # small synthetic vocabulary
    B, T = 2, 8   # small batch / sequence (T <= block_size)

    params = init_params(k_param, VOCAB)
    idx = jax.random.randint(k_idx, (B, T), 0, VOCAB, dtype=jnp.int32)

    fwd = jax.jit(bigram_forward)
    logits, loss = fwd(params, idx)
    logits = jax.block_until_ready(logits)

    assert logits.shape == (B, T, VOCAB), logits.shape
    assert logits.dtype == jnp.float32
    assert bool(jnp.all(jnp.isfinite(logits)))
    assert loss is None

    print("KERNEL_OK")
</pallas_src>

<mosaic_0001>
module attributes {stable_mosaic.version = 11 : i64} {
  func.func @_lm_head_kernel(%arg0: i32, %arg1: i32, %arg2: memref<16x384xbf16, #tpu.memory_space<vmem>>, %arg3: memref<384x128xbf16, #tpu.memory_space<vmem>>, %arg4: memref<1x128xf32, #tpu.memory_space<vmem>>, %arg5: memref<16x128xf32, #tpu.memory_space<vmem>>) attributes {dimension_semantics = [#tpu.dimension_semantics<parallel>, #tpu.dimension_semantics<parallel>], iteration_bounds = array<i64: 1, 1>, scalar_prefetch = 0 : i64, scratch_operands = 0 : i64, tpu.core_type = #tpu.core_type<tc>, window_params = [{transform_indices = @transform_0, window_bounds = array<i64: 16, 384>}, {transform_indices = @transform_1, window_bounds = array<i64: 384, 128>}, {transform_indices = @transform_2, window_bounds = array<i64: 1, 128>}, {transform_indices = @transform_3, window_bounds = array<i64: 16, 128>}]} {
    %c0 = arith.constant 0 : index
    %c0_0 = arith.constant 0 : index
    %0 = vector.load %arg2[%c0, %c0_0] : memref<16x384xbf16, #tpu.memory_space<vmem>>, vector<16x384xbf16>
    %c0_1 = arith.constant 0 : index
    %c0_2 = arith.constant 0 : index
    %1 = vector.load %arg3[%c0_1, %c0_2] : memref<384x128xbf16, #tpu.memory_space<vmem>>, vector<384x128xbf16>
    %cst = arith.constant dense<0.000000e+00> : vector<16x128xf32>
    %2 = tpu.matmul %0, %1, %cst {dimension_numbers = #tpu.dot_dimension_numbers<[1], [0], [0], [1], [0, 0, 1, 1], [], []>} : vector<16x384xbf16>, vector<384x128xbf16>, vector<16x128xf32> -> vector<16x128xf32>
    %c0_3 = arith.constant 0 : index
    %c0_4 = arith.constant 0 : index
    %3 = vector.load %arg4[%c0_3, %c0_4] : memref<1x128xf32, #tpu.memory_space<vmem>>, vector<1x128xf32>
    %4 = vector.broadcast %3 : vector<1x128xf32> to vector<16x128xf32>
    %5 = arith.addf %2, %4 : vector<16x128xf32>
    %c0_5 = arith.constant 0 : index
    %c0_6 = arith.constant 0 : index
    %6 = vector.load %arg5[%c0_5, %c0_6] : memref<16x128xf32, #tpu.memory_space<vmem>>, vector<16x128xf32>
    tpu.vector_store %arg5[%c0_5, %c0_6], %5 {strides = array<i32>} : memref<16x128xf32, #tpu.memory_space<vmem>>, vector<16x128xf32>,
    return
  }
  func.func @transform_0(%arg0: i32, %arg1: i32) -> (i32, i32) {
    %c0_i32 = arith.constant 0 : i32
    %c0_i32_0 = arith.constant 0 : i32
    return %arg1, %c0_i32 : i32, i32
  }
  func.func @transform_1(%arg0: i32, %arg1: i32) -> (i32, i32) {
    %c0_i32 = arith.constant 0 : i32
    %c0_i32_0 = arith.constant 0 : i32
    return %c0_i32, %arg0 : i32, i32
  }
  func.func @transform_2(%arg0: i32, %arg1: i32) -> (i32, i32) {
    %c0_i32 = arith.constant 0 : i32
    %c0_i32_0 = arith.constant 0 : i32
    return %c0_i32, %arg0 : i32, i32
  }
  func.func @transform_3(%arg0: i32, %arg1: i32) -> (i32, i32) {
    %c0_i32 = arith.constant 0 : i32
    return %arg1, %arg0 : i32, i32
  }
}

module attributes {stable_mosaic.version = 11 : i64} {
  func.func @_layer_kernel(%arg0: i32, %arg1: i32, %arg2: memref<1x8x384xf32, #tpu.memory_space<vmem>>, %arg3: memref<1x1x384xf32, #tpu.memory_space<vmem>>, %arg4: memref<1x1x384xf32, #tpu.memory_space<vmem>>, %arg5: memref<1x384x1536xbf16, #tpu.memory_space<vmem>>, %arg6: memref<1x512x384xbf16, #tpu.memory_space<vmem>>, %arg7: memref<1x1x384xf32, #tpu.memory_space<vmem>>, %arg8: memref<1x1x384xf32, #tpu.memory_space<vmem>>, %arg9: memref<1x1x384xf32, #tpu.memory_space<vmem>>, %arg10: memref<1x384x1536xbf16, #tpu.memory_space<vmem>>, %arg11: memref<1x1x1536xf32, #tpu.memory_space<vmem>>, %arg12: memref<1x1536x384xbf16, #tpu.memory_space<vmem>>, %arg13: memref<1x1x384xf32, #tpu.memory_space<vmem>>, %arg14: memref<1x8x384xf32, #tpu.memory_space<vmem>>) attributes {dimension_semantics = [#tpu.dimension_semantics<parallel>, #tpu.dimension_semantics<arbitrary>], iteration_bounds = array<i64: 2, 4>, scalar_prefetch = 0 : i64, scratch_operands = 0 : i64, tpu.core_type = #tpu.core_type<tc>, window_params = [{transform_indices = @transform_0, window_bounds = array<i64: 1, 8, 384>}, {transform_indices = @transform_1, window_bounds = array<i64: 1, 1, 384>}, {transform_indices = @transform_2, window_bounds = array<i64: 1, 1, 384>}, {transform_indices = @transform_3, window_bounds = array<i64: 1, 384, 1536>}, {transform_indices = @transform_4, window_bounds = array<i64: 1, 512, 384>}, {transform_indices = @transform_5, window_bounds = array<i64: 1, 1, 384>}, {transform_indices = @transform_6, window_bounds = array<i64: 1, 1, 384>}, {transform_indices = @transform_7, window_bounds = array<i64: 1, 1, 384>}, {transform_indices = @transform_8, window_bounds = array<i64: 1, 384, 1536>}, {transform_indices = @transform_9, window_bounds = array<i64: 1, 1, 1536>}, {transform_indices = @transform_10, window_bounds = array<i64: 1, 1536, 384>}, {transform_indices = @transform_11, window_bounds = array<i64: 1, 1, 384>}, {transform_indices = @transform_12, window_bounds = array<i64: 1, 8, 384>}]} {
    %c0_i32 = arith.constant 0 : i32
    %0 = arith.cmpi eq, %arg1, %c0_i32 : i32
    %1 = arith.extui %0 : i1 to i32
    %c0_i32_0 = arith.constant 0 : i32
    %2 = arith.cmpi ne, %1, %c0_i32_0 : i32
    scf.if %2 {
      %c0_73 = arith.constant 0 : index
      %c0_74 = arith.constant 0 : index
      %c0_75 = arith.constant 0 : index
      %183 = vector.load %arg2[%c0_73, %c0_74, %c0_75] : memref<1x8x384xf32, #tpu.memory_space<vmem>>, vector<1x8x384xf32>
      %184 = vector.shape_cast %183 : vector<1x8x384xf32> to vector<8x384xf32>
      %c0_76 = arith.constant 0 : index
      %c0_77 = arith.constant 0 : index
      %c0_78 = arith.constant 0 : index
      %185 = vector.load %arg14[%c0_76, %c0_77, %c0_78] : memref<1x8x384xf32, #tpu.memory_space<vmem>>, vector<1x8x384xf32>
      %186 = vector.shape_cast %185 : vector<1x8x384xf32> to vector<8x384xf32>
      %187 = vector.shape_cast %184 : vector<8x384xf32> to vector<1x8x384xf32>
      tpu.vector_store %arg14[%c0_76, %c0_77, %c0_78], %187 {strides = array<i32>} : memref<1x8x384xf32, #tpu.memory_space<vmem>>, vector<1x8x384xf32>,
    } else {
    }
    %c0 = arith.constant 0 : index
    %c0_1 = arith.constant 0 : index
    %c0_2 = arith.constant 0 : index
    %3 = vector.load %arg14[%c0, %c0_1, %c0_2] : memref<1x8x384xf32, #tpu.memory_space<vmem>>, vector<1x8x384xf32>
    %4 = vector.shape_cast %3 : vector<1x8x384xf32> to vector<8x384xf32>
    %c0_3 = arith.constant 0 : index
    %c0_4 = arith.constant 0 : index
    %c0_5 = arith.constant 0 : index
    %5 = vector.load %arg3[%c0_3, %c0_4, %c0_5] : memref<1x1x384xf32, #tpu.memory_space<vmem>>, vector<1x1x384xf32>
    %6 = vector.shape_cast %5 : vector<1x1x384xf32> to vector<1x384xf32>
    %c0_6 = arith.constant 0 : index
    %c0_7 = arith.constant 0 : index
    %c0_8 = arith.constant 0 : index
    %7 = vector.load %arg4[%c0_6, %c0_7, %c0_8] : memref<1x1x384xf32, #tpu.memory_space<vmem>>, vector<1x1x384xf32>
    %8 = vector.shape_cast %7 : vector<1x1x384xf32> to vector<1x384xf32>
    %cst = arith.constant dense<0.000000e+00> : vector<8xf32>
    %9 = vector.multi_reduction <add>, %4, %cst [1] : vector<8x384xf32> to vector<8xf32>
    %10 = vector.shape_cast %9 : vector<8xf32> to vector<8x1xf32>
    %cst_9 = arith.constant 3.840000e+02 : f32
    %11 = vector.broadcast %cst_9 : f32 to vector<8x1xf32>
    %12 = arith.divf %10, %11 : vector<8x1xf32>
    %13 = vector.broadcast %12 : vector<8x1xf32> to vector<8x384xf32>
    %14 = arith.subf %4, %13 : vector<8x384xf32>
    %15 = arith.mulf %14, %14 : vector<8x384xf32>
    %cst_10 = arith.constant dense<0.000000e+00> : vector<8xf32>
    %16 = vector.multi_reduction <add>, %15, %cst_10 [1] : vector<8x384xf32> to vector<8xf32>
    %17 = vector.shape_cast %16 : vector<8xf32> to vector<8x1xf32>
    %cst_11 = arith.constant 3.840000e+02 : f32
    %18 = vector.broadcast %cst_11 : f32 to vector<8x1xf32>
    %19 = arith.divf %17, %18 : vector<8x1xf32>
    %20 = vector.broadcast %12 : vector<8x1xf32> to vector<8x384xf32>
    %21 = arith.subf %4, %20 : vector<8x384xf32>
    %cst_12 = arith.constant 9.99999974E-6 : f32
    %22 = vector.broadcast %cst_12 : f32 to vector<8x1xf32>
    %23 = arith.addf %19, %22 : vector<8x1xf32>
    %24 = math.rsqrt %23 : vector<8x1xf32>
    %25 = vector.broadcast %24 : vector<8x1xf32> to vector<8x384xf32>
    %26 = arith.mulf %21, %25 : vector<8x384xf32>
    %27 = vector.broadcast %6 : vector<1x384xf32> to vector<8x384xf32>
    %28 = arith.mulf %26, %27 : vector<8x384xf32>
    %29 = vector.broadcast %8 : vector<1x384xf32> to vector<8x384xf32>
    %30 = arith.addf %28, %29 : vector<8x384xf32>
    %31 = arith.truncf %30 : vector<8x384xf32> to vector<8x384xbf16>
    %c0_13 = arith.constant 0 : index
    %c0_14 = arith.constant 0 : index
    %c0_15 = arith.constant 0 : index
    %32 = vector.load %arg5[%c0_13, %c0_14, %c0_15] : memref<1x384x1536xbf16, #tpu.memory_space<vmem>>, vector<1x384x1536xbf16>
    %33 = vector.shape_cast %32 : vector<1x384x1536xbf16> to vector<384x1536xbf16>
    %cst_16 = arith.constant dense<0.000000e+00> : vector<8x1536xf32>
    %34 = tpu.matmul %31, %33, %cst_16 {dimension_numbers = #tpu.dot_dimension_numbers<[1], [0], [0], [1], [0, 0, 1, 1], [], []>} : vector<8x384xbf16>, vector<384x1536xbf16>, vector<8x1536xf32> -> vector<8x1536xf32>
    %35 = tpu.iota {dimensions = array<i32: 0>} : vector<8x8xi32>
    %36 = tpu.iota {dimensions = array<i32: 1>} : vector<8x8xi32>
    %37 = arith.cmpi sle, %36, %35 : vector<8x8xi32>
    %38 = vector.extract_strided_slice %34 {offsets = [0, 0], sizes = [8, 128], strides = [1, 1]} : vector<8x1536xf32> to vector<8x128xf32>
    %39 = arith.truncf %38 : vector<8x128xf32> to vector<8x128xbf16>
    %40 = vector.extract_strided_slice %34 {offsets = [0, 512], sizes = [8, 128], strides = [1, 1]} : vector<8x1536xf32> to vector<8x128xf32>
    %41 = arith.truncf %40 : vector<8x128xf32> to vector<8x128xbf16>
    %42 = vector.extract_strided_slice %34 {offsets = [0, 1024], sizes = [8, 128], strides = [1, 1]} : vector<8x1536xf32> to vector<8x128xf32>
    %43 = arith.truncf %42 : vector<8x128xf32> to vector<8x128xbf16>
    %cst_17 = arith.constant dense<0.000000e+00> : vector<8x8xf32>
    %44 = tpu.matmul %39, %41, %cst_17 {dimension_numbers = #tpu.dot_dimension_numbers<[1], [1], [0], [0], [0, 0, 1, 0], [], []>} : vector<8x128xbf16>, vector<8x128xbf16>, vector<8x8xf32> -> vector<8x8xf32>
    %cst_18 = arith.constant -1.000000e+30 : f32
    %45 = vector.broadcast %cst_18 : f32 to vector<8x8xf32>
    %46 = arith.select %37, %44, %45 : vector<8x8xi1>, vector<8x8xf32>
    %cst_19 = arith.constant dense<0xFF800000> : vector<8xf32>
    %47 = vector.multi_reduction <maximumf>, %46, %cst_19 [1] : vector<8x8xf32> to vector<8xf32>
    %48 = vector.shape_cast %47 : vector<8xf32> to vector<8x1xf32>
    %49 = vector.broadcast %48 : vector<8x1xf32> to vector<8x8xf32>
    %50 = arith.subf %46, %49 : vector<8x8xf32>
    %51 = math.exp %50 : vector<8x8xf32>
    %cst_20 = arith.constant dense<0.000000e+00> : vector<8xf32>
    %52 = vector.multi_reduction <add>, %51, %cst_20 [1] : vector<8x8xf32> to vector<8xf32>
    %53 = vector.shape_cast %52 : vector<8xf32> to vector<8x1xf32>
    %54 = tpu.reciprocal %53 {approx = true} : vector<8x1xf32> -> vector<8x1xf32>
    %55 = vector.broadcast %54 : vector<8x1xf32> to vector<8x8xf32>
    %56 = arith.mulf %51, %55 : vector<8x8xf32>
    %57 = arith.truncf %56 : vector<8x8xf32> to vector<8x8xbf16>
    %cst_21 = arith.constant dense<0.000000e+00> : vector<8x128xf32>
    %58 = tpu.matmul %57, %43, %cst_21 {dimension_numbers = #tpu.dot_dimension_numbers<[1], [0], [0], [1], [0, 0, 1, 1], [], []>} : vector<8x8xbf16>, vector<8x128xbf16>, vector<8x128xf32> -> vector<8x128xf32>
    %59 = arith.truncf %58 : vector<8x128xf32> to vector<8x128xbf16>
    %60 = vector.extract_strided_slice %34 {offsets = [0, 128], sizes = [8, 128], strides = [1, 1]} : vector<8x1536xf32> to vector<8x128xf32>
    %61 = arith.truncf %60 : vector<8x128xf32> to vector<8x128xbf16>
    %62 = vector.extract_strided_slice %34 {offsets = [0, 640], sizes = [8, 128], strides = [1, 1]} : vector<8x1536xf32> to vector<8x128xf32>
    %63 = arith.truncf %62 : vector<8x128xf32> to vector<8x128xbf16>
    %64 = vector.extract_strided_slice %34 {offsets = [0, 1152], sizes = [8, 128], strides = [1, 1]} : vector<8x1536xf32> to vector<8x128xf32>
    %65 = arith.truncf %64 : vector<8x128xf32> to vector<8x128xbf16>
    %cst_22 = arith.constant dense<0.000000e+00> : vector<8x8xf32>
    %66 = tpu.matmul %61, %63, %cst_22 {dimension_numbers = #tpu.dot_dimension_numbers<[1], [1], [0], [0], [0, 0, 1, 0], [], []>} : vector<8x128xbf16>, vector<8x128xbf16>, vector<8x8xf32> -> vector<8x8xf32>
    %cst_23 = arith.constant -1.000000e+30 : f32
    %67 = vector.broadcast %cst_23 : f32 to vector<8x8xf32>
    %68 = arith.select %37, %66, %67 : vector<8x8xi1>, vector<8x8xf32>
    %cst_24 = arith.constant dense<0xFF800000> : vector<8xf32>
    %69 = vector.multi_reduction <maximumf>, %68, %cst_24 [1] : vector<8x8xf32> to vector<8xf32>
    %70 = vector.shape_cast %69 : vector<8xf32> to vector<8x1xf32>
    %71 = vector.broadcast %70 : vector<8x1xf32> to vector<8x8xf32>
    %72 = arith.subf %68, %71 : vector<8x8xf32>
    %73 = math.exp %72 : vector<8x8xf32>
    %cst_25 = arith.constant dense<0.000000e+00> : vector<8xf32>
    %74 = vector.multi_reduction <add>, %73, %cst_25 [1] : vector<8x8xf32> to vector<8xf32>
    %75 = vector.shape_cast %74 : vector<8xf32> to vector<8x1xf32>
    %76 = tpu.reciprocal %75 {approx = true} : vector<8x1xf32> -> vector<8x1xf32>
    %77 = vector.broadcast %76 : vector<8x1xf32> to vector<8x8xf32>
    %78 = arith.mulf %73, %77 : vector<8x8xf32>
    %79 = arith.truncf %78 : vector<8x8xf32> to vector<8x8xbf16>
    %cst_26 = arith.constant dense<0.000000e+00> : vector<8x128xf32>
    %80 = tpu.matmul %79, %65, %cst_26 {dimension_numbers = #tpu.dot_dimension_numbers<[1], [0], [0], [1], [0, 0, 1, 1], [], []>} : vector<8x8xbf16>, vector<8x128xbf16>, vector<8x128xf32> -> vector<8x128xf32>
    %81 = arith.truncf %80 : vector<8x128xf32> to vector<8x128xbf16>
    %82 = vector.extract_strided_slice %34 {offsets = [0, 256], sizes = [8, 128], strides = [1, 1]} : vector<8x1536xf32> to vector<8x128xf32>
    %83 = arith.truncf %82 : vector<8x128xf32> to vector<8x128xbf16>
    %84 = vector.extract_strided_slice %34 {offsets = [0, 768], sizes = [8, 128], strides = [1, 1]} : vector<8x1536xf32> to vector<8x128xf32>
    %85 = arith.truncf %84 : vector<8x128xf32> to vector<8x128xbf16>
    %86 = vector.extract_strided_slice %34 {offsets = [0, 1280], sizes = [8, 128], strides = [1, 1]} : vector<8x1536xf32> to vector<8x128xf32>
    %87 = arith.truncf %86 : vector<8x128xf32> to vector<8x128xbf16>
    %cst_27 = arith.constant dense<0.000000e+00> : vector<8x8xf32>
    %88 = tpu.matmul %83, %85, %cst_27 {dimension_numbers = #tpu.dot_dimension_numbers<[1], [1], [0], [0], [0, 0, 1, 0], [], []>} : vector<8x128xbf16>, vector<8x128xbf16>, vector<8x8xf32> -> vector<8x8xf32>
    %cst_28 = arith.constant -1.000000e+30 : f32
    %89 = vector.broadcast %cst_28 : f32 to vector<8x8xf32>
    %90 = arith.select %37, %88, %89 : vector<8x8xi1>, vector<8x8xf32>
    %cst_29 = arith.constant dense<0xFF800000> : vector<8xf32>
    %91 = vector.multi_reduction <maximumf>, %90, %cst_29 [1] : vector<8x8xf32> to vector<8xf32>
    %92 = vector.shape_cast %91 : vector<8xf32> to vector<8x1xf32>
    %93 = vector.broadcast %92 : vector<8x1xf32> to vector<8x8xf32>
    %94 = arith.subf %90, %93 : vector<8x8xf32>
    %95 = math.exp %94 : vector<8x8xf32>
    %cst_30 = arith.constant dense<0.000000e+00> : vector<8xf32>
    %96 = vector.multi_reduction <add>, %95, %cst_30 [1] : vector<8x8xf32> to vector<8xf32>
    %97 = vector.shape_cast %96 : vector<8xf32> to vector<8x1xf32>
    %98 = tpu.reciprocal %97 {approx = true} : vector<8x1xf32> -> vector<8x1xf32>
    %99 = vector.broadcast %98 : vector<8x1xf32> to vector<8x8xf32>
    %100 = arith.mulf %95, %99 : vector<8x8xf32>
    %101 = arith.truncf %100 : vector<8x8xf32> to vector<8x8xbf16>
    %cst_31 = arith.constant dense<0.000000e+00> : vector<8x128xf32>
    %102 = tpu.matmul %101, %87, %cst_31 {dimension_numbers = #tpu.dot_dimension_numbers<[1], [0], [0], [1], [0, 0, 1, 1], [], []>} : vector<8x8xbf16>, vector<8x128xbf16>, vector<8x128xf32> -> vector<8x128xf32>
    %103 = arith.truncf %102 : vector<8x128xf32> to vector<8x128xbf16>
    %104 = vector.extract_strided_slice %34 {offsets = [0, 384], sizes = [8, 128], strides = [1, 1]} : vector<8x1536xf32> to vector<8x128xf32>
    %105 = arith.truncf %104 : vector<8x128xf32> to vector<8x128xbf16>
    %106 = vector.extract_strided_slice %34 {offsets = [0, 896], sizes = [8, 128], strides = [1, 1]} : vector<8x1536xf32> to vector<8x128xf32>
    %107 = arith.truncf %106 : vector<8x128xf32> to vector<8x128xbf16>
    %108 = vector.extract_strided_slice %34 {offsets = [0, 1408], sizes = [8, 128], strides = [1, 1]} : vector<8x1536xf32> to vector<8x128xf32>
    %109 = arith.truncf %108 : vector<8x128xf32> to vector<8x128xbf16>
    %cst_32 = arith.constant dense<0.000000e+00> : vector<8x8xf32>
    %110 = tpu.matmul %105, %107, %cst_32 {dimension_numbers = #tpu.dot_dimension_numbers<[1], [1], [0], [0], [0, 0, 1, 0], [], []>} : vector<8x128xbf16>, vector<8x128xbf16>, vector<8x8xf32> -> vector<8x8xf32>
    %cst_33 = arith.constant -1.000000e+30 : f32
    %111 = vector.broadcast %cst_33 : f32 to vector<8x8xf32>
    %112 = arith.select %37, %110, %111 : vector<8x8xi1>, vector<8x8xf32>
    %cst_34 = arith.constant dense<0xFF800000> : vector<8xf32>
    %113 = vector.multi_reduction <maximumf>, %112, %cst_34 [1] : vector<8x8xf32> to vector<8xf32>
    %114 = vector.shape_cast %113 : vector<8xf32> to vector<8x1xf32>
    %115 = vector.broadcast %114 : vector<8x1xf32> to vector<8x8xf32>
    %116 = arith.subf %112, %115 : vector<8x8xf32>
    %117 = math.exp %116 : vector<8x8xf32>
    %cst_35 = arith.constant dense<0.000000e+00> : vector<8xf32>
    %118 = vector.multi_reduction <add>, %117, %cst_35 [1] : vector<8x8xf32> to vector<8xf32>
    %119 = vector.shape_cast %118 : vector<8xf32> to vector<8x1xf32>
    %120 = tpu.reciprocal %119 {approx = true} : vector<8x1xf32> -> vector<8x1xf32>
    %121 = vector.broadcast %120 : vector<8x1xf32> to vector<8x8xf32>
    %122 = arith.mulf %117, %121 : vector<8x8xf32>
    %123 = arith.truncf %122 : vector<8x8xf32> to vector<8x8xbf16>
    %cst_36 = arith.constant dense<0.000000e+00> : vector<8x128xf32>
    %124 = tpu.matmul %123, %109, %cst_36 {dimension_numbers = #tpu.dot_dimension_numbers<[1], [0], [0], [1], [0, 0, 1, 1], [], []>} : vector<8x8xbf16>, vector<8x128xbf16>, vector<8x128xf32> -> vector<8x128xf32>
    %125 = arith.truncf %124 : vector<8x128xf32> to vector<8x128xbf16>
    %126 = tpu.concatenate %59, %81, %103, %125 in 1 : vector<8x128xbf16>, vector<8x128xbf16>, vector<8x128xbf16>, vector<8x128xbf16> -> vector<8x512xbf16>
    %c0_37 = arith.constant 0 : index
    %c0_38 = arith.constant 0 : index
    %c0_39 = arith.constant 0 : index
    %127 = vector.load %arg6[%c0_37, %c0_38, %c0_39] : memref<1x512x384xbf16, #tpu.memory_space<vmem>>, vector<1x512x384xbf16>
    %128 = vector.shape_cast %127 : vector<1x512x384xbf16> to vector<512x384xbf16>
    %cst_40 = arith.constant dense<0.000000e+00> : vector<8x384xf32>
    %129 = tpu.matmul %126, %128, %cst_40 {dimension_numbers = #tpu.dot_dimension_numbers<[1], [0], [0], [1], [0, 0, 1, 1], [], []>} : vector<8x512xbf16>, vector<512x384xbf16>, vector<8x384xf32> -> vector<8x384xf32>
    %130 = arith.addf %4, %129 : vector<8x384xf32>
    %c0_41 = arith.constant 0 : index
    %c0_42 = arith.constant 0 : index
    %c0_43 = arith.constant 0 : index
    %131 = vector.load %arg7[%c0_41, %c0_42, %c0_43] : memref<1x1x384xf32, #tpu.memory_space<vmem>>, vector<1x1x384xf32>
    %132 = vector.shape_cast %131 : vector<1x1x384xf32> to vector<1x384xf32>
    %133 = vector.broadcast %132 : vector<1x384xf32> to vector<8x384xf32>
    %134 = arith.addf %130, %133 : vector<8x384xf32>
    %c0_44 = arith.constant 0 : index
    %c0_45 = arith.constant 0 : index
    %c0_46 = arith.constant 0 : index
    %135 = vector.load %arg8[%c0_44, %c0_45, %c0_46] : memref<1x1x384xf32, #tpu.memory_space<vmem>>, vector<1x1x384xf32>
    %136 = vector.shape_cast %135 : vector<1x1x384xf32> to vector<1x384xf32>
    %c0_47 = arith.constant 0 : index
    %c0_48 = arith.constant 0 : index
    %c0_49 = arith.constant 0 : index
    %137 = vector.load %arg9[%c0_47, %c0_48, %c0_49] : memref<1x1x384xf32, #tpu.memory_space<vmem>>, vector<1x1x384xf32>
    %138 = vector.shape_cast %137 : vector<1x1x384xf32> to vector<1x384xf32>
    %cst_50 = arith.constant dense<0.000000e+00> : vector<8xf32>
    %139 = vector.multi_reduction <add>, %134, %cst_50 [1] : vector<8x384xf32> to vector<8xf32>
    %140 = vector.shape_cast %139 : vector<8xf32> to vector<8x1xf32>
    %cst_51 = arith.constant 3.840000e+02 : f32
    %141 = vector.broadcast %cst_51 : f32 to vector<8x1xf32>
    %142 = arith.divf %140, %141 : vector<8x1xf32>
    %143 = vector.broadcast %142 : vector<8x1xf32> to vector<8x384xf32>
    %144 = arith.subf %134, %143 : vector<8x384xf32>
    %145 = arith.mulf %144, %144 : vector<8x384xf32>
    %cst_52 = arith.constant dense<0.000000e+00> : vector<8xf32>
    %146 = vector.multi_reduction <add>, %145, %cst_52 [1] : vector<8x384xf32> to vector<8xf32>
    %147 = vector.shape_cast %146 : vector<8xf32> to vector<8x1xf32>
    %cst_53 = arith.constant 3.840000e+02 : f32
    %148 = vector.broadcast %cst_53 : f32 to vector<8x1xf32>
    %149 = arith.divf %147, %148 : vector<8x1xf32>
    %150 = vector.broadcast %142 : vector<8x1xf32> to vector<8x384xf32>
    %151 = arith.subf %134, %150 : vector<8x384xf32>
    %cst_54 = arith.constant 9.99999974E-6 : f32
    %152 = vector.broadcast %cst_54 : f32 to vector<8x1xf32>
    %153 = arith.addf %149, %152 : vector<8x1xf32>
    %154 = math.rsqrt %153 : vector<8x1xf32>
    %155 = vector.broadcast %154 : vector<8x1xf32> to vector<8x384xf32>
    %156 = arith.mulf %151, %155 : vector<8x384xf32>
    %157 = vector.broadcast %136 : vector<1x384xf32> to vector<8x384xf32>
    %158 = arith.mulf %156, %157 : vector<8x384xf32>
    %159 = vector.broadcast %138 : vector<1x384xf32> to vector<8x384xf32>
    %160 = arith.addf %158, %159 : vector<8x384xf32>
    %161 = arith.truncf %160 : vector<8x384xf32> to vector<8x384xbf16>
    %c0_55 = arith.constant 0 : index
    %c0_56 = arith.constant 0 : index
    %c0_57 = arith.constant 0 : index
    %162 = vector.load %arg10[%c0_55, %c0_56, %c0_57] : memref<1x384x1536xbf16, #tpu.memory_space<vmem>>, vector<1x384x1536xbf16>
    %163 = vector.shape_cast %162 : vector<1x384x1536xbf16> to vector<384x1536xbf16>
    %cst_58 = arith.constant dense<0.000000e+00> : vector<8x1536xf32>
    %164 = tpu.matmul %161, %163, %cst_58 {dimension_numbers = #tpu.dot_dimension_numbers<[1], [0], [0], [1], [0, 0, 1, 1], [], []>} : vector<8x384xbf16>, vector<384x1536xbf16>, vector<8x1536xf32> -> vector<8x1536xf32>
    %c0_59 = arith.constant 0 : index
    %c0_60 = arith.constant 0 : index
    %c0_61 = arith.constant 0 : index
    %165 = vector.load %arg11[%c0_59, %c0_60, %c0_61] : memref<1x1x1536xf32, #tpu.memory_space<vmem>>, vector<1x1x1536xf32>
    %166 = vector.shape_cast %165 : vector<1x1x1536xf32> to vector<1x1536xf32>
    %167 = vector.broadcast %166 : vector<1x1536xf32> to vector<8x1536xf32>
    %168 = arith.addf %164, %167 : vector<8x1536xf32>
    %cst_62 = arith.constant 0.000000e+00 : f32
    %169 = vector.broadcast %cst_62 : f32 to vector<8x1536xf32>
    %170 = arith.maximumf %168, %169 : vector<8x1536xf32>
    %171 = arith.truncf %170 : vector<8x1536xf32> to vector<8x1536xbf16>
    %c0_63 = arith.constant 0 : index
    %c0_64 = arith.constant 0 : index
    %c0_65 = arith.constant 0 : index
    %172 = vector.load %arg12[%c0_63, %c0_64, %c0_65] : memref<1x1536x384xbf16, #tpu.memory_space<vmem>>, vector<1x1536x384xbf16>
    %173 = vector.shape_cast %172 : vector<1x1536x384xbf16> to vector<1536x384xbf16>
    %cst_66 = arith.constant dense<0.000000e+00> : vector<8x384xf32>
    %174 = tpu.matmul %171, %173, %cst_66 {dimension_numbers = #tpu.dot_dimension_numbers<[1], [0], [0], [1], [0, 0, 1, 1], [], []>} : vector<8x1536xbf16>, vector<1536x384xbf16>, vector<8x384xf32> -> vector<8x384xf32>
    %c0_67 = arith.constant 0 : index
    %c0_68 = arith.constant 0 : index
    %c0_69 = arith.constant 0 : index
    %175 = vector.load %arg13[%c0_67, %c0_68, %c0_69] : memref<1x1x384xf32, #tpu.memory_space<vmem>>, vector<1x1x384xf32>
    %176 = vector.shape_cast %175 : vector<1x1x384xf32> to vector<1x384xf32>
    %177 = vector.broadcast %176 : vector<1x384xf32> to vector<8x384xf32>
    %178 = arith.addf %174, %177 : vector<8x384xf32>
    %179 = arith.addf %134, %178 : vector<8x384xf32>
    %c0_70 = arith.constant 0 : index
    %c0_71 = arith.constant 0 : index
    %c0_72 = arith.constant 0 : index
    %180 = vector.load %arg14[%c0_70, %c0_71, %c0_72] : memref<1x8x384xf32, #tpu.memory_space<vmem>>, vector<1x8x384xf32>
    %181 = vector.shape_cast %180 : vector<1x8x384xf32> to vector<8x384xf32>
    %182 = vector.shape_cast %179 : vector<8x384xf32> to vector<1x8x384xf32>
    tpu.vector_store %arg14[%c0_70, %c0_71, %c0_72], %182 {strides = array<i32>} : memref<1x8x384xf32, #tpu.memory_space<vmem>>, vector<1x8x384xf32>,
    return
  }
  func.func @transform_0(%arg0: i32, %arg1: i32) -> (i32, i32, i32) {
    %c0_i32 = arith.constant 0 : i32
    %c0_i32_0 = arith.constant 0 : i32
    %c0_i32_1 = arith.constant 0 : i32
    return %arg0, %c0_i32, %c0_i32_0 : i32, i32, i32
  }
  func.func @transform_1(%arg0: i32, %arg1: i32) -> (i32, i32, i32) {
    %c0_i32 = arith.constant 0 : i32
    %c0_i32_0 = arith.constant 0 : i32
    %c0_i32_1 = arith.constant 0 : i32
    return %arg1, %c0_i32, %c0_i32_0 : i32, i32, i32
  }
  func.func @transform_2(%arg0: i32, %arg1: i32) -> (i32, i32, i32) {
    %c0_i32 = arith.constant 0 : i32
    %c0_i32_0 = arith.constant 0 : i32
    %c0_i32_1 = arith.constant 0 : i32
    return %arg1, %c0_i32, %c0_i32_0 : i32, i32, i32
  }
  func.func @transform_3(%arg0: i32, %arg1: i32) -> (i32, i32, i32) {
    %c0_i32 = arith.constant 0 : i32
    %c0_i32_0 = arith.constant 0 : i32
    %c0_i32_1 = arith.constant 0 : i32
    return %arg1, %c0_i32, %c0_i32_0 : i32, i32, i32
  }
  func.func @transform_4(%arg0: i32, %arg1: i32) -> (i32, i32, i32) {
    %c0_i32 = arith.constant 0 : i32
    %c0_i32_0 = arith.constant 0 : i32
    %c0_i32_1 = arith.constant 0 : i32
    return %arg1, %c0_i32, %c0_i32_0 : i32, i32, i32
  }
  func.func @transform_5(%arg0: i32, %arg1: i32) -> (i32, i32, i32) {
    %c0_i32 = arith.constant 0 : i32
    %c0_i32_0 = arith.constant 0 : i32
    %c0_i32_1 = arith.constant 0 : i32
    return %arg1, %c0_i32, %c0_i32_0 : i32, i32, i32
  }
  func.func @transform_6(%arg0: i32, %arg1: i32) -> (i32, i32, i32) {
    %c0_i32 = arith.constant 0 : i32
    %c0_i32_0 = arith.constant 0 : i32
    %c0_i32_1 = arith.constant 0 : i32
    return %arg1, %c0_i32, %c0_i32_0 : i32, i32, i32
  }
  func.func @transform_7(%arg0: i32, %arg1: i32) -> (i32, i32, i32) {
    %c0_i32 = arith.constant 0 : i32
    %c0_i32_0 = arith.constant 0 : i32
    %c0_i32_1 = arith.constant 0 : i32
    return %arg1, %c0_i32, %c0_i32_0 : i32, i32, i32
  }
  func.func @transform_8(%arg0: i32, %arg1: i32) -> (i32, i32, i32) {
    %c0_i32 = arith.constant 0 : i32
    %c0_i32_0 = arith.constant 0 : i32
    %c0_i32_1 = arith.constant 0 : i32
    return %arg1, %c0_i32, %c0_i32_0 : i32, i32, i32
  }
  func.func @transform_9(%arg0: i32, %arg1: i32) -> (i32, i32, i32) {
    %c0_i32 = arith.constant 0 : i32
    %c0_i32_0 = arith.constant 0 : i32
    %c0_i32_1 = arith.constant 0 : i32
    return %arg1, %c0_i32, %c0_i32_0 : i32, i32, i32
  }
  func.func @transform_10(%arg0: i32, %arg1: i32) -> (i32, i32, i32) {
    %c0_i32 = arith.constant 0 : i32
    %c0_i32_0 = arith.constant 0 : i32
    %c0_i32_1 = arith.constant 0 : i32
    return %arg1, %c0_i32, %c0_i32_0 : i32, i32, i32
  }
  func.func @transform_11(%arg0: i32, %arg1: i32) -> (i32, i32, i32) {
    %c0_i32 = arith.constant 0 : i32
    %c0_i32_0 = arith.constant 0 : i32
    %c0_i32_1 = arith.constant 0 : i32
    return %arg1, %c0_i32, %c0_i32_0 : i32, i32, i32
  }
  func.func @transform_12(%arg0: i32, %arg1: i32) -> (i32, i32, i32) {
    %c0_i32 = arith.constant 0 : i32
    %c0_i32_0 = arith.constant 0 : i32
    %c0_i32_1 = arith.constant 0 : i32
    return %arg0, %c0_i32, %c0_i32_0 : i32, i32, i32
  }
}

</mosaic_0001>

<bundles_post_ra>
// kernel: bigram_forward.3
= control target key start
LH: loop header
LB: loop body
LE: loop exit
PB: predicated region body
PF: predicated region fallthrough
CT: control target
= control target key end

     0   :  { %v469_v1 = vmov 0.0   ;;  %vm470_vm0 = vmmov 0   ;;  %s581_s0 = inlined_call_operand.vmem [shape: bf16[16,384], index: 0, kind: input, shape index: {}]   ;;  %s582_s1 = inlined_call_operand.vmem [shape: bf16[384,128], index: 1, kind: input, shape index: {}]   ;;  %s583_s2 = inlined_call_operand.vmem [shape: f32[1,128], index: 2, kind: input, shape index: {}]   ;;  %s584_s3 = inlined_call_operand.hbm [shape: f32[16,128], index: 3, kind: output, shape index: {}]  }
   0x1   :  { %v419_v0 = vld [vmem:[%s582_s1 + $0x78] sm:$0xff]   ;;  %394 = vmatprep.subr.bf16.mxu1 %v469_v1  ;;  %410 = vmatprep.mubr.msk.bf16.mxu1 %vm470_vm0, %v469_v1  ;;  %v422_v4 = vld [vmem:[%s582_s1 + $0x70] sm:$0xff]   ;;  %v425_v7 = vld [vmem:[%s582_s1 + $0x68] sm:$0xff]  }
   0x2   :  { %v420_v2 = vld [vmem:[%s582_s1 + $0x38] sm:$0xff]   ;;  %363 = vmatprep.subr.bf16.mxu0 %v419_v0  ;;  %v423_v5 = vld [vmem:[%s582_s1 + $0x30] sm:$0xff]   ;;  %v426_v8 = vld [vmem:[%s582_s1 + $0x28] sm:$0xff]  }
   0x3   :  { %v421_v3 = vld [vmem:[%s582_s1 + $0xb8] sm:$0xff]   ;;  %364 = vmatpush3.bf16.msra.mxu0 %v420_v2  ;;  %v424_v6 = vld [vmem:[%s582_s1 + $0xb0] sm:$0xff]   ;;  %v427_v9 = vld [vmem:[%s582_s1 + $0xa8] sm:$0xff]  }
   0x4   :  { %395 = vmatpush3.bf16.msra.mxu1 %v421_v3  ;;  %365 = vmatprep.subr.bf16.mxu0 %v422_v4  ;;  %v428_v10 = vld [vmem:[%s582_s1 + $0x60] sm:$0xff]   ;;  %v431_v13 = vld [vmem:[%s582_s1 + $0x58] sm:$0xff]   ;;  %v434_v16 = vld [vmem:[%s582_s1 + $0x50] sm:$0xff]  }
   0x5   :  { %396 = vmatprep.subr.bf16.mxu1 %v469_v1  ;;  %v429_v11 = vld [vmem:[%s582_s1 + $0x20] sm:$0xff]   ;;  %v432_v14 = vld [vmem:[%s582_s1 + $0x18] sm:$0xff]   ;;  %v435_v17 = vld [vmem:[%s582_s1 + $0x10] sm:$0xff]  }
   0x6   :  { %v430_v12 = vld [vmem:[%s582_s1 + $0xa0] sm:$0xff]   ;;  %v433_v15 = vld [vmem:[%s582_s1 + $0x98] sm:$0xff]   ;;  %v436_v18 = vld [vmem:[%s582_s1 + $0x90] sm:$0xff]  }
   0x7   :  { %366 = vmatpush3.bf16.msra.mxu0 %v423_v5  ;;  %v437_v19 = vld [vmem:[%s582_s1 + $0x48] sm:$0xff]   ;;  %v440_v22 = vld [vmem:[%s582_s1 + $0x40] sm:$0xff]  }
   0x8   :  { %397 = vmatpush3.bf16.msra.mxu1 %v424_v6  ;;  %367 = vmatprep.subr.bf16.mxu0 %v425_v7  ;;  %v438_v20 = vld [vmem:[%s582_s1 + $0x8] sm:$0xff]   ;;  %v445_v23 = vld [vmem:[%s581_s0 + $0x4] ss:$12 sps:$4 sm:$0xff]  }
   0x9   :  { %398 = vmatprep.subr.bf16.mxu1 %v469_v1  ;;  %v439_v21 = vld [vmem:[%s582_s1 + $0x88] sm:$0xff]  }
   0xb   :  { %368 = vmatpush3.bf16.msra.mxu0 %v426_v8 }
   0xc   :  { %399 = vmatpush3.bf16.msra.mxu1 %v427_v9  ;;  %369 = vmatprep.subr.bf16.mxu0 %v428_v10 }
   0xd   :  { %400 = vmatprep.subr.bf16.mxu1 %v469_v1 }
   0xf   :  { %370 = vmatpush3.bf16.msra.mxu0 %v429_v11 }
  0x10   :  { %401 = vmatpush3.bf16.msra.mxu1 %v430_v12  ;;  %371 = vmatprep.subr.bf16.mxu0 %v431_v13 }
  0x11   :  { %402 = vmatprep.subr.bf16.mxu1 %v469_v1 }
  0x13   :  { %372 = vmatpush3.bf16.msra.mxu0 %v432_v14 }
  0x14   :  { %403 = vmatpush3.bf16.msra.mxu1 %v433_v15  ;;  %373 = vmatprep.subr.bf16.mxu0 %v434_v16 }
  0x15   :  { %404 = vmatprep.subr.bf16.mxu1 %v469_v1 }
  0x17   :  { %374 = vmatpush3.bf16.msra.mxu0 %v435_v17 }
  0x18   :  { %405 = vmatpush3.bf16.msra.mxu1 %v436_v18  ;;  %375 = vmatprep.subr.bf16.mxu0 %v437_v19 }
  0x19   :  { %406 = vmatprep.subr.bf16.mxu1 %v469_v1 }
  0x1a   :  { %8 = vsyncpa [#allocation3], 0  ;;  %v441_v24 = vld [vmem:[%s582_s1] sm:$0xff]   ;;  %267 = vmatprep.mubr.bf16.mxu0 %v445_v23  ;;  %v446_v27 = vld [vmem:[%s581_s0 + $0x8] ss:$12 sps:$4 sm:$0xff]  }
  0x1b   :  { %376 = vmatpush3.bf16.msra.mxu0 %v438_v20  ;;  %v442_v25 = vld [vmem:[%s582_s1 + $0x80] sm:$0xff]  }
  0x1c   :  { %407 = vmatpush3.bf16.msra.mxu1 %v439_v21  ;;  %377 = vmatprep.subr.bf16.mxu0 %v440_v22  ;;  %v443_v26 = vld [vmem:[%s581_s0] ss:$12 sps:$4 sm:$0xff]   ;;  %s471_s0 = smov [#allocation2]  }
  0x1d   :  { %408 = vmatprep.subr.bf16.mxu1 %v469_v1  ;;  %v335_v30 = vld [vmem:[%s583_s2] ss:$0 sm:$0xff]  ;;  %s324_s1 = sshll.u32 %s471_s0, 4  ;;  %s325_s1 = int_to_ptr.vmem [resolvable:$true] %s324_s1 }
  0x1e   :  { %s447_s14 = scalar_lea.vmem %s325_s1, 256  ;;  %p452_p1 = scmp.lt.s32.totalorder %s325_s1, %s325_s1 }
  0x1f   :  { %378 = vmatpush3.bf16.msra.mxu0 %v441_v24  ;;  %p448_p0 = scmp.ne.s32.totalorder %s325_s1, %s447_s14  ;;  %p453_p2 = scmp.lt.s32.totalorder %s447_s14, %s447_s14 }
  0x20   :  { %409 = vmatpush3.bf16.msra.mxu1 %v442_v25 }
  0x21   :  { %p454_p3 = por %p453_p2, %p452_p1 }
  0x22   :  { %268 = vmatmul.mubr.bf16.vlgmr.msra.gmra.mxu0 %v443_v26 }
  0x23   :  { %411 = vmatmul.mubr.bf16.vlgmr.msra.gmra.mxu1 %v446_v27  ;;  %p455_p4 = pnand %p454_p3, %p448_p0 }
  0xe2   :  { %v379_v28 = vpop.f32.mrf.mxu0 }
  0xe3   :  { %v310_v29 = vpop.f32.mrf.mxu1 }
  0xe4   :  { %v380_v31 = vpop.f32.mrf.mxu0 }
  0xe5   :  { %v381_v32 = vadd.f32 %v380_v31, %v379_v28  ;;  %v412_v33 = vpop.f32.mrf.mxu1 }
  0xe6   :  { %v382_v34 = vpop.f32.mrf.mxu0 }
  0xe7   :  { %v270_v35 = vadd.f32 %v381_v32, %v335_v30  ;;  %v313_v36 = vpop.f32.mrf.mxu1 }
  0xe8   :  { %v383_v37 = vpop.f32.mrf.mxu0 }
  0xe9   :  { %v311_v38 = vadd.f32 %v310_v29, %v270_v35  ;;  %v384_v39 = vadd.f32 %v383_v37, %v382_v34  ;;  %v413_v40 = vpop.f32.mrf.mxu1 }
  0xeb   :  { %317 = vst [vmem:[#allocation2] sm:$0xff] %v311_v38  ;;  %v273_v41 = vadd.f32 %v384_v39, %v335_v30 }
  0xed   :  { %v314_v42 = vadd.f32 %v313_v36, %v273_v41 }
  0xef   :  { %318 = vst [vmem:[#allocation2 + $0x8] sm:$0xff] %v314_v42 }
  0xf0   :  { %458 = shalt.err (!%p455_p4)
}
  0xf1   :  { %s472_s2 = smov 128   ;;  %s473_s15 = smov 8  }
  0xf2   :  { %330 = dma.vmem_to_hbm [thread:$0]  %s325_s1, 256, %s584_s3, [#allocation3], %s472_s2, %s472_s2, %s473_s15  }
  0xf3   :  { %467 = dma.done.wait [#allocation3], 256  }
  0xf4   :  { %468 = vsyncadd [#allocation3], 4294967040 }
  0xf5   :  { %334 = vsyncpa [#allocation3], 1 }

// kernel: bigram_forward.2
= control target key start
LH: loop header
LB: loop body
LE: loop exit
PB: predicated region body
PF: predicated region fallthrough
CT: control target
= control target key end

     0   :  { %s14399_s0 = inlined_call_operand.vmem [shape: f32[2,8,384], index: 0, kind: input, shape index: {}]   ;;  %s14400_s1 = inlined_call_operand.hbm [shape: f32[4,1,384], index: 1, kind: input, shape index: {}]   ;;  %s14401_s2 = inlined_call_operand.hbm [shape: f32[4,1,384], index: 2, kind: input, shape index: {}]   ;;  %s14402_s3 = inlined_call_operand.hbm [shape: bf16[4,384,1536], index: 3, kind: input, shape index: {}]   ;;  %s14403_s4 = inlined_call_operand.hbm [shape: bf16[4,512,384], index: 4, kind: input, shape index: {}]   ;;  %s14404_s5 = inlined_call_operand.hbm [shape: f32[4,1,384], index: 5, kind: input, shape index: {}]   ;;  %s14405_s6 = inlined_call_operand.hbm [shape: f32[4,1,384], index: 6, kind: input, shape index: {}]   ;;  %s14406_s7 = inlined_call_operand.hbm [shape: f32[4,1,384], index: 7, kind: input, shape index: {}]   ;;  %s14407_s8 = inlined_call_operand.hbm [shape: bf16[4,384,1536], index: 8, kind: input, shape index: {}]   ;;  %s14408_s9 = inlined_call_operand.hbm [shape: f32[4,1,1536], index: 9, kind: input, shape index: {}]   ;;  %s14409_s10 = inlined_call_operand.hbm [shape: bf16[4,1536,384], index: 10, kind: input, shape index: {}]   ;;  %s14410_s11 = inlined_call_operand.hbm [shape: f32[4,1,384], index: 11, kind: input, shape index: {}]   ;;  %s14411_s12 = inlined_call_operand.vmem [shape: f32[2,8,384], index: 12, kind: output, shape index: {}]  }
   0x1   :  { %14430 = sst [smem:[#allocation36_spill]] %s14399_s0 }
   0x2   :  { %14431 = sst [smem:[#allocation37_spill]] %s14401_s2 }
   0x3   :  { %14432 = sst [smem:[#allocation38_spill]] %s14403_s4 }
   0x4   :  { %14433 = sst [smem:[#allocation39_spill]] %s14405_s6 }
   0x5   :  { %14434 = sst [smem:[#allocation40_spill]] %s14410_s11 }
   0x6   :  { %14435 = sst [smem:[#allocation41_spill]] %s14411_s12 }
   0x7   :  { %17 = vsyncpa [#allocation3], 0 }
   0x8   :  { %19 = vsyncpa [#allocation3 + $0x1], 0 }
   0x9   :  { %20 = vsyncpa [#allocation5], 0 }
   0xa   :  { %22 = vsyncpa [#allocation5 + $0x1], 0 }
   0xb   :  { %23 = vsyncpa [#allocation8], 0 }
   0xc   :  { %25 = vsyncpa [#allocation8 + $0x1], 0 }
   0xd   :  { %26 = vsyncpa [#allocation11], 0 }
   0xe   :  { %28 = vsyncpa [#allocation11 + $0x1], 0 }
   0xf   :  { %29 = vsyncpa [#allocation14], 0 }
  0x10   :  { %31 = vsyncpa [#allocation14 + $0x1], 0 }
  0x11   :  { %32 = vsyncpa [#allocation17], 0 }
  0x12   :  { %34 = vsyncpa [#allocation17 + $0x1], 0  ;;  %s12744_s21 = smov 0   ;;  %s12746_s22 = smov 0  }
  0x13   :  { %s12748_s23 = smov 0   ;;  %s12750_s24 = smov 0  }
  0x14   :  { %s12752_s25 = smov 0   ;;  %s12754_s26 = smov 0  }
  0x15   :  { %s12756_s27 = smov 0   ;;  %s12758_s28 = smov 0  }
  0x16 LB: > { %14436 = sst [smem:[#allocation25_spill]] %s12635_s22  ;;  %s14412_s29 = sadd.s32 4294967295, %s12659_s28   ;;  %s12659_s28 = sphi %s12758_s28, %s40_s28   ;;  %s12655_s27 = sphi %s12756_s27, %s14480_s27   ;;  %s12651_s26 = sphi %s12754_s26, %s14482_s26   ;;  %s12647_s25 = sphi %s12752_s25, %s14478_s25   ;;  %s12643_s24 = sphi %s12750_s24, %s14481_s24   ;;  %s12639_s23 = sphi %s12748_s23, %s14477_s23   ;;  %s12635_s22 = sphi %s12746_s22, %s14476_s22   ;;  %s12631_s21 = sphi %s12744_s21, %s14475_s21  }
  0x17   : > { %14437 = sst [smem:[#allocation26_spill]] %s12639_s23  ;;  %s49_s30 = sadd.s32 1, %s12651_s26 }
  0x18   : > { %14438 = sst [smem:[#allocation27_spill]] %s12643_s24  ;;  %p50_p0 = scmp.ge.s32.totalorder %s49_s30, 4 }
  0x19   : > { %14439 = sst [smem:[#allocation28_spill]] %s12647_s25  ;;  %s52_s13 = sadd.s32 1, %s12655_s27 }
  0x1a   : > { %14440 = sst [smem:[#allocation29_spill]] %s12655_s27  ;;  %s85_s14 = sadd.s32 1, %s12639_s23 }
  0x1b   : > { %14441 = sst [smem:[#allocation30_spill]] %s12659_s28  ;;  %p92_p1 = scmp.ne.s32.totalorder %s12639_s23, %s12635_s22 }
  0x1c   : > { %s14484_s30 = smov (%p50_p0, %s49_s30), 0  ;;  %s14486_s13 = smov (!%p50_p0, %s52_s13), %s12655_s27 }
  0x1d   : > { %14442 = sst [smem:[#allocation31_spill]] %s14484_s30  ;;  %s82_s15 = ssub.s32 %s12651_s26, %s14484_s30 }
  0x1e   : > { %p93_p2 = scmp.eq.s32.totalorder %s12659_s28, 0  ;;  %p54_p3 = scmp.ge.s32.totalorder %s14486_s13, 2 }
  0x1f   : > { %p83_p4 = scmp.eq.s32.totalorder %s82_s15, 0  ;;  %p98_p6 = scmp.ne.s32.totalorder %s12635_s22, %s12631_s21 }
  0x20   : > { %p94_p5 = por %p93_p2, %p92_p1  ;;  %s14488_s13 = smov (%p54_p3, %s14486_s13), 0 }
  0x21   : > { %14443 = sst [smem:[#allocation32_spill]] %s14488_s13  ;;  %p99_p7 = scmp.eq.s32.totalorder %s14412_s29, 0 }
  0x22   : > { %s12798_s16 = scalar_select %p83_p4, %s12639_s23, %s85_s14  }
  0x23   : > { %p10794_p8 = scmp.lt.s32.totalorder %s12659_s28, 8  ;;  %s12804_s17 = sand.u32 1, %s12639_s23  }
  0x24   : > { %14444 = sst [smem:[#allocation33_spill]] %s12798_s16  ;;  %p12806_p9 = por %p99_p7, %p98_p6 }
  0x25   : > { %s12811_s19 = smul.u32 3, %s12804_s17  ;;  %p12816_p10 = pnand %p10794_p8, %p94_p5 }
  0x26   : > { %s14445_s18 = scalar_select %p12806_p9, 1, 0 }
  0x27   : > { %s12814_s20 = smul.u32 48, %s12651_s26  ;;  %s12821_s14 = sand.u32 1, %s12659_s28  }
  0x28   : > { %14446 = sst [smem:[#allocation34_spill]] %s14445_s18  ;;  %s439_s30 = scalar_lea.vmem [#allocation4], %s12811_s19 }
  0x29   : > { %s14448_s2 = sld [smem:[#allocation37_spill]]  ;;  %s447_s27 = sshll.u32 %s439_s30, 4  ;;  %s448_s27 = int_to_ptr.vmem [resolvable:$true] %s447_s27 }
  0x2a   : > { %p9501_p11 = scmp.ge.s32.totalorder %s12659_s28, 1  ;;  %s14420_s16 = scalar_lea.sflag [#allocation5], %s12821_s14 }
  0x2b   : > { %p12832_p12 = pneg %p12816_p10  ;;  %s12278_s24 = scalar_lea.vmem %s448_s27, 48 }
  0x2c   : > { %p12279_p13 = scmp.ne.s32.totalorder %s448_s27, %s12278_s24  ;;  %s12661_s12 = smov [#allocation4]  }
  0x2d   : > { %s12283_s29 = sshll.u32 %s12661_s12, 4  ;;  %s12284_s29 = int_to_ptr.vmem [resolvable:$false] %s12283_s29 }
  0x2e   : > { %p12281_p0 = pnand %p12279_p13, %p12832_p12  ;;  %s12285_s15 = scalar_lea.vmem %s12284_s29, 96 }
  0x2f   : > { %s445_s13 = scalar_lea.hbm %s14448_s2, %s12814_s20  ;;  %p12286_p2 = scmp.lt.s32.totalorder %s448_s27, %s12284_s29 }
  0x30   : > { %p12282_p1 = pneg %p12281_p0  ;;  %p12287_p3 = scmp.lt.s32.totalorder %s12285_s15, %s12278_s24 }
  0x32   : > { %p12288_p4 = por %p12287_p3, %p12286_p2 }
  0x34   : > { %p12289_p5 = pnand %p12288_p4, %p12282_p1 }
  0x36   : > { %12292 = shalt.err (!%p12289_p5)
}
  0x37   : > { %10766 = dma.hbm_to_vmem [thread:$0]  (!%p12816_p10), %s445_s13, 48, %s448_s27, %s14420_s16  }
  0x38   : > { %p631_p6 = scmp.lt.s32.totalorder %s12659_s28, 9  ;;  %s10717_s12 = smul.u32 768, %s12804_s17 }
  0x39   : > { %s10718_s24 = smul.u32 12288, %s12651_s26  ;;  %s14452_s4 = sld [smem:[#allocation38_spill]] }
  0x3a   : > { %p12846_p7 = pnand %p9501_p11, %p631_p6  ;;  %s479_s0 = scalar_lea.vmem [#allocation7], %s10717_s12 }
  0x3b   : > { %s486_s25 = sshll.u32 %s479_s0, 4  ;;  %s14423_s18 = scalar_lea.sflag [#allocation8], %s12821_s14  ;;  %s487_s25 = int_to_ptr.vmem [resolvable:$true] %s486_s25 }
  0x3c   : > { %s14450_s30 = scalar_select %p12846_p7, 1, 0 }
  0x3d   : > { %s12306_s22 = scalar_lea.vmem %s487_s25, 12288  ;;  %s12662_s27 = smov [#allocation7]  }
  0x3e   : > { %14451 = sst [smem:[#allocation35_spill]] %s14450_s30  ;;  %p12307_p8 = scmp.ne.s32.totalorder %s487_s25, %s12306_s22 }
  0x3f   : > { %s485_s2 = scalar_lea.hbm %s14452_s4, %s10718_s24  ;;  %s12311_s13 = sshll.u32 %s12662_s27, 4  ;;  %s12312_s13 = int_to_ptr.vmem [resolvable:$false] %s12311_s13 }
  0x40   : > { %p12309_p13 = pnand %p12307_p8, %p12832_p12  ;;  %s12313_s16 = scalar_lea.vmem %s12312_s13, 24576 }
  0x41   : > { %p12314_p11 = scmp.lt.s32.totalorder %s487_s25, %s12312_s13  ;;  %p12315_p1 = scmp.lt.s32.totalorder %s12313_s16, %s12306_s22 }
  0x42   : > { %p12310_p0 = pneg %p12309_p13 }
  0x43   : > { %p12316_p2 = por %p12315_p1, %p12314_p11 }
  0x45   : > { %p12317_p3 = pnand %p12316_p2, %p12310_p0 }
  0x47   : > { %12320 = shalt.err (!%p12317_p3)
}
  0x48   : > { %s14424_s29 = smov 192   ;;  %s14426_s0 = smov 12  }
  0x49   : > { %10772 = dma.hbm_to_vmem [thread:$0]  (!%p12816_p10), %s485_s2, 12288, %s487_s25, %s14423_s18, %s14424_s29, %s14424_s29, %s14426_s0  }
  0x4a   : > { %s14453_s6 = sld [smem:[#allocation39_spill]]  ;;  %s519_s24 = scalar_lea.vmem [#allocation10], %s12811_s19 }
  0x4b   : > { %s527_s15 = sshll.u32 %s519_s24, 4  ;;  %s12870_s27 = smul.u32 2304, %s12804_s17  ;;  %s528_s15 = int_to_ptr.vmem [resolvable:$true] %s527_s15 }
  0x4c   : > { %s12873_s13 = smul.u32 36864, %s12651_s26  ;;  %s14425_s4 = scalar_lea.sflag [#allocation11], %s12821_s14 }
  0x4d   : > { %s12334_s28 = scalar_lea.vmem %s528_s15, 48  ;;  %s12665_s30 = smov [#allocation10]  }
  0x4e   : > { %p12335_p4 = scmp.ne.s32.totalorder %s528_s15, %s12334_s28  ;;  %s12339_s11 = sshll.u32 %s12665_s30, 4  ;;  %s12340_s11 = int_to_ptr.vmem [resolvable:$false] %s12339_s11 }
  0x4f   : > { %s12341_s2 = scalar_lea.vmem %s12340_s11, 96  ;;  %p12342_p8 = scmp.lt.s32.totalorder %s528_s15, %s12340_s11 }
  0x50   : > { %s525_s12 = scalar_lea.hbm %s14453_s6, %s12814_s20  ;;  %p12337_p5 = pnand %p12335_p4, %p12832_p12 }
  0x51   : > { %p12343_p13 = scmp.lt.s32.totalorder %s12341_s2, %s12334_s28 }
  0x52   : > { %p12338_p6 = pneg %p12337_p5 }
  0x53   : > { %p12344_p0 = por %p12343_p13, %p12342_p8 }
  0x55   : > { %p12345_p11 = pnand %p12344_p0, %p12338_p6 }
  0x57   : > { %12348 = shalt.err (!%p12345_p11)
}
  0x58   : > { %10778 = dma.hbm_to_vmem [thread:$0]  (!%p12816_p10), %s525_s12, 48, %s528_s15, %s14425_s4  }
  0x59   : > { %s563_s30 = scalar_lea.hbm %s14407_s8, %s12873_s13  ;;  %s557_s16 = scalar_lea.vmem [#allocation13], %s12870_s27 }
  0x5a   : > { %s564_s24 = sshll.u32 %s557_s16, 4  ;;  %s14427_s11 = scalar_lea.sflag [#allocation14], %s12821_s14  ;;  %s565_s24 = int_to_ptr.vmem [resolvable:$true] %s564_s24 }
  0x5b   : > { %s12362_s28 = scalar_lea.vmem %s565_s24, 36864  ;;  %s12666_s2 = smov [#allocation13]  }
  0x5c   : > { %p12363_p1 = scmp.ne.s32.totalorder %s565_s24, %s12362_s28  ;;  %s12367_s18 = sshll.u32 %s12666_s2, 4  ;;  %s12368_s18 = int_to_ptr.vmem [resolvable:$false] %s12367_s18 }
  0x5d   : > { %s12369_s29 = scalar_lea.vmem %s12368_s18, 73728  ;;  %p12370_p4 = scmp.lt.s32.totalorder %s565_s24, %s12368_s18 }
  0x5e   : > { %p12365_p2 = pnand %p12363_p1, %p12832_p12  ;;  %p12371_p5 = scmp.lt.s32.totalorder %s12369_s29, %s12362_s28 }
  0x60   : > { %p12366_p3 = pneg %p12365_p2  ;;  %p12372_p6 = por %p12371_p5, %p12370_p4 }
  0x62   : > { %p12373_p8 = pnand %p12372_p6, %p12366_p3 }
  0x64   : > { %12376 = shalt.err (!%p12373_p8)
}
  0x65   : > { %s14428_s12 = smov 768   ;;  %s14429_s15 = smov 48  }
  0x66   : > { %10784 = dma.hbm_to_vmem [thread:$0]  (!%p12816_p10), %s563_s30, 36864, %s565_s24, %s14427_s11, %s14428_s12, %s14428_s12, %s14429_s15  }
  0x67   : > { %s603_s29 = scalar_lea.hbm %s14409_s10, %s12873_s13  ;;  %s597_s22 = scalar_lea.vmem [#allocation16], %s12870_s27 }
  0x68   : > { %s604_s16 = sshll.u32 %s597_s22, 4  ;;  %s594_s28 = scalar_lea.sflag [#allocation17], %s12821_s14  ;;  %s605_s16 = int_to_ptr.vmem [resolvable:$true] %s604_s16 }
  0x69   : > { %s12390_s2 = scalar_lea.vmem %s605_s16, 36864  ;;  %s12669_s4 = smov [#allocation16]  }
  0x6a   : > { %p12391_p13 = scmp.ne.s32.totalorder %s605_s16, %s12390_s2  ;;  %s12395_s0 = sshll.u32 %s12669_s4, 4  ;;  %s12396_s0 = int_to_ptr.vmem [resolvable:$false] %s12395_s0 }
  0x6b   : > { %s12397_s6 = scalar_lea.vmem %s12396_s0, 73728  ;;  %p12398_p1 = scmp.lt.s32.totalorder %s605_s16, %s12396_s0 }
  0x6c   : > { %p12393_p0 = pnand %p12391_p13, %p12832_p12  ;;  %p12399_p2 = scmp.lt.s32.totalorder %s12397_s6, %s12390_s2 }
  0x6e   : > { %p12394_p11 = pneg %p12393_p0  ;;  %p12400_p3 = por %p12399_p2, %p12398_p1 }
  0x70   : > { %p12401_p4 = pnand %p12400_p3, %p12394_p11 }
  0x72   : > { %12404 = shalt.err (!%p12401_p4)
}
  0x73   : > { %s14454_s30 = smov 12   ;;  %s14455_s24 = smov 192  }
  0x74   : > { %10790 = dma.hbm_to_vmem [thread:$0]  (!%p12816_p10), %s603_s29, 36864, %s605_s16, %s594_s28, %s14455_s24, %s14455_s24, %s14454_s30  }
  0x75   : > { %s426_s0 = scalar_lea.hbm %s14400_s1, %s12814_s20  ;;  %s420_s6 = scalar_lea.vmem [#allocation2], %s12811_s19 }
  0x76   : > { %s428_s18 = sshll.u32 %s420_s6, 4  ;;  %s417_s22 = scalar_lea.sflag [#allocation3], %s12804_s17  ;;  %s429_s18 = int_to_ptr.vmem [resolvable:$true] %s428_s18 }
  0x77   : > { %s12418_s2 = scalar_lea.vmem %s429_s18, 48  ;;  %s12670_s11 = smov [#allocation2]  }
  0x78   : > { %p12419_p5 = scmp.ne.s32.totalorder %s429_s18, %s12418_s2  ;;  %s12423_s12 = sshll.u32 %s12670_s11, 4  ;;  %s12424_s12 = int_to_ptr.vmem [resolvable:$false] %s12423_s12 }
  0x79   : > { %s12425_s15 = scalar_lea.vmem %s12424_s12, 96  ;;  %p12426_p13 = scmp.lt.s32.totalorder %s429_s18, %s12424_s12 }
  0x7a   : > { %p12421_p6 = pnand %p12419_p5, %p12832_p12  ;;  %p12427_p0 = scmp.lt.s32.totalorder %s12425_s15, %s12418_s2 }
  0x7c   : > { %p12422_p8 = pneg %p12421_p6  ;;  %p12428_p11 = por %p12427_p0, %p12426_p13 }
  0x7e   : > { %p12429_p1 = pnand %p12428_p11, %p12422_p8 }
  0x80   : > { %12432 = shalt.err (!%p12429_p1)
}
  0x81   : > { %10763 = dma.hbm_to_vmem [thread:$0]  (!%p12816_p10), %s426_s0, 48, %s429_s18, %s417_s22  }
  0x82   : > { %s464_s30 = scalar_lea.hbm %s14402_s3, %s12873_s13  ;;  %s458_s24 = scalar_lea.vmem [#allocation6], %s12870_s27 }
  0x83   : > { %s465_s4 = sshll.u32 %s458_s24, 4  ;;  %s12671_s12 = smov [#allocation6]   ;;  %s466_s4 = int_to_ptr.vmem [resolvable:$true] %s465_s4 }
  0x84   : > { %s12446_s11 = scalar_lea.vmem %s466_s4, 36864  ;;  %s12451_s15 = sshll.u32 %s12671_s12, 4  ;;  %s12452_s15 = int_to_ptr.vmem [resolvable:$false] %s12451_s15 }
  0x85   : > { %p12447_p2 = scmp.ne.s32.totalorder %s466_s4, %s12446_s11  ;;  %s12453_s25 = scalar_lea.vmem %s12452_s15, 73728 }
  0x86   : > { %p12454_p5 = scmp.lt.s32.totalorder %s466_s4, %s12452_s15  ;;  %p12455_p6 = scmp.lt.s32.totalorder %s12453_s25, %s12446_s11 }
  0x87   : > { %p12449_p3 = pnand %p12447_p2, %p12832_p12 }
  0x88   : > { %p12456_p8 = por %p12455_p6, %p12454_p5 }
  0x89   : > { %p12450_p4 = pneg %p12449_p3 }
  0x8b   : > { %p12457_p13 = pnand %p12456_p8, %p12450_p4 }
  0x8d   : > { %12460 = shalt.err (!%p12457_p13)
}
  0x8e   : > { %s14456_s13 = smov 48   ;;  %s14457_s27 = smov 768  }
  0x8f   : > { %s14458_s0 = scalar_lea.sflag [#allocation5], %s12821_s14  ;;  %s506_s22 = scalar_lea.hbm %s14404_s5, %s12814_s20 }
  0x90   : > { %10769 = dma.hbm_to_vmem [thread:$0]  (!%p12816_p10), %s464_s30, 36864, %s466_s4, %s14458_s0, %s14457_s27, %s14457_s27, %s14456_s13  }
  0x91   : > { %s500_s2 = scalar_lea.vmem [#allocation9], %s12811_s19  ;;  %s12672_s24 = smov [#allocation9]  }
  0x92   : > { %s508_s29 = sshll.u32 %s500_s2, 4  ;;  %s12479_s11 = sshll.u32 %s12672_s24, 4  ;;  %s509_s29 = int_to_ptr.vmem [resolvable:$true] %s508_s29  ;;  %s12480_s11 = int_to_ptr.vmem [resolvable:$false] %s12479_s11 }
  0x93   : > { %s12474_s16 = scalar_lea.vmem %s509_s29, 48  ;;  %s12481_s12 = scalar_lea.vmem %s12480_s11, 96 }
  0x94   : > { %p12475_p0 = scmp.ne.s32.totalorder %s509_s29, %s12474_s16  ;;  %p12482_p2 = scmp.lt.s32.totalorder %s509_s29, %s12480_s11 }
  0x95   : > { %p12483_p3 = scmp.lt.s32.totalorder %s12481_s12, %s12474_s16 }
  0x96   : > { %p12477_p11 = pnand %p12475_p0, %p12832_p12 }
  0x97   : > { %p12484_p4 = por %p12483_p3, %p12482_p2 }
  0x98   : > { %p12478_p1 = pneg %p12477_p11 }
  0x9a   : > { %p12485_p5 = pnand %p12484_p4, %p12478_p1 }
  0x9c   : > { %12488 = shalt.err (!%p12485_p5)
}
  0x9d   : > { %s14459_s30 = scalar_lea.sflag [#allocation8], %s12821_s14  ;;  %s544_s25 = scalar_lea.hbm %s14406_s7, %s12814_s20 }
  0x9e   : > { %10775 = dma.hbm_to_vmem [thread:$0]  (!%p12816_p10), %s506_s22, 48, %s509_s29, %s14459_s30  }
  0x9f   : > { %s538_s13 = scalar_lea.vmem [#allocation12], %s12811_s19  ;;  %s10727_s0 = smul.u32 12, %s12804_s17 }
  0xa0   : > { %s546_s27 = sshll.u32 %s538_s13, 4  ;;  %s12673_s18 = smov [#allocation12]   ;;  %s547_s27 = int_to_ptr.vmem [resolvable:$true] %s546_s27 }
  0xa1   : > { %s12502_s6 = scalar_lea.vmem %s547_s27, 48  ;;  %s12507_s2 = sshll.u32 %s12673_s18, 4  ;;  %s12508_s2 = int_to_ptr.vmem [resolvable:$false] %s12507_s2 }
  0xa2   : > { %p12503_p6 = scmp.ne.s32.totalorder %s547_s27, %s12502_s6  ;;  %s12509_s16 = scalar_lea.vmem %s12508_s2, 96 }
  0xa3   : > { %p12510_p0 = scmp.lt.s32.totalorder %s547_s27, %s12508_s2  ;;  %p12511_p11 = scmp.lt.s32.totalorder %s12509_s16, %s12502_s6 }
  0xa4   : > { %p12505_p8 = pnand %p12503_p6, %p12832_p12 }
  0xa5   : > { %p12512_p1 = por %p12511_p11, %p12510_p0 }
  0xa6   : > { %p12506_p13 = pneg %p12505_p8 }
  0xa8   : > { %p12513_p2 = pnand %p12512_p1, %p12506_p13 }
  0xaa   : > { %12516 = shalt.err (!%p12513_p2)
}
  0xab   : > { %s14460_s22 = scalar_lea.sflag [#allocation11], %s12821_s14  ;;  %s10728_s17 = smul.u32 192, %s12651_s26 }
  0xac   : > { %10781 = dma.hbm_to_vmem [thread:$0]  (!%p12816_p10), %s544_s25, 48, %s547_s27, %s14460_s22  }
  0xad   : > { %s578_s29 = scalar_lea.vmem [#allocation15], %s10727_s0  ;;  %s584_s30 = scalar_lea.hbm %s14408_s9, %s10728_s17 }
  0xae   : > { %s586_s24 = sshll.u32 %s578_s29, 4  ;;  %s12674_s15 = smov [#allocation15]   ;;  %s587_s24 = int_to_ptr.vmem [resolvable:$true] %s586_s24 }
  0xaf   : > { %s12530_s4 = scalar_lea.vmem %s587_s24, 192  ;;  %s12535_s13 = sshll.u32 %s12674_s15, 4  ;;  %s12536_s13 = int_to_ptr.vmem [resolvable:$false] %s12535_s13 }
  0xb0   : > { %p12531_p3 = scmp.ne.s32.totalorder %s587_s24, %s12530_s4  ;;  %s12537_s6 = scalar_lea.vmem %s12536_s13, 384 }
  0xb1   : > { %p12538_p6 = scmp.lt.s32.totalorder %s587_s24, %s12536_s13  ;;  %p12539_p8 = scmp.lt.s32.totalorder %s12537_s6, %s12530_s4 }
  0xb2   : > { %p12533_p4 = pnand %p12531_p3, %p12832_p12 }
  0xb3   : > { %p12540_p13 = por %p12539_p8, %p12538_p6 }
  0xb4   : > { %p12534_p5 = pneg %p12533_p4 }
  0xb6   : > { %p12541_p0 = pnand %p12540_p13, %p12534_p5 }
  0xb8   : > { %12544 = shalt.err (!%p12541_p0)
}
  0xb9   : > { %s14461_s25 = scalar_lea.sflag [#allocation14], %s12821_s14  ;;  %s14462_s18 = sld [smem:[#allocation40_spill]] }
  0xba   : > { %10787 = dma.hbm_to_vmem [thread:$0]  (!%p12816_p10), %s584_s30, 192, %s587_s24, %s14461_s25  }
  0xbb   : > { %s618_s16 = scalar_lea.vmem [#allocation18], %s12811_s19  ;;  %s12675_s29 = smov [#allocation18]  }
  0xbc   : > { %s626_s22 = sshll.u32 %s618_s16, 4  ;;  %s12563_s11 = sshll.u32 %s12675_s29, 4  ;;  %s627_s22 = int_to_ptr.vmem [resolvable:$true] %s626_s22  ;;  %s12564_s11 = int_to_ptr.vmem [resolvable:$false] %s12563_s11 }
  0xbd   : > { %s12558_s17 = scalar_lea.vmem %s627_s22, 48  ;;  %s12565_s12 = scalar_lea.vmem %s12564_s11, 96 }
  0xbe   : > { %p12559_p11 = scmp.ne.s32.totalorder %s627_s22, %s12558_s17  ;;  %p12566_p3 = scmp.lt.s32.totalorder %s627_s22, %s12564_s11 }
  0xbf   : > { %s624_s2 = scalar_lea.hbm %s14462_s18, %s12814_s20  ;;  %p12567_p4 = scmp.lt.s32.totalorder %s12565_s12, %s12558_s17 }
  0xc0   : > { %p12561_p1 = pnand %p12559_p11, %p12832_p12 }
  0xc1   : > { %p12568_p5 = por %p12567_p4, %p12566_p3 }
  0xc2   : > { %p12562_p2 = pneg %p12561_p1 }
  0xc4   : > { %p12569_p6 = pnand %p12568_p5, %p12562_p2 }
  0xc6   : > { %12572 = shalt.err (!%p12569_p6)
}
  0xc7   : > { %10793 = dma.hbm_to_vmem [thread:$0]  (!%p12816_p10), %s624_s2, 48, %s627_s22, %s594_s28  }
  0xc8   : > { %635 = sbr.rel (%p12846_p7) target bundleno = 2959 (0xb8f), region = 68  ;;  %s14464_s23 = sld [smem:[#allocation25_spill]] (!%p12846_p7) }
  0xce   : > { %s12983_s24 = sand.u32 1, %s14464_s23  }
  0xcf   : > { %s12986_s30 = smul.u32 3, %s12983_s24  ;;  %s638_s4 = scalar_lea.sflag [#allocation3], %s12983_s24 }
  0xd1   : > { %s641_s15 = scalar_lea.vmem [#allocation2], %s12986_s30 }
  0xd2   : > { %12606 = dma.done.wait (%p12806_p9), %s638_s4, 48  }
  0xd3   : > { %12608 = vsyncadd (%p12806_p9), %s638_s4, 4294967248  ;;  %s14466_s21 = sld [smem:[#allocation30_spill]]  ;;  %s650_s6 = scalar_lea.vmem [#allocation4], %s12986_s30 }
  0xd9   : > { %s14467_s14 = sadd.s32 4294967295, %s14466_s21  }
  0xda   : > { %s646_s28 = sand.u32 1, %s14467_s14  }
  0xdb   : > { %s647_s13 = scalar_lea.sflag [#allocation5], %s646_s28 }
  0xdc   : > { %12610 = dma.done.wait (%p12806_p9), %s647_s13, 36912  }
  0xdd   : > { %12612 = vsyncadd (%p12806_p9), %s647_s13, 4294930384  ;;  %s10734_s25 = smul.u32 2304, %s12983_s24  ;;  %s665_s18 = scalar_lea.sflag [#allocation8], %s646_s28 }
  0xde   : > { %s10735_s27 = smul.u32 768, %s12983_s24 }
  0xdf   : > { %s13003_s0 = scalar_lea.vmem [#allocation6], %s10734_s25 }
  0xe0   : > { %s13005_s2 = scalar_lea.vmem [#allocation7], %s10735_s27 }
  0xe1   : > { %12614 = dma.done.wait (%p12806_p9), %s665_s18, 12336  }
  0xe2   : > { %12616 = vsyncadd (%p12806_p9), %s665_s18, 4294954960  ;;  %s677_s16 = scalar_lea.vmem [#allocation9], %s12986_s30  ;;  %s683_s22 = scalar_lea.sflag [#allocation11], %s646_s28 }
  0xe3   : > { %12618 = dma.done.wait (%p12806_p9), %s683_s22, 96  }
  0xe4   : > { %12620 = vsyncadd (%p12806_p9), %s683_s22, 4294967200  ;;  %s701_s11 = scalar_lea.sflag [#allocation14], %s646_s28  ;;  %s13018_s12 = scalar_lea.vmem [#allocation13], %s10734_s25 }
  0xe5   : > { %12622 = dma.done.wait (%p12806_p9), %s701_s11, 37056  }
  0xe6   : > { %12624 = vsyncadd (%p12806_p9), %s701_s11, 4294930240  ;;  %s10736_s19 = smul.u32 12, %s12983_s24  ;;  %s719_s4 = scalar_lea.sflag [#allocation17], %s646_s28 }
  0xe7   : > { %s13027_s21 = scalar_lea.vmem [#allocation16], %s10734_s25 }
  0xe8   : > { %s13025_s23 = scalar_lea.vmem [#allocation15], %s10736_s19 }
  0xe9   : > { %12626 = dma.done.wait (%p12806_p9), %s719_s4, 36912  }
  0xea   : > { %12628 = vsyncadd (%p12806_p9), %s719_s4, 4294930384  ;;  %s14468_s14 = sld [smem:[#allocation28_spill]]  ;;  %s731_s29 = scalar_lea.vmem [#allocation18], %s12986_s30 }
  0xeb   : > { %s14469_s22 = sld [smem:[#allocation36_spill]] }
  0xec   : > { %s14470_s28 = sld [smem:[#allocation41_spill]] }
  0xed   : > { %s14471_s17 = sld [smem:[#allocation27_spill]] }
  0xf0   : > { %p827_p10 = scmp.lt.s32.totalorder %s14468_s14, 1 }
  0xf2   : > { %s14490_s14 = smov (!%p827_p10, %s14468_s14), 1 }
  0xf3   : > { %s10737_s13 = smul.u32 24, %s14490_s14  ;;  %p9504_p12 = scmp.ne.s32.totalorder %s14471_s17, 0 }
  0xf5   : > { %s831_s24 = scalar_lea.vmem %s14469_s22, %s10737_s13  ;;  %s13041_s25 = scalar_lea.vmem %s14470_s28, %s10737_s13 }
  0xf6   : > { %841 = sbr.rel (%p9504_p12) target bundleno = 254 (0xfe), region = 116 }
  0xfb   : > { %v842_v0 = vld [vmem:[%s831_s24] sm:$0xff]  ;;  %v843_v1 = vld [vmem:[%s831_s24 + $0x8] sm:$0xff]  ;;  %v844_v2 = vld [vmem:[%s831_s24 + $0x10] sm:$0xff] }
  0xfc   : > { %845 = vst [vmem:[%s13041_s25] sm:$0xff] %v842_v0  ;;  %846 = vst [vmem:[%s13041_s25 + $0x8] sm:$0xff] %v843_v1 }
  0xfd   : > { %847 = vst [vmem:[%s13041_s25 + $0x10] sm:$0xff] %v844_v2 }
  0xfe PF: > { %v10866_v8 = vld [vmem:[%s13003_s0 + $0x2a4] ss:$48 sps:$4 sm:$0xff]   ;;  %v10868_v9 = vld [vmem:[%s13003_s0 + $0x2a0] ss:$48 sps:$4 sm:$0xff]   ;;  %v12676_v61 = vmov 0   ;;  %vm12678_vm0 = vmmov 0  }
  0xff   : > { %v10869_v10 = vld [vmem:[%s13003_s0 + $0x244] ss:$48 sps:$4 sm:$0xff]   ;;  %2644 = vmatprep.subr.bf16.mxu0 %v10866_v8  ;;  %v10871_v11 = vld [vmem:[%s13003_s0 + $0x240] ss:$48 sps:$4 sm:$0xff]   ;;  %2717 = vmatprep.mubr.bf16.mxu1 %v12676_v61  ;;  %v876_v8 = vlaneseq  ;;  %vm3201_vm1 = vcmask 1043456   ;;  %vm3185_vm3 = vcmask 64512  }
 0x100   : > { %2645 = vmatpush1.bf16.msra.mxu0 %v10868_v9  ;;  %v10872_v12 = vld [vmem:[%s13003_s0 + $0x1e4] ss:$48 sps:$4 sm:$0xff]   ;;  %v10894_v14 = vld [vmem:[%s13003_s0 + $0x8a0] ss:$48 sps:$4 sm:$0xff]   ;;  %s14472_s20 = scalar_lea.vmem [#allocation10], %s12986_s30 }
 0x101   : > { %2646 = vmatprep.subr.bf16.mxu0 %v10869_v10  ;;  %v10890_v13 = vld [vmem:[%s13003_s0 + $0x8a4] ss:$48 sps:$4 sm:$0xff]   ;;  %v10874_v16 = vld [vmem:[%s13003_s0 + $0x1e0] ss:$48 sps:$4 sm:$0xff]   ;;  %v13115_v9 = vshrl.u32 %v876_v8, 7 }
 0x102   : > { %v10896_v15 = vld [vmem:[%s13003_s0 + $0x844] ss:$48 sps:$4 sm:$0xff]   ;;  %2685 = vmatprep.subr.bf16.mxu1 %v10890_v13  ;;  %v10900_v18 = vld [vmem:[%s13003_s0 + $0x840] ss:$48 sps:$4 sm:$0xff]  }
 0x103   : > { %v848_v3 = vld [vmem:[%s13041_s25] sm:$0xff]  ;;  %v849_v4 = vld [vmem:[%s13041_s25 + $0x8] sm:$0xff]  ;;  %2686 = vmatpush1.bf16.msra.mxu1 %v10894_v14  ;;  %v13126_v13 = vsub.s32 0, %v13115_v9 }
 0x104   : > { %v850_v5 = vld [vmem:[%s13041_s25 + $0x10] sm:$0xff]  ;;  %v853_v6 = vadd.f32 %v849_v4, %v848_v3  ;;  %2647 = vmatpush1.bf16.msra.mxu0 %v10871_v11  ;;  %v10877_v19 = vld [vmem:[%s13003_s0 + $0x180] ss:$48 sps:$4 sm:$0xff]   ;;  %2687 = vmatprep.subr.bf16.mxu1 %v10896_v15  ;;  %v851_v10 = vld [vmem:[%s641_s15] sm:$0x7]  ;;  %v13120_v11 = vsub.s32 1, %v13115_v9 }
 0x105   : > { %v10875_v17 = vld [vmem:[%s13003_s0 + $0x184] ss:$48 sps:$4 sm:$0xff]   ;;  %2648 = vmatprep.subr.bf16.mxu0 %v10872_v12  ;;  %v10880_v21 = vld [vmem:[%s13003_s0 + $0x120] ss:$48 sps:$4 sm:$0xff]   ;;  %v13123_v12 = vsub.s32 2, %v13115_v9  ;;  %s14473_s15 = scalar_lea.vmem [#allocation12], %s12986_s30 }
 0x106   : > { %v854_v7 = vadd.f32 %v853_v6, %v850_v5  ;;  %v10878_v20 = vld [vmem:[%s13003_s0 + $0x124] ss:$48 sps:$4 sm:$0xff]   ;;  %v10883_v23 = vld [vmem:[%s13003_s0 + $0xc0] ss:$48 sps:$4 sm:$0xff]   ;;  %v852_v14 = vld [vmem:[%s650_s6] sm:$0x7]  ;;  %v883_v15 = vrot.slane %v851_v10, %v13120_v11 }
 0x107   : > { %2688 = vmatpush1.bf16.msra.mxu1 %v10900_v18  ;;  %v10881_v22 = vld [vmem:[%s13003_s0 + $0xc4] ss:$48 sps:$4 sm:$0xff]   ;;  %v10886_v25 = vld [vmem:[%s13003_s0 + $0x60] ss:$48 sps:$4 sm:$0xff]  }
 0x108   : > { %855 = vadd.xlane.f32.xlu0 %v854_v7  ;;  %2649 = vmatpush1.bf16.msra.mxu0 %v10874_v16  ;;  %v10884_v24 = vld [vmem:[%s13003_s0 + $0x64] ss:$48 sps:$4 sm:$0xff]   ;;  %v10889_v27 = vld [vmem:[%s13003_s0] ss:$48 sps:$4 sm:$0xff]   ;;  %v887_v16 = vrot.slane %v851_v10, %v13123_v12 }
 0x109   : > { %2650 = vmatprep.subr.bf16.mxu0 %v10875_v17  ;;  %v10887_v26 = vld [vmem:[%s13003_s0 + $0x4] ss:$48 sps:$4 sm:$0xff]   ;;  %v10895_v29 = vld [vmem:[%s13003_s0 + $0x5a0] ss:$48 sps:$4 sm:$0xff]   ;;  %v879_v17 = vrot.slane %v851_v10, %v13126_v13 }
 0x10a   : > { %v10892_v28 = vld [vmem:[%s13003_s0 + $0x5a4] ss:$48 sps:$4 sm:$0xff]   ;;  %v10901_v31 = vld [vmem:[%s13003_s0 + $0x540] ss:$48 sps:$4 sm:$0xff]  }
 0x10b   : > { %v10898_v30 = vld [vmem:[%s13003_s0 + $0x544] ss:$48 sps:$4 sm:$0xff]   ;;  %v10906_v44 = vld [vmem:[%s13003_s0 + $0x7e0] ss:$48 sps:$4 sm:$0xff]  }
 0x10c   : > { %2651 = vmatpush1.bf16.msra.mxu0 %v10877_v19  ;;  %v10902_v42 = vld [vmem:[%s13003_s0 + $0x7e4] ss:$48 sps:$4 sm:$0xff]   ;;  %v10907_v45 = vld [vmem:[%s13003_s0 + $0x4e0] ss:$48 sps:$4 sm:$0xff]   ;;  %v902_v19 = vrot.slane %v852_v14, %v13120_v11 }
 0x10d   : > { %2652 = vmatprep.subr.bf16.mxu0 %v10878_v20  ;;  %v10904_v43 = vld [vmem:[%s13003_s0 + $0x4e4] ss:$48 sps:$4 sm:$0xff]   ;;  %2689 = vmatprep.subr.bf16.mxu1 %v10902_v42  ;;  %v10912_v48 = vld [vmem:[%s13003_s0 + $0x780] ss:$48 sps:$4 sm:$0xff]   ;;  %v906_v20 = vrot.slane %v852_v14, %v13123_v12  ;;  %v10950_v42 = vld [vmem:[%s13003_s0 + $0x1e8] ss:$48 sps:$4 sm:$0xff]  }
 0x10e   : > { %2690 = vmatpush1.bf16.msra.mxu1 %v10906_v44  ;;  %v10908_v46 = vld [vmem:[%s13003_s0 + $0x784] ss:$48 sps:$4 sm:$0xff]   ;;  %v10913_v49 = vld [vmem:[%s13003_s0 + $0x480] ss:$48 sps:$4 sm:$0xff]   ;;  %v10958_v44 = vld [vmem:[%s13003_s0 + $0x18c] ss:$48 sps:$4 sm:$0xff]  }
 0x10f   : > { %v10910_v47 = vld [vmem:[%s13003_s0 + $0x484] ss:$48 sps:$4 sm:$0xff]   ;;  %2691 = vmatprep.subr.bf16.mxu1 %v10908_v46  ;;  %v10918_v52 = vld [vmem:[%s13003_s0 + $0x720] ss:$48 sps:$4 sm:$0xff]   ;;  %v10956_v46 = vld [vmem:[%s13003_s0 + $0x188] ss:$48 sps:$4 sm:$0xff]  }
 0x110   : > { %2653 = vmatpush1.bf16.msra.mxu0 %v10880_v21  ;;  %v10914_v50 = vld [vmem:[%s13003_s0 + $0x724] ss:$48 sps:$4 sm:$0xff]   ;;  %v10919_v53 = vld [vmem:[%s13003_s0 + $0x420] ss:$48 sps:$4 sm:$0xff]  }
 0x111   : > { %2654 = vmatprep.subr.bf16.mxu0 %v10881_v22  ;;  %v10916_v51 = vld [vmem:[%s13003_s0 + $0x424] ss:$48 sps:$4 sm:$0xff]   ;;  %v10924_v56 = vld [vmem:[%s13003_s0 + $0x6c0] ss:$48 sps:$4 sm:$0xff]  }
 0x112   : > { %2692 = vmatpush1.bf16.msra.mxu1 %v10912_v48  ;;  %v10920_v54 = vld [vmem:[%s13003_s0 + $0x6c4] ss:$48 sps:$4 sm:$0xff]   ;;  %v10925_v57 = vld [vmem:[%s13003_s0 + $0x3c0] ss:$48 sps:$4 sm:$0xff]   ;;  %v10964_v48 = vld [vmem:[%s13003_s0 + $0x12c] ss:$48 sps:$4 sm:$0xff]  }
 0x113   : > { %2693 = vmatprep.subr.bf16.mxu1 %v10914_v50  ;;  %v10922_v55 = vld [vmem:[%s13003_s0 + $0x3c4] ss:$48 sps:$4 sm:$0xff]   ;;  %v10930_v60 = vld [vmem:[%s13003_s0 + $0x660] ss:$48 sps:$4 sm:$0xff]   ;;  %v10962_v50 = vld [vmem:[%s13003_s0 + $0x128] ss:$48 sps:$4 sm:$0xff]  }
 0x114   : > { %2655 = vmatpush1.bf16.msra.mxu0 %v10883_v23  ;;  %v10926_v58 = vld [vmem:[%s13003_s0 + $0x664] ss:$48 sps:$4 sm:$0xff]   ;;  %v10931_v62 = vld [vmem:[%s13003_s0 + $0x360] ss:$48 sps:$4 sm:$0xff]  }
 0x115   : > { %2656 = vmatprep.subr.bf16.mxu0 %v10884_v24  ;;  %v10928_v59 = vld [vmem:[%s13003_s0 + $0x364] ss:$48 sps:$4 sm:$0xff]   ;;  %v10936_v1 = vld [vmem:[%s13003_s0 + $0x600] ss:$48 sps:$4 sm:$0xff]   ;;  %v898_v24 = vrot.slane %v852_v14, %v13126_v13  ;;  %v11000_v14 = vld [vmem:[%s13003_s0 + $0x4ec] ss:$48 sps:$4 sm:$0xff]  }
 0x116   : > { %2694 = vmatpush1.bf16.msra.mxu1 %v10918_v52  ;;  %v10932_v63 = vld [vmem:[%s13003_s0 + $0x604] ss:$48 sps:$4 sm:$0xff]   ;;  %v10937_v2 = vld [vmem:[%s13003_s0 + $0x300] ss:$48 sps:$4 sm:$0xff]   ;;  %v10970_v52 = vld [vmem:[%s13003_s0 + $0xcc] ss:$48 sps:$4 sm:$0xff]  }
 0x117   : > { %2695 = vmatprep.subr.bf16.mxu1 %v10920_v54  ;;  %v10934_v0 = vld [vmem:[%s13003_s0 + $0x304] ss:$48 sps:$4 sm:$0xff]   ;;  %v10968_v54 = vld [vmem:[%s13003_s0 + $0xc8] ss:$48 sps:$4 sm:$0xff]   ;;  %v10995_v10 = vld [vmem:[%s13003_s0 + $0x250] ss:$48 sps:$4 sm:$0xff]  }
 0x118   : > { %2657 = vmatpush1.bf16.msra.mxu0 %v10886_v25 }
 0x119   : > { %2658 = vmatprep.subr.bf16.mxu0 %v10887_v26 }
 0x11a   : > { %2696 = vmatpush1.bf16.msra.mxu1 %v10924_v56  ;;  %v10976_v56 = vld [vmem:[%s13003_s0 + $0x6c] ss:$48 sps:$4 sm:$0xff]  }
 0x11b   : > { %2697 = vmatprep.subr.bf16.mxu1 %v10926_v58  ;;  %v10974_v58 = vld [vmem:[%s13003_s0 + $0x68] ss:$48 sps:$4 sm:$0xff]  }
 0x11c   : > { %2659 = vmatpush1.bf16.msra.mxu0 %v10889_v27 }
 0x11d   : > { %2660 = vmatprep.subr.bf16.mxu0 %v10892_v28  ;;  %v10938_v28 = vld [vmem:[%s13003_s0 + $0x2a8] ss:$48 sps:$4 sm:$0xff]  }
 0x11e   : > { %2698 = vmatpush1.bf16.msra.mxu1 %v10930_v60  ;;  %v10982_v60 = vld [vmem:[%s13003_s0 + $0xc] ss:$48 sps:$4 sm:$0xff]  }
 0x11f   : > { %2699 = vmatprep.subr.bf16.mxu1 %v10932_v63  ;;  %v10980_v63 = vld [vmem:[%s13003_s0 + $0x8] ss:$48 sps:$4 sm:$0xff]  }
 0x120   : > { %2661 = vmatpush2.bf16.msra.mxu0 %v10895_v29 }
 0x121   : > { %2662 = vmatprep.subr.bf16.mxu0 %v10898_v30 }
 0x122   : > { %2700 = vmatpush1.bf16.msra.mxu1 %v10936_v1  ;;  %v10988_v1 = vld [vmem:[%s13003_s0 + $0x5ac] ss:$48 sps:$4 sm:$0xff]  }
 0x124   : > { %2663 = vmatpush2.bf16.msra.mxu0 %v10901_v31 }
 0x125   : > { %2664 = vmatprep.subr.bf16.mxu0 %v10904_v43  ;;  %v10953_v43 = vld [vmem:[%s13003_s0 + $0x7e8] ss:$48 sps:$4 sm:$0xff]  }
 0x128   : > { %2665 = vmatpush2.bf16.msra.mxu0 %v10907_v45  ;;  %v10961_v45 = vld [vmem:[%s13003_s0 + $0x78c] ss:$48 sps:$4 sm:$0xff]  }
 0x129   : > { %2666 = vmatprep.subr.bf16.mxu0 %v10910_v47  ;;  %v10959_v47 = vld [vmem:[%s13003_s0 + $0x788] ss:$48 sps:$4 sm:$0xff]  }
 0x12c   : > { %2667 = vmatpush2.bf16.msra.mxu0 %v10913_v49  ;;  %v10967_v49 = vld [vmem:[%s13003_s0 + $0x72c] ss:$48 sps:$4 sm:$0xff]  }
 0x12d   : > { %2668 = vmatprep.subr.bf16.mxu0 %v10916_v51  ;;  %v10965_v51 = vld [vmem:[%s13003_s0 + $0x728] ss:$48 sps:$4 sm:$0xff]  }
 0x130   : > { %2669 = vmatpush2.bf16.msra.mxu0 %v10919_v53  ;;  %v10973_v53 = vld [vmem:[%s13003_s0 + $0x6cc] ss:$48 sps:$4 sm:$0xff]  }
 0x131   : > { %2670 = vmatprep.subr.bf16.mxu0 %v10922_v55  ;;  %v10971_v55 = vld [vmem:[%s13003_s0 + $0x6c8] ss:$48 sps:$4 sm:$0xff]  }
 0x134   : > { %2671 = vmatpush2.bf16.msra.mxu0 %v10925_v57  ;;  %v10979_v57 = vld [vmem:[%s13003_s0 + $0x66c] ss:$48 sps:$4 sm:$0xff]  }
 0x135   : > { %2672 = vmatprep.subr.bf16.mxu0 %v10928_v59  ;;  %v10977_v59 = vld [vmem:[%s13003_s0 + $0x668] ss:$48 sps:$4 sm:$0xff]  }
 0x138   : > { %2673 = vmatpush2.bf16.msra.mxu0 %v10931_v62  ;;  %v10985_v62 = vld [vmem:[%s13003_s0 + $0x60c] ss:$48 sps:$4 sm:$0xff]  }
 0x139   : > { %2674 = vmatprep.subr.bf16.mxu0 %v10934_v0  ;;  %v10983_v0 = vld [vmem:[%s13003_s0 + $0x608] ss:$48 sps:$4 sm:$0xff]  }
 0x13c   : > { %2675 = vmatpush2.bf16.msra.mxu0 %v10937_v2  ;;  %v10991_v2 = vld [vmem:[%s13003_s0 + $0x2b4] ss:$48 sps:$4 sm:$0xff]  }
 0x191   : > { %v856_v32 = vpop.xlane.xlu0 %855 }
 0x192   : > { %v858_v33 = vmul.f32 0.0026041667, %v856_v32  ;;  %v10941_v32 = vld [vmem:[%s13003_s0 + $0x8a8] ss:$48 sps:$4 sm:$0xff]  }
 0x194   : > { %v13075_v34 = vsub.f32 %v848_v3, %v858_v33  ;;  %v13077_v35 = vsub.f32 %v849_v4, %v858_v33  ;;  %v13079_v36 = vsub.f32 %v850_v5, %v858_v33  ;;  %v10940_v3 = vld [vmem:[%s13003_s0 + $0x2ac] ss:$48 sps:$4 sm:$0xff]  }
 0x195   : > { %2726 = vmatprep.subr.bf16.mxu1 %v10940_v3  ;;  %v10943_v4 = vld [vmem:[%s13003_s0 + $0x8ac] ss:$48 sps:$4 sm:$0xff]   ;;  %v10986_v3 = vld [vmem:[%s13003_s0 + $0x5a8] ss:$48 sps:$4 sm:$0xff]  }
 0x196   : > { %v862_v37 = vmul.f32 %v13075_v34, %v13075_v34  ;;  %v863_v38 = vmul.f32 %v13077_v35, %v13077_v35  ;;  %v864_v39 = vmul.f32 %v13079_v36, %v13079_v36  ;;  %2767 = vmatprep.subr.bf16.mxu0 %v10943_v4  ;;  %v10989_v4 = vld [vmem:[%s13003_s0 + $0x2b0] ss:$48 sps:$4 sm:$0xff]  }
 0x198   : > { %v865_v40 = vadd.f32 %v863_v38, %v862_v37  ;;  %v10949_v37 = vld [vmem:[%s13003_s0 + $0x84c] ss:$48 sps:$4 sm:$0xff]   ;;  %v10944_v38 = vld [vmem:[%s13003_s0 + $0x248] ss:$48 sps:$4 sm:$0xff]  }
 0x19a   : > { %v866_v41 = vadd.f32 %v865_v40, %v864_v39  ;;  %v10947_v39 = vld [vmem:[%s13003_s0 + $0x848] ss:$48 sps:$4 sm:$0xff]   ;;  %v10952_v40 = vld [vmem:[%s13003_s0 + $0x1ec] ss:$48 sps:$4 sm:$0xff]  }
 0x19c   : > { %867 = vadd.xlane.f32.xlu0 %v866_v41  ;;  %v10955_v41 = vld [vmem:[%s13003_s0 + $0x7ec] ss:$48 sps:$4 sm:$0xff]  }
 0x225   : > { %v868_v5 = vpop.xlane.xlu0 %867 }
 0x226   : > { %v869_v6 = vmul.f32 0.0026041667, %v868_v5  ;;  %v10994_v5 = vld [vmem:[%s13003_s0 + $0x54c] ss:$48 sps:$4 sm:$0xff]  }
 0x228   : > { %v870_v7 = vadd.f32 1e-05, %v869_v6  ;;  %v10997_v6 = vld [vmem:[%s13003_s0 + $0x254] ss:$48 sps:$4 sm:$0xff]  }
 0x22a   : > { %12242 = vrsqrt.f32 %v870_v7  ;;  %v10992_v7 = vld [vmem:[%s13003_s0 + $0x548] ss:$48 sps:$4 sm:$0xff]  }
 0x237   : > { %v12243_v18 = vpop.eup %12242 }
 0x238   : > { %v873_v21 = vmul.f32 %v12243_v18, %v13077_v35  ;;  %v874_v22 = vmul.f32 %v12243_v18, %v13079_v36  ;;  %v872_v23 = vmul.f32 %v12243_v18, %v13075_v34  ;;  %v10946_v36 = vld [vmem:[%s13003_s0 + $0x24c] ss:$48 sps:$4 sm:$0xff]  }
 0x239   : > { %v11006_v18 = vld [vmem:[%s13003_s0 + $0x48c] ss:$48 sps:$4 sm:$0xff]  }
 0x23a   : > { %v892_v25 = vmul.f32 %v883_v15, %v873_v21  ;;  %v893_v26 = vmul.f32 %v887_v16, %v874_v22  ;;  %v891_v27 = vmul.f32 %v879_v17, %v872_v23  ;;  %v10998_v15 = vld [vmem:[%s13003_s0 + $0x4e8] ss:$48 sps:$4 sm:$0xff]   ;;  %v11003_v16 = vld [vmem:[%s13003_s0 + $0x1f4] ss:$48 sps:$4 sm:$0xff]   ;;  %v11001_v17 = vld [vmem:[%s13003_s0 + $0x1f0] ss:$48 sps:$4 sm:$0xff]  }
 0x23b   : > { %v11007_v21 = vld [vmem:[%s13003_s0 + $0x190] ss:$48 sps:$4 sm:$0xff]   ;;  %v11012_v22 = vld [vmem:[%s13003_s0 + $0x42c] ss:$48 sps:$4 sm:$0xff]   ;;  %v11010_v23 = vld [vmem:[%s13003_s0 + $0x428] ss:$48 sps:$4 sm:$0xff]  }
 0x23c   : > { %v911_v29 = vadd.f32 %v902_v19, %v892_v25  ;;  %v912_v30 = vadd.f32 %v906_v20, %v893_v26  ;;  %v910_v31 = vadd.f32 %v898_v24, %v891_v27  ;;  %v11004_v19 = vld [vmem:[%s13003_s0 + $0x488] ss:$48 sps:$4 sm:$0xff]   ;;  %v11009_v20 = vld [vmem:[%s13003_s0 + $0x194] ss:$48 sps:$4 sm:$0xff]   ;;  %v11013_v25 = vld [vmem:[%s13003_s0 + $0x130] ss:$48 sps:$4 sm:$0xff]  }
 0x23d   : > { %v11015_v24 = vld [vmem:[%s13003_s0 + $0x134] ss:$48 sps:$4 sm:$0xff]   ;;  %v11018_v26 = vld [vmem:[%s13003_s0 + $0x3cc] ss:$48 sps:$4 sm:$0xff]   ;;  %v11016_v27 = vld [vmem:[%s13003_s0 + $0x3c8] ss:$48 sps:$4 sm:$0xff]  }
 0x23e   : > { %v13141_v33 = vpack.c.bf16 %v911_v29, %v911_v29  ;;  %v13143_v35 = vpack.c.bf16 %v912_v30, %v912_v30  ;;  %v13145_v34 = vpack.c.bf16 %v910_v31, %v910_v31  ;;  %v11019_v29 = vld [vmem:[%s13003_s0 + $0xd0] ss:$48 sps:$4 sm:$0xff]   ;;  %v11024_v30 = vld [vmem:[%s13003_s0 + $0x36c] ss:$48 sps:$4 sm:$0xff]   ;;  %v11022_v31 = vld [vmem:[%s13003_s0 + $0x368] ss:$48 sps:$4 sm:$0xff]  }
 0x240   : > { %2676 = vmatprep.mubr.bf16.mxu0 %v13141_v33  ;;  %2718 = vmatmul.mubr.bf16.vlgmr.msra.gmra.mxu1 %v13143_v35 }
 0x241   : > { %2727 = vmatpush1.bf16.msra.mxu1 %v10938_v28  ;;  %2677 = vmatmul.mubr.bf16.vlgmr.msra.gmra.mxu0 %v13145_v34  ;;  %v11021_v28 = vld [vmem:[%s13003_s0 + $0xd4] ss:$48 sps:$4 sm:$0xff]  }
 0x242   : > { %2758 = vmatprep.mubr.bf16.mxu1 %v13141_v33  ;;  %2768 = vmatpush1.bf16.msra.mxu0 %v10941_v32  ;;  %v11027_v32 = vld [vmem:[%s13003_s0 + $0x74] ss:$48 sps:$4 sm:$0xff]  }
 0x243   : > { %2728 = vmatprep.subr.bf16.mxu1 %v10946_v36  ;;  %2769 = vmatprep.subr.bf16.mxu0 %v10949_v37  ;;  %v11025_v36 = vld [vmem:[%s13003_s0 + $0x70] ss:$48 sps:$4 sm:$0xff]   ;;  %v11030_v37 = vld [vmem:[%s13003_s0 + $0x30c] ss:$48 sps:$4 sm:$0xff]  }
 0x244   : > { %2799 = vmatprep.mubr.bf16.mxu0 %v12676_v61 }
 0x245   : > { %2729 = vmatpush1.bf16.msra.mxu1 %v10944_v38  ;;  %v11028_v38 = vld [vmem:[%s13003_s0 + $0x308] ss:$48 sps:$4 sm:$0xff]  }
 0x246   : > { %2770 = vmatpush1.bf16.msra.mxu0 %v10947_v39  ;;  %2730 = vmatprep.subr.bf16.mxu1 %v10952_v40  ;;  %v11033_v39 = vld [vmem:[%s13003_s0 + $0x14] ss:$48 sps:$4 sm:$0xff]   ;;  %v11031_v40 = vld [vmem:[%s13003_s0 + $0x10] ss:$48 sps:$4 sm:$0xff]  }
 0x247   : > { %2771 = vmatprep.subr.bf16.mxu0 %v10955_v41  ;;  %v11036_v41 = vld [vmem:[%s13003_s0 + $0x8b4] ss:$48 sps:$4 sm:$0xff]  }
 0x249   : > { %2731 = vmatpush1.bf16.msra.mxu1 %v10950_v42  ;;  %v11034_v42 = vld [vmem:[%s13003_s0 + $0x8b0] ss:$48 sps:$4 sm:$0xff]  }
 0x24a   : > { %2772 = vmatpush1.bf16.msra.mxu0 %v10953_v43  ;;  %2732 = vmatprep.subr.bf16.mxu1 %v10958_v44  ;;  %v11039_v43 = vld [vmem:[%s13003_s0 + $0x5b4] ss:$48 sps:$4 sm:$0xff]   ;;  %v11037_v44 = vld [vmem:[%s13003_s0 + $0x5b0] ss:$48 sps:$4 sm:$0xff]  }
 0x24b   : > { %2773 = vmatprep.subr.bf16.mxu0 %v10961_v45  ;;  %v11042_v45 = vld [vmem:[%s13003_s0 + $0x854] ss:$48 sps:$4 sm:$0xff]  }
 0x24d   : > { %2733 = vmatpush1.bf16.msra.mxu1 %v10956_v46  ;;  %v11045_v46 = vld [vmem:[%s13003_s0 + $0x554] ss:$48 sps:$4 sm:$0xff]  }
 0x24e   : > { %2774 = vmatpush1.bf16.msra.mxu0 %v10959_v47  ;;  %2734 = vmatprep.subr.bf16.mxu1 %v10964_v48  ;;  %v11040_v47 = vld [vmem:[%s13003_s0 + $0x850] ss:$48 sps:$4 sm:$0xff]  }
 0x24f   : > { %2775 = vmatprep.subr.bf16.mxu0 %v10967_v49  ;;  %v11043_v48 = vld [vmem:[%s13003_s0 + $0x550] ss:$48 sps:$4 sm:$0xff]   ;;  %v11048_v49 = vld [vmem:[%s13003_s0 + $0x7f4] ss:$48 sps:$4 sm:$0xff]  }
 0x251   : > { %2735 = vmatpush1.bf16.msra.mxu1 %v10962_v50  ;;  %v11051_v50 = vld [vmem:[%s13003_s0 + $0x4f4] ss:$48 sps:$4 sm:$0xff]  }
 0x252   : > { %2776 = vmatpush1.bf16.msra.mxu0 %v10965_v51  ;;  %2736 = vmatprep.subr.bf16.mxu1 %v10970_v52  ;;  %v11046_v51 = vld [vmem:[%s13003_s0 + $0x7f0] ss:$48 sps:$4 sm:$0xff]  }
 0x253   : > { %2777 = vmatprep.subr.bf16.mxu0 %v10973_v53  ;;  %v11049_v52 = vld [vmem:[%s13003_s0 + $0x4f0] ss:$48 sps:$4 sm:$0xff]   ;;  %v11054_v53 = vld [vmem:[%s13003_s0 + $0x794] ss:$48 sps:$4 sm:$0xff]  }
 0x255   : > { %2737 = vmatpush1.bf16.msra.mxu1 %v10968_v54  ;;  %v11057_v54 = vld [vmem:[%s13003_s0 + $0x494] ss:$48 sps:$4 sm:$0xff]  }
 0x256   : > { %2778 = vmatpush1.bf16.msra.mxu0 %v10971_v55  ;;  %2738 = vmatprep.subr.bf16.mxu1 %v10976_v56  ;;  %v11052_v55 = vld [vmem:[%s13003_s0 + $0x790] ss:$48 sps:$4 sm:$0xff]  }
 0x257   : > { %2779 = vmatprep.subr.bf16.mxu0 %v10979_v57  ;;  %v11055_v56 = vld [vmem:[%s13003_s0 + $0x490] ss:$48 sps:$4 sm:$0xff]   ;;  %v11060_v57 = vld [vmem:[%s13003_s0 + $0x734] ss:$48 sps:$4 sm:$0xff]  }
 0x259   : > { %2739 = vmatpush1.bf16.msra.mxu1 %v10974_v58  ;;  %v11063_v58 = vld [vmem:[%s13003_s0 + $0x434] ss:$48 sps:$4 sm:$0xff]  }
 0x25a   : > { %2780 = vmatpush1.bf16.msra.mxu0 %v10977_v59  ;;  %2740 = vmatprep.subr.bf16.mxu1 %v10982_v60  ;;  %v11058_v59 = vld [vmem:[%s13003_s0 + $0x730] ss:$48 sps:$4 sm:$0xff]  }
 0x25b   : > { %2781 = vmatprep.subr.bf16.mxu0 %v10985_v62  ;;  %v11061_v60 = vld [vmem:[%s13003_s0 + $0x430] ss:$48 sps:$4 sm:$0xff]   ;;  %v11066_v62 = vld [vmem:[%s13003_s0 + $0x6d4] ss:$48 sps:$4 sm:$0xff]  }
 0x25d   : > { %2741 = vmatpush1.bf16.msra.mxu1 %v10980_v63  ;;  %v11069_v63 = vld [vmem:[%s13003_s0 + $0x3d4] ss:$48 sps:$4 sm:$0xff]  }
 0x25e   : > { %2782 = vmatpush1.bf16.msra.mxu0 %v10983_v0  ;;  %2742 = vmatprep.subr.bf16.mxu1 %v10988_v1  ;;  %v11064_v0 = vld [vmem:[%s13003_s0 + $0x6d0] ss:$48 sps:$4 sm:$0xff]  }
 0x25f   : > { %2808 = vmatprep.subr.bf16.mxu0 %v10991_v2  ;;  %v11067_v1 = vld [vmem:[%s13003_s0 + $0x3d0] ss:$48 sps:$4 sm:$0xff]   ;;  %v11072_v2 = vld [vmem:[%s13003_s0 + $0x674] ss:$48 sps:$4 sm:$0xff]  }
 0x261   : > { %2743 = vmatpush2.bf16.msra.mxu1 %v10986_v3  ;;  %2800 = vmatmul.mubr.bf16.vlgmr.msra.gmra.mxu0 %v13143_v35  ;;  %v11075_v3 = vld [vmem:[%s13003_s0 + $0x374] ss:$48 sps:$4 sm:$0xff]  }
 0x262   : > { %2809 = vmatpush1.bf16.msra.mxu0 %v10989_v4  ;;  %2840 = vmatprep.mubr.bf16.mxu0 %v13141_v33  ;;  %v11070_v4 = vld [vmem:[%s13003_s0 + $0x670] ss:$48 sps:$4 sm:$0xff]  }
 0x263   : > { %2744 = vmatprep.subr.bf16.mxu1 %v10994_v5  ;;  %2810 = vmatprep.subr.bf16.mxu0 %v10997_v6  ;;  %v11073_v5 = vld [vmem:[%s13003_s0 + $0x370] ss:$48 sps:$4 sm:$0xff]   ;;  %v11078_v6 = vld [vmem:[%s13003_s0 + $0x614] ss:$48 sps:$4 sm:$0xff]  }
 0x265   : > { %2745 = vmatpush2.bf16.msra.mxu1 %v10992_v7  ;;  %v11081_v7 = vld [vmem:[%s13003_s0 + $0x314] ss:$48 sps:$4 sm:$0xff]  }
 0x266   : > { %2811 = vmatpush1.bf16.msra.mxu0 %v10995_v10  ;;  %2746 = vmatprep.subr.bf16.mxu1 %v11000_v14  ;;  %v11076_v10 = vld [vmem:[%s13003_s0 + $0x610] ss:$48 sps:$4 sm:$0xff]  }
 0x267   : > { %2812 = vmatprep.subr.bf16.mxu0 %v11003_v16  ;;  %v11079_v14 = vld [vmem:[%s13003_s0 + $0x310] ss:$48 sps:$4 sm:$0xff]   ;;  %v11087_v16 = vld [vmem:[%s13003_s0 + $0x8bc] ss:$48 sps:$4 sm:$0xff]  }
 0x269   : > { %2747 = vmatpush2.bf16.msra.mxu1 %v10998_v15  ;;  %v11084_v15 = vld [vmem:[%s13003_s0 + $0x2bc] ss:$48 sps:$4 sm:$0xff]  }
 0x26a   : > { %2813 = vmatpush1.bf16.msra.mxu0 %v11001_v17  ;;  %2748 = vmatprep.subr.bf16.mxu1 %v11006_v18  ;;  %v11082_v17 = vld [vmem:[%s13003_s0 + $0x2b8] ss:$48 sps:$4 sm:$0xff]  }
 0x26b   : > { %2814 = vmatprep.subr.bf16.mxu0 %v11009_v20  ;;  %v11085_v18 = vld [vmem:[%s13003_s0 + $0x8b8] ss:$48 sps:$4 sm:$0xff]   ;;  %v11093_v20 = vld [vmem:[%s13003_s0 + $0x85c] ss:$48 sps:$4 sm:$0xff]  }
 0x26d   : > { %2749 = vmatpush2.bf16.msra.mxu1 %v11004_v19  ;;  %v11090_v19 = vld [vmem:[%s13003_s0 + $0x25c] ss:$48 sps:$4 sm:$0xff]  }
 0x26e   : > { %2815 = vmatpush1.bf16.msra.mxu0 %v11007_v21  ;;  %2750 = vmatprep.subr.bf16.mxu1 %v11012_v22  ;;  %v11088_v21 = vld [vmem:[%s13003_s0 + $0x258] ss:$48 sps:$4 sm:$0xff]  }
 0x26f   : > { %2816 = vmatprep.subr.bf16.mxu0 %v11015_v24  ;;  %v11091_v22 = vld [vmem:[%s13003_s0 + $0x858] ss:$48 sps:$4 sm:$0xff]  }
 0x270   : > { %v11094_v24 = vld [vmem:[%s13003_s0 + $0x1f8] ss:$48 sps:$4 sm:$0xff]  }
 0x271   : > { %2751 = vmatpush2.bf16.msra.mxu1 %v11010_v23  ;;  %v11096_v23 = vld [vmem:[%s13003_s0 + $0x1fc] ss:$48 sps:$4 sm:$0xff]  }
 0x272   : > { %2817 = vmatpush1.bf16.msra.mxu0 %v11013_v25  ;;  %2752 = vmatprep.subr.bf16.mxu1 %v11018_v26  ;;  %v11099_v25 = vld [vmem:[%s13003_s0 + $0x7fc] ss:$48 sps:$4 sm:$0xff]   ;;  %v11097_v26 = vld [vmem:[%s13003_s0 + $0x7f8] ss:$48 sps:$4 sm:$0xff]  }
 0x273   : > { %2818 = vmatprep.subr.bf16.mxu0 %v11021_v28  ;;  %v11100_v28 = vld [vmem:[%s13003_s0 + $0x198] ss:$48 sps:$4 sm:$0xff]  }
 0x275   : > { %2753 = vmatpush2.bf16.msra.mxu1 %v11016_v27  ;;  %v11102_v27 = vld [vmem:[%s13003_s0 + $0x19c] ss:$48 sps:$4 sm:$0xff]  }
 0x276   : > { %2819 = vmatpush1.bf16.msra.mxu0 %v11019_v29  ;;  %2754 = vmatprep.subr.bf16.mxu1 %v11024_v30  ;;  %v11105_v29 = vld [vmem:[%s13003_s0 + $0x79c] ss:$48 sps:$4 sm:$0xff]   ;;  %v11103_v30 = vld [vmem:[%s13003_s0 + $0x798] ss:$48 sps:$4 sm:$0xff]  }
 0x277   : > { %2820 = vmatprep.subr.bf16.mxu0 %v11027_v32  ;;  %v11111_v32 = vld [vmem:[%s13003_s0 + $0x73c] ss:$48 sps:$4 sm:$0xff]  }
 0x279   : > { %2755 = vmatpush2.bf16.msra.mxu1 %v11022_v31  ;;  %v11108_v31 = vld [vmem:[%s13003_s0 + $0x13c] ss:$48 sps:$4 sm:$0xff]  }
 0x27a   : > { %2821 = vmatpush1.bf16.msra.mxu0 %v11025_v36  ;;  %2756 = vmatprep.subr.bf16.mxu1 %v11030_v37  ;;  %v11106_v36 = vld [vmem:[%s13003_s0 + $0x138] ss:$48 sps:$4 sm:$0xff]  }
 0x27b   : > { %2822 = vmatprep.subr.bf16.mxu0 %v11033_v39  ;;  %v11109_v37 = vld [vmem:[%s13003_s0 + $0x738] ss:$48 sps:$4 sm:$0xff]   ;;  %v11117_v39 = vld [vmem:[%s13003_s0 + $0x6dc] ss:$48 sps:$4 sm:$0xff]  }
 0x27d   : > { %2757 = vmatpush2.bf16.msra.mxu1 %v11028_v38  ;;  %v11114_v38 = vld [vmem:[%s13003_s0 + $0xdc] ss:$48 sps:$4 sm:$0xff]  }
 0x27e   : > { %2823 = vmatpush1.bf16.msra.mxu0 %v11031_v40  ;;  %2849 = vmatprep.subr.bf16.mxu1 %v11036_v41  ;;  %v11112_v40 = vld [vmem:[%s13003_s0 + $0xd8] ss:$48 sps:$4 sm:$0xff]  }
 0x27f   : > { %2824 = vmatprep.subr.bf16.mxu0 %v11039_v43  ;;  %v11115_v41 = vld [vmem:[%s13003_s0 + $0x6d8] ss:$48 sps:$4 sm:$0xff]   ;;  %v11123_v43 = vld [vmem:[%s13003_s0 + $0x67c] ss:$48 sps:$4 sm:$0xff]  }
 0x280   : > { %2759 = vmatmul.mubr.bf16.vlgmr.msra.gmra.mxu1 %v13145_v34 }
 0x281   : > { %2850 = vmatpush1.bf16.msra.mxu1 %v11034_v42  ;;  %2881 = vmatprep.mubr.bf16.mxu1 %v12676_v61  ;;  %v11120_v42 = vld [vmem:[%s13003_s0 + $0x7c] ss:$48 sps:$4 sm:$0xff]  }
 0x282   : > { %2825 = vmatpush2.bf16.msra.mxu0 %v11037_v44  ;;  %2851 = vmatprep.subr.bf16.mxu1 %v11042_v45  ;;  %v11118_v44 = vld [vmem:[%s13003_s0 + $0x78] ss:$48 sps:$4 sm:$0xff]  }
 0x283   : > { %2826 = vmatprep.subr.bf16.mxu0 %v11045_v46  ;;  %v11121_v45 = vld [vmem:[%s13003_s0 + $0x678] ss:$48 sps:$4 sm:$0xff]   ;;  %v11126_v46 = vld [vmem:[%s13003_s0 + $0x1c] ss:$48 sps:$4 sm:$0xff]  }
 0x285   : > { %2852 = vmatpush1.bf16.msra.mxu1 %v11040_v47  ;;  %v11129_v47 = vld [vmem:[%s13003_s0 + $0x61c] ss:$48 sps:$4 sm:$0xff]  }
 0x286   : > { %2827 = vmatpush2.bf16.msra.mxu0 %v11043_v48  ;;  %2853 = vmatprep.subr.bf16.mxu1 %v11048_v49  ;;  %v11124_v48 = vld [vmem:[%s13003_s0 + $0x18] ss:$48 sps:$4 sm:$0xff]  }
 0x287   : > { %2828 = vmatprep.subr.bf16.mxu0 %v11051_v50  ;;  %v11127_v49 = vld [vmem:[%s13003_s0 + $0x618] ss:$48 sps:$4 sm:$0xff]   ;;  %v11132_v50 = vld [vmem:[%s13003_s0 + $0x5bc] ss:$48 sps:$4 sm:$0xff]  }
 0x289   : > { %2854 = vmatpush1.bf16.msra.mxu1 %v11046_v51  ;;  %v11135_v51 = vld [vmem:[%s13003_s0 + $0x2c4] ss:$48 sps:$4 sm:$0xff]  }
 0x28a   : > { %2829 = vmatpush2.bf16.msra.mxu0 %v11049_v52  ;;  %2855 = vmatprep.subr.bf16.mxu1 %v11054_v53  ;;  %v11130_v52 = vld [vmem:[%s13003_s0 + $0x5b8] ss:$48 sps:$4 sm:$0xff]   ;;  %v11133_v53 = vld [vmem:[%s13003_s0 + $0x2c0] ss:$48 sps:$4 sm:$0xff]  }
 0x28b   : > { %2830 = vmatprep.subr.bf16.mxu0 %v11057_v54  ;;  %v11138_v54 = vld [vmem:[%s13003_s0 + $0x55c] ss:$48 sps:$4 sm:$0xff]  }
 0x28d   : > { %2856 = vmatpush1.bf16.msra.mxu1 %v11052_v55  ;;  %v11141_v55 = vld [vmem:[%s13003_s0 + $0x264] ss:$48 sps:$4 sm:$0xff]  }
 0x28e   : > { %2831 = vmatpush2.bf16.msra.mxu0 %v11055_v56  ;;  %2857 = vmatprep.subr.bf16.mxu1 %v11060_v57  ;;  %v11136_v56 = vld [vmem:[%s13003_s0 + $0x558] ss:$48 sps:$4 sm:$0xff]   ;;  %v11139_v57 = vld [vmem:[%s13003_s0 + $0x260] ss:$48 sps:$4 sm:$0xff]  }
 0x28f   : > { %2832 = vmatprep.subr.bf16.mxu0 %v11063_v58  ;;  %v11144_v58 = vld [vmem:[%s13003_s0 + $0x4fc] ss:$48 sps:$4 sm:$0xff]  }
 0x291   : > { %2858 = vmatpush1.bf16.msra.mxu1 %v11058_v59  ;;  %v11147_v59 = vld [vmem:[%s13003_s0 + $0x204] ss:$48 sps:$4 sm:$0xff]  }
 0x292   : > { %2833 = vmatpush2.bf16.msra.mxu0 %v11061_v60  ;;  %2859 = vmatprep.subr.bf16.mxu1 %v11066_v62  ;;  %v11142_v60 = vld [vmem:[%s13003_s0 + $0x4f8] ss:$48 sps:$4 sm:$0xff]   ;;  %v11145_v62 = vld [vmem:[%s13003_s0 + $0x200] ss:$48 sps:$4 sm:$0xff]  }
 0x293   : > { %2834 = vmatprep.subr.bf16.mxu0 %v11069_v63  ;;  %v11150_v63 = vld [vmem:[%s13003_s0 + $0x49c] ss:$48 sps:$4 sm:$0xff]  }
 0x295   : > { %2860 = vmatpush1.bf16.msra.mxu1 %v11064_v0  ;;  %v11153_v0 = vld [vmem:[%s13003_s0 + $0x1a4] ss:$48 sps:$4 sm:$0xff]  }
 0x296   : > { %2835 = vmatpush2.bf16.msra.mxu0 %v11067_v1  ;;  %2861 = vmatprep.subr.bf16.mxu1 %v11072_v2  ;;  %v11148_v1 = vld [vmem:[%s13003_s0 + $0x498] ss:$48 sps:$4 sm:$0xff]   ;;  %v11151_v2 = vld [vmem:[%s13003_s0 + $0x1a0] ss:$48 sps:$4 sm:$0xff]  }
 0x297   : > { %2836 = vmatprep.subr.bf16.mxu0 %v11075_v3  ;;  %v11156_v3 = vld [vmem:[%s13003_s0 + $0x43c] ss:$48 sps:$4 sm:$0xff]  }
 0x299   : > { %2862 = vmatpush1.bf16.msra.mxu1 %v11070_v4  ;;  %v11159_v4 = vld [vmem:[%s13003_s0 + $0x144] ss:$48 sps:$4 sm:$0xff]  }
 0x29a   : > { %2837 = vmatpush2.bf16.msra.mxu0 %v11073_v5  ;;  %2863 = vmatprep.subr.bf16.mxu1 %v11078_v6  ;;  %v11154_v5 = vld [vmem:[%s13003_s0 + $0x438] ss:$48 sps:$4 sm:$0xff]   ;;  %v11157_v6 = vld [vmem:[%s13003_s0 + $0x140] ss:$48 sps:$4 sm:$0xff]  }
 0x29b   : > { %2838 = vmatprep.subr.bf16.mxu0 %v11081_v7  ;;  %v11162_v7 = vld [vmem:[%s13003_s0 + $0x3dc] ss:$48 sps:$4 sm:$0xff]  }
 0x29d   : > { %2864 = vmatpush1.bf16.msra.mxu1 %v11076_v10  ;;  %v11165_v10 = vld [vmem:[%s13003_s0 + $0xe4] ss:$48 sps:$4 sm:$0xff]  }
 0x29e   : > { %2839 = vmatpush2.bf16.msra.mxu0 %v11079_v14  ;;  %2890 = vmatprep.subr.bf16.mxu1 %v11084_v15  ;;  %v11160_v14 = vld [vmem:[%s13003_s0 + $0x3d8] ss:$48 sps:$4 sm:$0xff]   ;;  %v11163_v15 = vld [vmem:[%s13003_s0 + $0xe0] ss:$48 sps:$4 sm:$0xff]  }
 0x29f   : > { %2931 = vmatprep.subr.bf16.mxu0 %v11087_v16  ;;  %v11168_v16 = vld [vmem:[%s13003_s0 + $0x37c] ss:$48 sps:$4 sm:$0xff]  }
 0x2a0   : > { %2882 = vmatmul.mubr.bf16.vlgmr.msra.gmra.mxu1 %v13143_v35 }
 0x2a1   : > { %2841 = vmatmul.mubr.bf16.vlgmr.msra.gmra.mxu0 %v13145_v34  ;;  %2891 = vmatpush1.bf16.msra.mxu1 %v11082_v17  ;;  %v11171_v17 = vld [vmem:[%s13003_s0 + $0x84] ss:$48 sps:$4 sm:$0xff]  }
 0x2a2   : > { %2922 = vmatprep.mubr.bf16.mxu1 %v13141_v33  ;;  %2932 = vmatpush1.bf16.msra.mxu0 %v11085_v18  ;;  %v11166_v18 = vld [vmem:[%s13003_s0 + $0x378] ss:$48 sps:$4 sm:$0xff]  }
 0x2a3   : > { %2892 = vmatprep.subr.bf16.mxu1 %v11090_v19  ;;  %2933 = vmatprep.subr.bf16.mxu0 %v11093_v20  ;;  %v11169_v19 = vld [vmem:[%s13003_s0 + $0x80] ss:$48 sps:$4 sm:$0xff]   ;;  %v11174_v20 = vld [vmem:[%s13003_s0 + $0x31c] ss:$48 sps:$4 sm:$0xff]  }
 0x2a4   : > { %2963 = vmatprep.mubr.bf16.mxu0 %v12676_v61 }
 0x2a5   : > { %2893 = vmatpush1.bf16.msra.mxu1 %v11088_v21  ;;  %v11177_v21 = vld [vmem:[%s13003_s0 + $0x24] ss:$48 sps:$4 sm:$0xff]  }
 0x2a6   : > { %2934 = vmatpush1.bf16.msra.mxu0 %v11091_v22  ;;  %2894 = vmatprep.subr.bf16.mxu1 %v11096_v23  ;;  %v11172_v22 = vld [vmem:[%s13003_s0 + $0x318] ss:$48 sps:$4 sm:$0xff]   ;;  %v11175_v23 = vld [vmem:[%s13003_s0 + $0x20] ss:$48 sps:$4 sm:$0xff]  }
 0x2a7   : > { %2935 = vmatprep.subr.bf16.mxu0 %v11099_v25  ;;  %v11183_v25 = vld [vmem:[%s13003_s0 + $0x5c4] ss:$48 sps:$4 sm:$0xff]  }
 0x2a9   : > { %2895 = vmatpush1.bf16.msra.mxu1 %v11094_v24  ;;  %v11180_v24 = vld [vmem:[%s13003_s0 + $0x8c4] ss:$48 sps:$4 sm:$0xff]  }
 0x2aa   : > { %2936 = vmatpush1.bf16.msra.mxu0 %v11097_v26  ;;  %2896 = vmatprep.subr.bf16.mxu1 %v11102_v27  ;;  %v11178_v26 = vld [vmem:[%s13003_s0 + $0x8c0] ss:$48 sps:$4 sm:$0xff]  }
 0x2ab   : > { %2937 = vmatprep.subr.bf16.mxu0 %v11105_v29  ;;  %v11181_v27 = vld [vmem:[%s13003_s0 + $0x5c0] ss:$48 sps:$4 sm:$0xff]   ;;  %v11189_v29 = vld [vmem:[%s13003_s0 + $0x564] ss:$48 sps:$4 sm:$0xff]  }
 0x2ad   : > { %2897 = vmatpush1.bf16.msra.mxu1 %v11100_v28  ;;  %v11186_v28 = vld [vmem:[%s13003_s0 + $0x864] ss:$48 sps:$4 sm:$0xff]  }
 0x2ae   : > { %2938 = vmatpush1.bf16.msra.mxu0 %v11103_v30  ;;  %2898 = vmatprep.subr.bf16.mxu1 %v11108_v31  ;;  %v11184_v30 = vld [vmem:[%s13003_s0 + $0x860] ss:$48 sps:$4 sm:$0xff]  }
 0x2af   : > { %2939 = vmatprep.subr.bf16.mxu0 %v11111_v32  ;;  %v11187_v31 = vld [vmem:[%s13003_s0 + $0x560] ss:$48 sps:$4 sm:$0xff]   ;;  %v11192_v32 = vld [vmem:[%s13003_s0 + $0x804] ss:$48 sps:$4 sm:$0xff]  }
 0x2b1   : > { %2899 = vmatpush1.bf16.msra.mxu1 %v11106_v36  ;;  %v11195_v36 = vld [vmem:[%s13003_s0 + $0x504] ss:$48 sps:$4 sm:$0xff]  }
 0x2b2   : > { %2940 = vmatpush1.bf16.msra.mxu0 %v11109_v37  ;;  %2900 = vmatprep.subr.bf16.mxu1 %v11114_v38  ;;  %v11190_v37 = vld [vmem:[%s13003_s0 + $0x800] ss:$48 sps:$4 sm:$0xff]  }
 0x2b3   : > { %2941 = vmatprep.subr.bf16.mxu0 %v11117_v39  ;;  %v11193_v38 = vld [vmem:[%s13003_s0 + $0x500] ss:$48 sps:$4 sm:$0xff]   ;;  %v11198_v39 = vld [vmem:[%s13003_s0 + $0x7a4] ss:$48 sps:$4 sm:$0xff]  }
 0x2b5   : > { %2901 = vmatpush1.bf16.msra.mxu1 %v11112_v40  ;;  %v11201_v40 = vld [vmem:[%s13003_s0 + $0x4a4] ss:$48 sps:$4 sm:$0xff]  }
 0x2b6   : > { %2942 = vmatpush1.bf16.msra.mxu0 %v11115_v41  ;;  %2902 = vmatprep.subr.bf16.mxu1 %v11120_v42  ;;  %v11196_v41 = vld [vmem:[%s13003_s0 + $0x7a0] ss:$48 sps:$4 sm:$0xff]  }
 0x2b7   : > { %2943 = vmatprep.subr.bf16.mxu0 %v11123_v43  ;;  %v11199_v42 = vld [vmem:[%s13003_s0 + $0x4a0] ss:$48 sps:$4 sm:$0xff]   ;;  %v11204_v43 = vld [vmem:[%s13003_s0 + $0x744] ss:$48 sps:$4 sm:$0xff]  }
 0x2b9   : > { %2903 = vmatpush1.bf16.msra.mxu1 %v11118_v44  ;;  %v11207_v44 = vld [vmem:[%s13003_s0 + $0x444] ss:$48 sps:$4 sm:$0xff]  }
 0x2ba   : > { %2944 = vmatpush1.bf16.msra.mxu0 %v11121_v45  ;;  %2904 = vmatprep.subr.bf16.mxu1 %v11126_v46  ;;  %v11202_v45 = vld [vmem:[%s13003_s0 + $0x740] ss:$48 sps:$4 sm:$0xff]  }
 0x2bb   : > { %2945 = vmatprep.subr.bf16.mxu0 %v11129_v47  ;;  %v11205_v46 = vld [vmem:[%s13003_s0 + $0x440] ss:$48 sps:$4 sm:$0xff]   ;;  %v11210_v47 = vld [vmem:[%s13003_s0 + $0x6e4] ss:$48 sps:$4 sm:$0xff]  }
 0x2bd   : > { %2905 = vmatpush1.bf16.msra.mxu1 %v11124_v48  ;;  %v11213_v48 = vld [vmem:[%s13003_s0 + $0x3e4] ss:$48 sps:$4 sm:$0xff]  }
 0x2be   : > { %2946 = vmatpush1.bf16.msra.mxu0 %v11127_v49  ;;  %2906 = vmatprep.subr.bf16.mxu1 %v11132_v50  ;;  %v11208_v49 = vld [vmem:[%s13003_s0 + $0x6e0] ss:$48 sps:$4 sm:$0xff]  }
 0x2bf   : > { %2972 = vmatprep.subr.bf16.mxu0 %v11135_v51  ;;  %v11211_v50 = vld [vmem:[%s13003_s0 + $0x3e0] ss:$48 sps:$4 sm:$0xff]   ;;  %v11216_v51 = vld [vmem:[%s13003_s0 + $0x684] ss:$48 sps:$4 sm:$0xff]  }
 0x2c1   : > { %2907 = vmatpush2.bf16.msra.mxu1 %v11130_v52  ;;  %2964 = vmatmul.mubr.bf16.vlgmr.msra.gmra.mxu0 %v13143_v35  ;;  %v11219_v52 = vld [vmem:[%s13003_s0 + $0x384] ss:$48 sps:$4 sm:$0xff]  }
 0x2c2   : > { %2973 = vmatpush1.bf16.msra.mxu0 %v11133_v53  ;;  %3004 = vmatprep.mubr.bf16.mxu0 %v13141_v33  ;;  %v11214_v53 = vld [vmem:[%s13003_s0 + $0x680] ss:$48 sps:$4 sm:$0xff]  }
 0x2c3   : > { %2908 = vmatprep.subr.bf16.mxu1 %v11138_v54  ;;  %2974 = vmatprep.subr.bf16.mxu0 %v11141_v55  ;;  %v11217_v54 = vld [vmem:[%s13003_s0 + $0x380] ss:$48 sps:$4 sm:$0xff]   ;;  %v11222_v55 = vld [vmem:[%s13003_s0 + $0x624] ss:$48 sps:$4 sm:$0xff]  }
 0x2c5   : > { %2909 = vmatpush2.bf16.msra.mxu1 %v11136_v56  ;;  %v11225_v56 = vld [vmem:[%s13003_s0 + $0x324] ss:$48 sps:$4 sm:$0xff]  }
 0x2c6   : > { %2975 = vmatpush1.bf16.msra.mxu0 %v11139_v57  ;;  %2910 = vmatprep.subr.bf16.mxu1 %v11144_v58  ;;  %v11220_v57 = vld [vmem:[%s13003_s0 + $0x620] ss:$48 sps:$4 sm:$0xff]  }
 0x2c7   : > { %2976 = vmatprep.subr.bf16.mxu0 %v11147_v59  ;;  %v11223_v58 = vld [vmem:[%s13003_s0 + $0x320] ss:$48 sps:$4 sm:$0xff]   ;;  %v11228_v59 = vld [vmem:[%s13003_s0 + $0x2cc] ss:$48 sps:$4 sm:$0xff]  }
 0x2c9   : > { %2911 = vmatpush2.bf16.msra.mxu1 %v11142_v60  ;;  %v11231_v60 = vld [vmem:[%s13003_s0 + $0x8cc] ss:$48 sps:$4 sm:$0xff]  }
 0x2ca   : > { %2977 = vmatpush1.bf16.msra.mxu0 %v11145_v62  ;;  %2912 = vmatprep.subr.bf16.mxu1 %v11150_v63  ;;  %v11226_v62 = vld [vmem:[%s13003_s0 + $0x2c8] ss:$48 sps:$4 sm:$0xff]  }
 0x2cb   : > { %2978 = vmatprep.subr.bf16.mxu0 %v11153_v0  ;;  %v11229_v63 = vld [vmem:[%s13003_s0 + $0x8c8] ss:$48 sps:$4 sm:$0xff]   ;;  %v11234_v0 = vld [vmem:[%s13003_s0 + $0x26c] ss:$48 sps:$4 sm:$0xff]  }
 0x2cd   : > { %2913 = vmatpush2.bf16.msra.mxu1 %v11148_v1  ;;  %v11237_v1 = vld [vmem:[%s13003_s0 + $0x86c] ss:$48 sps:$4 sm:$0xff]  }
 0x2ce   : > { %2979 = vmatpush1.bf16.msra.mxu0 %v11151_v2  ;;  %2914 = vmatprep.subr.bf16.mxu1 %v11156_v3 }
 0x2cf   : > { %2980 = vmatprep.subr.bf16.mxu0 %v11159_v4  ;;  %v11232_v4 = vld [vmem:[%s13003_s0 + $0x268] ss:$48 sps:$4 sm:$0xff]  }
 0x2d1   : > { %2915 = vmatpush2.bf16.msra.mxu1 %v11154_v5 }
 0x2d2   : > { %2981 = vmatpush1.bf16.msra.mxu0 %v11157_v6  ;;  %2916 = vmatprep.subr.bf16.mxu1 %v11162_v7  ;;  %v11235_v7 = vld [vmem:[%s13003_s0 + $0x868] ss:$48 sps:$4 sm:$0xff]  }
 0x2d3   : > { %2982 = vmatprep.subr.bf16.mxu0 %v11165_v10  ;;  %v11240_v10 = vld [vmem:[%s13003_s0 + $0x20c] ss:$48 sps:$4 sm:$0xff]  }
 0x2d5   : > { %2917 = vmatpush2.bf16.msra.mxu1 %v11160_v14 }
 0x2d6   : > { %2983 = vmatpush1.bf16.msra.mxu0 %v11163_v15  ;;  %2918 = vmatprep.subr.bf16.mxu1 %v11168_v16  ;;  %v11243_v15 = vld [vmem:[%s13003_s0 + $0x80c] ss:$48 sps:$4 sm:$0xff]  }
 0x2d7   : > { %2984 = vmatprep.subr.bf16.mxu0 %v11171_v17 }
 0x2d9   : > { %2919 = vmatpush2.bf16.msra.mxu1 %v11166_v18  ;;  %v11238_v18 = vld [vmem:[%s13003_s0 + $0x208] ss:$48 sps:$4 sm:$0xff]  }
 0x2da   : > { %2985 = vmatpush1.bf16.msra.mxu0 %v11169_v19  ;;  %2920 = vmatprep.subr.bf16.mxu1 %v11174_v20  ;;  %v11241_v20 = vld [vmem:[%s13003_s0 + $0x808] ss:$48 sps:$4 sm:$0xff]  }
 0x2db   : > { %2986 = vmatprep.subr.bf16.mxu0 %v11177_v21  ;;  %v11246_v21 = vld [vmem:[%s13003_s0 + $0x1ac] ss:$48 sps:$4 sm:$0xff]  }
 0x2dd   : > { %2921 = vmatpush2.bf16.msra.mxu1 %v11172_v22 }
 0x2de   : > { %2987 = vmatpush1.bf16.msra.mxu0 %v11175_v23  ;;  %3013 = vmatprep.subr.bf16.mxu1 %v11180_v24  ;;  %v11249_v23 = vld [vmem:[%s13003_s0 + $0x7ac] ss:$48 sps:$4 sm:$0xff]   ;;  %v11244_v24 = vld [vmem:[%s13003_s0 + $0x1a8] ss:$48 sps:$4 sm:$0xff]  }
 0x2df   : > { %2988 = vmatprep.subr.bf16.mxu0 %v11183_v25  ;;  %v11247_v25 = vld [vmem:[%s13003_s0 + $0x7a8] ss:$48 sps:$4 sm:$0xff]  }
 0x2e0   : > { %2923 = vmatmul.mubr.bf16.vlgmr.msra.gmra.mxu1 %v13145_v34 }
 0x2e1   : > { %3014 = vmatpush1.bf16.msra.mxu1 %v11178_v26  ;;  %3045 = vmatprep.mubr.bf16.mxu1 %v12676_v61  ;;  %v11252_v26 = vld [vmem:[%s13003_s0 + $0x14c] ss:$48 sps:$4 sm:$0xff]  }
 0x2e2   : > { %2989 = vmatpush2.bf16.msra.mxu0 %v11181_v27  ;;  %3015 = vmatprep.subr.bf16.mxu1 %v11186_v28  ;;  %v11255_v27 = vld [vmem:[%s13003_s0 + $0x74c] ss:$48 sps:$4 sm:$0xff]   ;;  %v11250_v28 = vld [vmem:[%s13003_s0 + $0x148] ss:$48 sps:$4 sm:$0xff]  }
 0x2e3   : > { %2990 = vmatprep.subr.bf16.mxu0 %v11189_v29  ;;  %v11253_v29 = vld [vmem:[%s13003_s0 + $0x748] ss:$48 sps:$4 sm:$0xff]  }
 0x2e5   : > { %3016 = vmatpush1.bf16.msra.mxu1 %v11184_v30  ;;  %v11258_v30 = vld [vmem:[%s13003_s0 + $0xec] ss:$48 sps:$4 sm:$0xff]  }
 0x2e6   : > { %2991 = vmatpush2.bf16.msra.mxu0 %v11187_v31  ;;  %3017 = vmatprep.subr.bf16.mxu1 %v11192_v32  ;;  %v11261_v31 = vld [vmem:[%s13003_s0 + $0x6ec] ss:$48 sps:$4 sm:$0xff]   ;;  %v11256_v32 = vld [vmem:[%s13003_s0 + $0xe8] ss:$48 sps:$4 sm:$0xff]  }
 0x2e7   : > { %2992 = vmatprep.subr.bf16.mxu0 %v11195_v36  ;;  %v11259_v36 = vld [vmem:[%s13003_s0 + $0x6e8] ss:$48 sps:$4 sm:$0xff]  }
 0x2e9   : > { %3018 = vmatpush1.bf16.msra.mxu1 %v11190_v37  ;;  %v11264_v37 = vld [vmem:[%s13003_s0 + $0x8c] ss:$48 sps:$4 sm:$0xff]  }
 0x2ea   : > { %2993 = vmatpush2.bf16.msra.mxu0 %v11193_v38  ;;  %3019 = vmatprep.subr.bf16.mxu1 %v11198_v39  ;;  %v11267_v38 = vld [vmem:[%s13003_s0 + $0x68c] ss:$48 sps:$4 sm:$0xff]   ;;  %v11262_v39 = vld [vmem:[%s13003_s0 + $0x88] ss:$48 sps:$4 sm:$0xff]  }
 0x2eb   : > { %2994 = vmatprep.subr.bf16.mxu0 %v11201_v40  ;;  %v11265_v40 = vld [vmem:[%s13003_s0 + $0x688] ss:$48 sps:$4 sm:$0xff]  }
 0x2ed   : > { %3020 = vmatpush1.bf16.msra.mxu1 %v11196_v41  ;;  %v11270_v41 = vld [vmem:[%s13003_s0 + $0x2c] ss:$48 sps:$4 sm:$0xff]  }
 0x2ee   : > { %2995 = vmatpush2.bf16.msra.mxu0 %v11199_v42  ;;  %3021 = vmatprep.subr.bf16.mxu1 %v11204_v43  ;;  %v11273_v42 = vld [vmem:[%s13003_s0 + $0x62c] ss:$48 sps:$4 sm:$0xff]   ;;  %v11268_v43 = vld [vmem:[%s13003_s0 + $0x28] ss:$48 sps:$4 sm:$0xff]  }
 0x2ef   : > { %2996 = vmatprep.subr.bf16.mxu0 %v11207_v44  ;;  %v11271_v44 = vld [vmem:[%s13003_s0 + $0x628] ss:$48 sps:$4 sm:$0xff]  }
 0x2f1   : > { %3022 = vmatpush1.bf16.msra.mxu1 %v11202_v45  ;;  %v11276_v45 = vld [vmem:[%s13003_s0 + $0x5cc] ss:$48 sps:$4 sm:$0xff]  }
 0x2f2   : > { %2997 = vmatpush2.bf16.msra.mxu0 %v11205_v46  ;;  %3023 = vmatprep.subr.bf16.mxu1 %v11210_v47  ;;  %v11274_v46 = vld [vmem:[%s13003_s0 + $0x5c8] ss:$48 sps:$4 sm:$0xff]   ;;  %v11279_v47 = vld [vmem:[%s13003_s0 + $0x56c] ss:$48 sps:$4 sm:$0xff]  }
 0x2f3   : > { %2998 = vmatprep.subr.bf16.mxu0 %v11213_v48  ;;  %v12677_v48 = vmov 0.0  }
 0x2f5   : > { %3024 = vmatpush1.bf16.msra.mxu1 %v11208_v49 }
 0x2f6   : > { %2999 = vmatpush2.bf16.msra.mxu0 %v11211_v50  ;;  %3025 = vmatprep.subr.bf16.mxu1 %v11216_v51  ;;  %v11277_v50 = vld [vmem:[%s13003_s0 + $0x568] ss:$48 sps:$4 sm:$0xff]   ;;  %v11282_v51 = vld [vmem:[%s13003_s0 + $0x50c] ss:$48 sps:$4 sm:$0xff]  }
 0x2f7   : > { %3000 = vmatprep.subr.bf16.mxu0 %v11219_v52 }
 0x2f9   : > { %3026 = vmatpush1.bf16.msra.mxu1 %v11214_v53 }
 0x2fa   : > { %3001 = vmatpush2.bf16.msra.mxu0 %v11217_v54  ;;  %3027 = vmatprep.subr.bf16.mxu1 %v11222_v55  ;;  %v11280_v54 = vld [vmem:[%s13003_s0 + $0x508] ss:$48 sps:$4 sm:$0xff]   ;;  %v11285_v55 = vld [vmem:[%s13003_s0 + $0x4ac] ss:$48 sps:$4 sm:$0xff]  }
 0x2fb   : > { %3002 = vmatprep.subr.bf16.mxu0 %v11225_v56  ;;  %v11283_v56 = vld [vmem:[%s13003_s0 + $0x4a8] ss:$48 sps:$4 sm:$0xff]  }
 0x2fd   : > { %3028 = vmatpush1.bf16.msra.mxu1 %v11220_v57  ;;  %v11288_v57 = vld [vmem:[%s13003_s0 + $0x44c] ss:$48 sps:$4 sm:$0xff]  }
 0x2fe   : > { %3003 = vmatpush2.bf16.msra.mxu0 %v11223_v58  ;;  %3054 = vmatprep.subr.bf16.mxu1 %v11228_v59  ;;  %v11286_v58 = vld [vmem:[%s13003_s0 + $0x448] ss:$48 sps:$4 sm:$0xff]   ;;  %v11291_v59 = vld [vmem:[%s13003_s0 + $0x3ec] ss:$48 sps:$4 sm:$0xff]  }
 0x2ff   : > { %3095 = vmatprep.subr.bf16.mxu0 %v11231_v60  ;;  %v11289_v60 = vld [vmem:[%s13003_s0 + $0x3e8] ss:$48 sps:$4 sm:$0xff]  }
 0x300   : > { %3046 = vmatmul.mubr.bf16.vlgmr.msra.gmra.mxu1 %v13143_v35  ;;  %v2719_v2 = vpop.f32.mrf.mxu1 }
 0x301   : > { %3005 = vmatmul.mubr.bf16.vlgmr.msra.gmra.mxu0 %v13145_v34  ;;  %3055 = vmatpush1.bf16.msra.mxu1 %v11226_v62  ;;  %v2678_v3 = vpop.f32.mrf.mxu0  ;;  %v11294_v62 = vld [vmem:[%s13003_s0 + $0x38c] ss:$48 sps:$4 sm:$0xff]  }
 0x302   : > { %3086 = vmatprep.mubr.bf16.mxu1 %v13141_v33  ;;  %v13362_v5 = vadd.f32 %v2719_v2, %v2678_v3  ;;  %3096 = vmatpush1.bf16.msra.mxu0 %v11229_v63  ;;  %v2721_v6 = vpop.f32.mrf.mxu1  ;;  %v11292_v63 = vld [vmem:[%s13003_s0 + $0x388] ss:$48 sps:$4 sm:$0xff]  }
 0x303   : > { %v2680_v14 = vpop.f32.mrf.mxu0  ;;  %3056 = vmatprep.subr.bf16.mxu1 %v11234_v0  ;;  %3097 = vmatprep.subr.bf16.mxu0 %v11237_v1  ;;  %v11297_v0 = vld [vmem:[%s13003_s0 + $0x32c] ss:$48 sps:$4 sm:$0xff]   ;;  %v11295_v1 = vld [vmem:[%s13003_s0 + $0x328] ss:$48 sps:$4 sm:$0xff]  }
 0x304   : > { %v13367_v16 = vadd.f32 %v2721_v6, %v2680_v14  ;;  %v2723_v17 = vpop.f32.mrf.mxu1  ;;  %3127 = vmatprep.mubr.bf16.mxu0 %v12676_v61 }
 0x305   : > { %3057 = vmatpush1.bf16.msra.mxu1 %v11232_v4  ;;  %v2682_v33 = vpop.f32.mrf.mxu0 }
 0x306   : > { %3098 = vmatpush1.bf16.msra.mxu0 %v11235_v7  ;;  %v2724_v19 = vpop.f32.mrf.mxu1  ;;  %3058 = vmatprep.subr.bf16.mxu1 %v11240_v10 }
 0x307   : > { %v2683_v22 = vpop.f32.mrf.mxu0  ;;  %3099 = vmatprep.subr.bf16.mxu0 %v11243_v15 }
 0x309   : > { %3059 = vmatpush1.bf16.msra.mxu1 %v11238_v18 }
 0x30a   : > { %3100 = vmatpush1.bf16.msra.mxu0 %v11241_v20  ;;  %3060 = vmatprep.subr.bf16.mxu1 %v11246_v21 }
 0x30b   : > { %3101 = vmatprep.subr.bf16.mxu0 %v11249_v23 }
 0x30d   : > { %3061 = vmatpush1.bf16.msra.mxu1 %v11244_v24  ;;  %v3141_v24 = vpack.c.bf16 %v13362_v5, %v13362_v5 }
 0x30e   : > { %3102 = vmatpush1.bf16.msra.mxu0 %v11247_v25  ;;  %3062 = vmatprep.subr.bf16.mxu1 %v11252_v26  ;;  %v3246_v26 = vpack.c.bf16 %v13367_v16, %v13367_v16 }
 0x30f   : > { %3103 = vmatprep.subr.bf16.mxu0 %v11255_v27 }
 0x311   : > { %3063 = vmatpush1.bf16.msra.mxu1 %v11250_v28 }
 0x312   : > { %3104 = vmatpush1.bf16.msra.mxu0 %v11253_v29  ;;  %3064 = vmatprep.subr.bf16.mxu1 %v11258_v30 }
 0x313   : > { %3105 = vmatprep.subr.bf16.mxu0 %v11261_v31 }
 0x315   : > { %3065 = vmatpush1.bf16.msra.mxu1 %v11256_v32 }
 0x316   : > { %3106 = vmatpush1.bf16.msra.mxu0 %v11259_v36  ;;  %3066 = vmatprep.subr.bf16.mxu1 %v11264_v37 }
 0x317   : > { %3107 = vmatprep.subr.bf16.mxu0 %v11267_v38 }
 0x319   : > { %3067 = vmatpush1.bf16.msra.mxu1 %v11262_v39 }
 0x31a   : > { %3108 = vmatpush1.bf16.msra.mxu0 %v11265_v40  ;;  %3068 = vmatprep.subr.bf16.mxu1 %v11270_v41 }
 0x31b   : > { %3109 = vmatprep.subr.bf16.mxu0 %v11273_v42 }
 0x31d   : > { %3069 = vmatpush1.bf16.msra.mxu1 %v11268_v43 }
 0x31e   : > { %3110 = vmatpush1.bf16.msra.mxu0 %v11271_v44  ;;  %3070 = vmatprep.subr.bf16.mxu1 %v11276_v45 }
 0x31f   : > { %10663 = vmatprep.subr.bf16.mxu0 %v12677_v48 }
 0x321   : > { %v2801_v49 = vpop.f32.mrf.mxu0  ;;  %3071 = vmatpush2.bf16.msra.mxu1 %v11274_v46  ;;  %3128 = vmatmul.mubr.bf16.vlgmr.msra.gmra.mxu0 %v13143_v35 }
 0x322   : > { %3072 = vmatprep.subr.bf16.mxu1 %v11279_v47  ;;  %10665 = vmatprep.mubr.msk.bf16.mxu0 %vm12678_vm0, %v12677_v48 }
 0x323   : > { %v2803_v52 = vpop.f32.mrf.mxu0 }
 0x325   : > { %v2805_v53 = vpop.f32.mrf.mxu0  ;;  %3073 = vmatpush2.bf16.msra.mxu1 %v11277_v50 }
 0x326   : > { %3074 = vmatprep.subr.bf16.mxu1 %v11282_v51 }
 0x327   : > { %v2806_v35 = vpop.f32.mrf.mxu0 }
 0x329   : > { %3075 = vmatpush2.bf16.msra.mxu1 %v11280_v54 }
 0x32a   : > { %3076 = vmatprep.subr.bf16.mxu1 %v11285_v55 }
 0x32d   : > { %3077 = vmatpush2.bf16.msra.mxu1 %v11283_v56 }
 0x32e   : > { %3078 = vmatprep.subr.bf16.mxu1 %v11288_v57 }
 0x331   : > { %3079 = vmatpush2.bf16.msra.mxu1 %v11286_v58 }
 0x332   : > { %3080 = vmatprep.subr.bf16.mxu1 %v11291_v59 }
 0x335   : > { %3081 = vmatpush2.bf16.msra.mxu1 %v11289_v60 }
 0x336   : > { %3082 = vmatprep.subr.bf16.mxu1 %v11294_v62 }
 0x339   : > { %3083 = vmatpush2.bf16.msra.mxu1 %v11292_v63 }
 0x33a   : > { %3084 = vmatprep.subr.bf16.mxu1 %v11297_v0 }
 0x33d   : > { %3085 = vmatpush2.bf16.msra.mxu1 %v11295_v1  ;;  %v3139_v1 = vand.u32 127, %v876_v8 }
 0x33e   : > { %10669 = vmatprep.subr.bf16.mxu1 %v12677_v48 }
 0x33f   : > { %vm3140_vm2 = vcmp.le.s32.totalorder %v3139_v1, %v13115_v9  ;;  %v11315_v1 = vld [vmem:[%s13005_s2 + $0x34] ss:$12 sps:$4 sm:$0xff]  }
 0x340   : > { %v2760_v2 = vpop.f32.mrf.mxu1  ;;  %3087 = vmatmul.mubr.bf16.vlgmr.msra.gmra.mxu1 %v13145_v34 }
 0x341   : > { %v2802_v3 = vadd.f32 %v2801_v49, %v2760_v2  ;;  %10671 = vmatprep.mubr.msk.bf16.mxu1 %vm12678_vm0, %v12677_v48 }
 0x342   : > { %v2762_v4 = vpop.f32.mrf.mxu1 }
 0x343   : > { %v2804_v6 = vadd.f32 %v2803_v52, %v2762_v4  ;;  %v3349_v40 = vpack.c.bf16 %v2802_v3, %v2802_v3 }
 0x344   : > { %v2764_v7 = vpop.f32.mrf.mxu1 }
 0x345   : > { %v3452_v41 = vpack.c.bf16 %v2804_v6, %v2804_v6 }
 0x346   : > { %v2765_v10 = vpop.f32.mrf.mxu1 }
 0x360   : > { %v2883_v14 = vpop.f32.mrf.mxu1 }
 0x361   : > { %v2842_v15 = vpop.f32.mrf.mxu0 }
 0x362   : > { %v2884_v17 = vadd.f32 %v2883_v14, %v2842_v15  ;;  %v2885_v33 = vpop.f32.mrf.mxu1 }
 0x363   : > { %v2844_v18 = vpop.f32.mrf.mxu0 }
 0x364   : > { %v3142_v19 = vpack.c.bf16 %v2884_v17, %v2884_v17  ;;  %v2887_v20 = vpop.f32.mrf.mxu1  ;;  %v2886_v34 = vadd.f32 %v2885_v33, %v2844_v18 }
 0x365   : > { %v2846_v21 = vpop.f32.mrf.mxu0 }
 0x366   : > { %v2888_v22 = vpop.f32.mrf.mxu1  ;;  %10664 = vmatpush3.bf16.xpose.msra.mxu0 %v3142_v19  ;;  %v3247_v25 = vpack.c.bf16 %v2886_v34, %v2886_v34 }
 0x367   : > { %v2847_v23 = vpop.f32.mrf.mxu0  ;;  %10675 = vmatprep.subr.bf16.mxu0 %v12677_v48 }
 0x36d   : > { %10666 = vmatmul.mubr.bf16.vlgmr.msra.gmra.mxu0 %v3141_v24 }
 0x36e   : > { %10676 = vmatpush3.bf16.xpose.msra.mxu0 %v3247_v25  ;;  %10677 = vmatprep.mubr.msk.bf16.mxu0 %vm12678_vm0, %v12677_v48 }
 0x36f   : > { %10687 = vmatprep.subr.bf16.mxu0 %v12677_v48 }
 0x375   : > { %10678 = vmatmul.mubr.bf16.vlgmr.msra.gmra.mxu0 %v3246_v26 }
 0x376   : > { %10689 = vmatprep.mubr.msk.bf16.mxu0 %vm12678_vm0, %v12677_v48 }
 0x381   : > { %v2965_v27 = vpop.f32.mrf.mxu0 }
 0x383   : > { %v2967_v28 = vpop.f32.mrf.mxu0 }
 0x385   : > { %v2969_v29 = vpop.f32.mrf.mxu0 }
 0x387   : > { %v2970_v30 = vpop.f32.mrf.mxu0 }
 0x3a0   : > { %v2924_v5 = vpop.f32.mrf.mxu1 }
 0x3a1   : > { %v2966_v31 = vadd.f32 %v2965_v27, %v2924_v5 }
 0x3a2   : > { %v2926_v32 = vpop.f32.mrf.mxu1 }
 0x3a3   : > { %v3350_v36 = vpack.c.bf16 %v2966_v31, %v2966_v31  ;;  %v2968_v39 = vadd.f32 %v2967_v28, %v2926_v32 }
 0x3a4   : > { %v2928_v37 = vpop.f32.mrf.mxu1 }
 0x3a5   : > { %10688 = vmatpush3.bf16.xpose.msra.mxu0 %v3350_v36  ;;  %v3453_v16 = vpack.c.bf16 %v2968_v39, %v2968_v39 }
 0x3a6   : > { %v2929_v38 = vpop.f32.mrf.mxu1  ;;  %10699 = vmatprep.subr.bf16.mxu0 %v12677_v48 }
 0x3ac   : > { %10690 = vmatmul.mubr.bf16.vlgmr.msra.gmra.mxu0 %v3349_v40 }
 0x3ad   : > { %10700 = vmatpush3.bf16.xpose.msra.mxu0 %v3453_v16  ;;  %10701 = vmatprep.mubr.msk.bf16.mxu0 %vm12678_vm0, %v12677_v48 }
 0x3b4   : > { %10702 = vmatmul.mubr.bf16.vlgmr.msra.gmra.mxu0 %v3452_v41 }
 0x3c0   : > { %v3047_v42 = vpop.f32.mrf.mxu1 }
 0x3c1   : > { %v3006_v43 = vpop.f32.mrf.mxu0 }
 0x3c2   : > { %v3048_v44 = vadd.f32 %v3047_v42, %v3006_v43  ;;  %v3049_v45 = vpop.f32.mrf.mxu1 }
 0x3c3   : > { %v3008_v46 = vpop.f32.mrf.mxu0 }
 0x3c4   : > { %v3143_v47 = vpack.c.bf16 %v3048_v44, %v3048_v44  ;;  %v13429_v49 = vadd.f32 %v3049_v45, %v3008_v46  ;;  %v3051_v50 = vpop.f32.mrf.mxu1 }
 0x3c5   : > { %v3010_v51 = vpop.f32.mrf.mxu0 }
 0x3c6   : > { %v3203_v52 = vsel %vm3201_vm1, %v3143_v47, 0  ;;  %v3052_v53 = vpop.f32.mrf.mxu1 }
 0x3c7   : > { %v3011_v54 = vpop.f32.mrf.mxu0  ;;  %10670 = vmatpush3.bf16.msra.mxu1 %v3203_v52  ;;  %v11298_v53 = vld [vmem:[%s13005_s2 + $0xa8] ss:$12 sps:$4 sm:$0xff]  }
 0x3c8   : > { %10681 = vmatprep.subr.bf16.mxu1 %v12677_v48  ;;  %v11300_v54 = vld [vmem:[%s13005_s2 + $0xac] ss:$12 sps:$4 sm:$0xff]  }
 0x3c9   : > { %4195 = vmatprep.subr.bf16.mxu0 %v11300_v54  ;;  %v11358_v54 = vld [vmem:[%s13005_s2 + $0x1fc] ss:$12 sps:$4 sm:$0xff]  }
 0x3ca   : > { %4196 = vmatpush1.bf16.msra.mxu0 %v11298_v53  ;;  %v11356_v53 = vld [vmem:[%s13005_s2 + $0x1f8] ss:$12 sps:$4 sm:$0xff]  }
 0x3e1   : > { %v3129_v55 = vpop.f32.mrf.mxu0 }
 0x3e3   : > { %v3131_v35 = vpop.f32.mrf.mxu0 }
 0x3e5   : > { %v3133_v56 = vpop.f32.mrf.mxu0 }
 0x3e6   : > { %v11306_v56 = vld [vmem:[%s13005_s2 + $0x7c] ss:$12 sps:$4 sm:$0xff]  }
 0x3e7   : > { %v3134_v57 = vpop.f32.mrf.mxu0 }
 0x3e8   : > { %v11304_v57 = vld [vmem:[%s13005_s2 + $0x78] ss:$12 sps:$4 sm:$0xff]  }
 0x400   : > { %v3088_v58 = vpop.f32.mrf.mxu1 }
 0x401   : > { %v13433_v59 = vadd.f32 %v3129_v55, %v3088_v58  ;;  %v11303_v55 = vld [vmem:[%s13005_s2 + $0x94] ss:$12 sps:$4 sm:$0xff]   ;;  %v11309_v58 = vld [vmem:[%s13005_s2 + $0x64] ss:$12 sps:$4 sm:$0xff]  }
 0x402   : > { %v3090_v60 = vpop.f32.mrf.mxu1  ;;  %4197 = vmatprep.subr.bf16.mxu0 %v11303_v55  ;;  %v11361_v55 = vld [vmem:[%s13005_s2 + $0x1e0] ss:$12 sps:$4 sm:$0xff]  }
 0x403   : > { %v13435_v62 = vadd.f32 %v3131_v35, %v3090_v60  ;;  %v11301_v35 = vld [vmem:[%s13005_s2 + $0x90] ss:$12 sps:$4 sm:$0xff]   ;;  %v11307_v60 = vld [vmem:[%s13005_s2 + $0x60] ss:$12 sps:$4 sm:$0xff]  }
 0x404   : > { %v3092_v63 = vpop.f32.mrf.mxu1  ;;  %4198 = vmatpush1.bf16.msra.mxu0 %v11301_v35  ;;  %v11363_v35 = vld [vmem:[%s13005_s2 + $0x1e4] ss:$12 sps:$4 sm:$0xff]  }
 0x405   : > { %4199 = vmatprep.subr.bf16.mxu0 %v11306_v56  ;;  %v11312_v63 = vld [vmem:[%s13005_s2 + $0x4c] ss:$12 sps:$4 sm:$0xff]   ;;  %v11366_v56 = vld [vmem:[%s13005_s2 + $0x1c8] ss:$12 sps:$4 sm:$0xff]  }
 0x406   : > { %v3093_v0 = vpop.f32.mrf.mxu1 }
 0x407   : > { %v11310_v0 = vld [vmem:[%s13005_s2 + $0x48] ss:$12 sps:$4 sm:$0xff]  }
 0x408   : > { %4200 = vmatpush1.bf16.msra.mxu0 %v11304_v57  ;;  %v11368_v57 = vld [vmem:[%s13005_s2 + $0x1cc] ss:$12 sps:$4 sm:$0xff]  }
 0x409   : > { %4201 = vmatprep.subr.bf16.mxu0 %v11309_v58  ;;  %v11371_v58 = vld [vmem:[%s13005_s2 + $0x1b0] ss:$12 sps:$4 sm:$0xff]  }
 0x40c   : > { %4202 = vmatpush1.bf16.msra.mxu0 %v11307_v60  ;;  %v11373_v60 = vld [vmem:[%s13005_s2 + $0x1b4] ss:$12 sps:$4 sm:$0xff]  }
 0x40d   : > { %4203 = vmatprep.subr.bf16.mxu0 %v11312_v63  ;;  %v11376_v63 = vld [vmem:[%s13005_s2 + $0x198] ss:$12 sps:$4 sm:$0xff]  }
 0x410   : > { %4204 = vmatpush1.bf16.msra.mxu0 %v11310_v0  ;;  %v11378_v0 = vld [vmem:[%s13005_s2 + $0x19c] ss:$12 sps:$4 sm:$0xff]  }
 0x411   : > { %4205 = vmatprep.subr.bf16.mxu0 %v11315_v1  ;;  %v11381_v1 = vld [vmem:[%s13005_s2 + $0x180] ss:$12 sps:$4 sm:$0xff]  }
 0x42d   : > { %v3178_v2 = vpop.f32.mrf.mxu0 }
 0x42e   : > { %v3184_v3 = vsel %vm3140_vm2, %v3178_v2, -1e+30  ;;  %v11313_v2 = vld [vmem:[%s13005_s2 + $0x30] ss:$12 sps:$4 sm:$0xff]  }
 0x42f   : > { %v10667_v4 = vpop.f32.mrf.mxu0  ;;  %v3186_v6 = vsel %vm3185_vm3, %v3184_v3, -inf  ;;  %4206 = vmatpush1.bf16.msra.mxu0 %v11313_v2  ;;  %v11383_v2 = vld [vmem:[%s13005_s2 + $0x184] ss:$12 sps:$4 sm:$0xff]  }
 0x430   : > { %3187 = vmax.xlane.f32.xlu1 %v3186_v6  ;;  %v11316_v4 = vld [vmem:[%s13005_s2 + $0x18] ss:$12 sps:$4 sm:$0xff]  }
 0x431   : > { %v3181_v7 = vpop.f32.mrf.mxu0  ;;  %v11321_v6 = vld [vmem:[%s13005_s2 + $0x4] ss:$12 sps:$4 sm:$0xff]  }
 0x432   : > { %v11319_v7 = vld [vmem:[%s13005_s2] ss:$12 sps:$4 sm:$0xff]  }
 0x433   : > { %v10668_v10 = vpop.f32.mrf.mxu0 }
 0x434   : > { %v11324_v10 = vld [vmem:[%s13005_s2 + $0x16c] ss:$12 sps:$4 sm:$0xff]  }
 0x435   : > { %v3283_v14 = vpop.f32.mrf.mxu0 }
 0x436   : > { %v3289_v15 = vsel %vm3140_vm2, %v3283_v14, -1e+30  ;;  %v11322_v14 = vld [vmem:[%s13005_s2 + $0x168] ss:$12 sps:$4 sm:$0xff]  }
 0x437   : > { %v10679_v17 = vpop.f32.mrf.mxu0  ;;  %v3290_v8 = vsel %vm3185_vm3, %v3289_v15, -inf }
 0x438   : > { %3291 = vmax.xlane.f32.xlu1 %v3290_v8  ;;  %v11325_v17 = vld [vmem:[%s13005_s2 + $0x150] ss:$12 sps:$4 sm:$0xff]  }
 0x439   : > { %v3286_v33 = vpop.f32.mrf.mxu0  ;;  %v11330_v8 = vld [vmem:[%s13005_s2 + $0x13c] ss:$12 sps:$4 sm:$0xff]  }
 0x43b   : > { %v10680_v18 = vpop.f32.mrf.mxu0 }
 0x43c   : > { %v11328_v18 = vld [vmem:[%s13005_s2 + $0x138] ss:$12 sps:$4 sm:$0xff]  }
 0x46c   : > { %v3386_v19 = vpop.f32.mrf.mxu0 }
 0x46d   : > { %v3392_v20 = vsel %vm3140_vm2, %v3386_v19, -1e+30  ;;  %v11333_v19 = vld [vmem:[%s13005_s2 + $0x124] ss:$12 sps:$4 sm:$0xff]  }
 0x46e   : > { %v10691_v21 = vpop.f32.mrf.mxu0  ;;  %v3393_v22 = vsel %vm3185_vm3, %v3392_v20, -inf }
 0x46f   : > { %3394 = vmax.xlane.f32.xlu0 %v3393_v22  ;;  %v11336_v21 = vld [vmem:[%s13005_s2 + $0x10c] ss:$12 sps:$4 sm:$0xff]  }
 0x470   : > { %v3389_v23 = vpop.f32.mrf.mxu0 }
 0x471   : > { %v11334_v23 = vld [vmem:[%s13005_s2 + $0x108] ss:$12 sps:$4 sm:$0xff]  }
 0x472   : > { %v10692_v34 = vpop.f32.mrf.mxu0 }
 0x473   : > { %v11339_v34 = vld [vmem:[%s13005_s2 + $0xf4] ss:$12 sps:$4 sm:$0xff]  }
 0x474   : > { %v3489_v24 = vpop.f32.mrf.mxu0 }
 0x475   : > { %v3495_v25 = vsel %vm3140_vm2, %v3489_v24, -1e+30  ;;  %v11337_v24 = vld [vmem:[%s13005_s2 + $0xf0] ss:$12 sps:$4 sm:$0xff]  }
 0x476   : > { %v10703_v26 = vpop.f32.mrf.mxu0  ;;  %v3496_v27 = vsel %vm3185_vm3, %v3495_v25, -inf }
 0x477   : > { %3497 = vmax.xlane.f32.xlu1 %v3496_v27  ;;  %v3248_v26 = vpack.c.bf16 %v13429_v49, %v13429_v49 }
 0x478   : > { %v3492_v28 = vpop.f32.mrf.mxu0 }
 0x47a   : > { %v10704_v29 = vpop.f32.mrf.mxu0 }
 0x47b   : > { %v3306_v29 = vsel %vm3201_vm1, %v3248_v26, 0 }
 0x4b9   : > { %v3188_v30 = vpop.xlane.xlu1 %3187 }
 0x4ba   : > { %v3189_v5 = vsub.f32 %v3184_v3, %v3188_v30  ;;  %v11318_v3 = vld [vmem:[%s13005_s2 + $0x1c] ss:$12 sps:$4 sm:$0xff]  }
 0x4bb   : > { %4207 = vmatprep.subr.bf16.mxu0 %v11318_v3  ;;  %v11386_v3 = vld [vmem:[%s13005_s2 + $0x2e8] ss:$12 sps:$4 sm:$0xff]  }
 0x4bc   : > { %v3190_v31 = vmul.f32 1.442695, %v3189_v5  ;;  %4208 = vmatpush1.bf16.msra.mxu0 %v11316_v4  ;;  %v3351_v5 = vpack.c.bf16 %v13433_v59, %v13433_v59  ;;  %v11388_v4 = vld [vmem:[%s13005_s2 + $0x2ec] ss:$12 sps:$4 sm:$0xff]  }
 0x4bd   : > { %4209 = vmatprep.subr.bf16.mxu0 %v11321_v6  ;;  %v11389_v6 = vld [vmem:[%s13005_s2 + $0x2d0] ss:$12 sps:$4 sm:$0xff]  }
 0x4be   : > { %12244 = vpow2.f32 %v3190_v31 }
 0x4c0   : > { %4210 = vmatpush1.bf16.msra.mxu0 %v11319_v7  ;;  %v11391_v7 = vld [vmem:[%s13005_s2 + $0x2d4] ss:$12 sps:$4 sm:$0xff]  }
 0x4c1   : > { %v3292_v32 = vpop.xlane.xlu1 %3291  ;;  %4211 = vmatprep.subr.bf16.mxu0 %v11324_v10  ;;  %v11394_v10 = vld [vmem:[%s13005_s2 + $0x2bc] ss:$12 sps:$4 sm:$0xff]  }
 0x4c2   : > { %v3293_v36 = vsub.f32 %v3289_v15, %v3292_v32  ;;  %v11327_v15 = vld [vmem:[%s13005_s2 + $0x154] ss:$12 sps:$4 sm:$0xff]   ;;  %v3409_v32 = vsel %vm3201_vm1, %v3351_v5, 0 }
 0x4c4   : > { %v3294_v37 = vmul.f32 1.442695, %v3293_v36  ;;  %4212 = vmatpush2.bf16.msra.mxu0 %v11322_v14  ;;  %v11392_v14 = vld [vmem:[%s13005_s2 + $0x2b8] ss:$12 sps:$4 sm:$0xff]  }
 0x4c5   : > { %4213 = vmatprep.subr.bf16.mxu0 %v11327_v15  ;;  %v11397_v15 = vld [vmem:[%s13005_s2 + $0x2a4] ss:$12 sps:$4 sm:$0xff]  }
 0x4c6   : > { %12246 = vpow2.f32 %v3294_v37 }
 0x4c8   : > { %4214 = vmatpush2.bf16.msra.mxu0 %v11325_v17  ;;  %v11395_v17 = vld [vmem:[%s13005_s2 + $0x2a0] ss:$12 sps:$4 sm:$0xff]  }
 0x4c9   : > { %4215 = vmatprep.subr.bf16.mxu0 %v11330_v8  ;;  %v11400_v8 = vld [vmem:[%s13005_s2 + $0x28c] ss:$12 sps:$4 sm:$0xff]  }
 0x4cb   : > { %v13451_v38 = vpop.eup %12244 }
 0x4cc   : > { %v3192_v39 = vsel %vm3185_vm3, %v13451_v38, 0.0  ;;  %4216 = vmatpush2.bf16.msra.mxu0 %v11328_v18  ;;  %v11403_v18 = vld [vmem:[%s13005_s2 + $0x274] ss:$12 sps:$4 sm:$0xff]  }
 0x4cd   : > { %3193 = vadd.xlane.f32.xlu0 %v3192_v39  ;;  %4217 = vmatprep.subr.bf16.mxu0 %v11333_v19  ;;  %v11401_v19 = vld [vmem:[%s13005_s2 + $0x270] ss:$12 sps:$4 sm:$0xff]  }
 0x4d3   : > { %v13455_v40 = vpop.eup %12246 }
 0x4d4   : > { %v3296_v16 = vsel %vm3185_vm3, %v13455_v40, 0.0 }
 0x4d5   : > { %3297 = vadd.xlane.f32.xlu1 %v3296_v16 }
 0x4f8   : > { %v3395_v41 = vpop.xlane.xlu0 %3394 }
 0x4f9   : > { %v3396_v42 = vsub.f32 %v3392_v20, %v3395_v41  ;;  %v11331_v20 = vld [vmem:[%s13005_s2 + $0x120] ss:$12 sps:$4 sm:$0xff]  }
 0x4fa   : > { %4218 = vmatpush2.bf16.msra.mxu0 %v11331_v20  ;;  %v11404_v20 = vld [vmem:[%s13005_s2 + $0x258] ss:$12 sps:$4 sm:$0xff]  }
 0x4fb   : > { %v3397_v43 = vmul.f32 1.442695, %v3396_v42  ;;  %4219 = vmatprep.subr.bf16.mxu0 %v11336_v21  ;;  %v11340_v42 = vld [vmem:[%s13005_s2 + $0xd8] ss:$12 sps:$4 sm:$0xff]   ;;  %v11406_v21 = vld [vmem:[%s13005_s2 + $0x25c] ss:$12 sps:$4 sm:$0xff]  }
 0x4fd   : > { %12248 = vpow2.f32 %v3397_v43  ;;  %v11342_v43 = vld [vmem:[%s13005_s2 + $0xdc] ss:$12 sps:$4 sm:$0xff]  }
 0x4fe   : > { %4220 = vmatpush2.bf16.msra.mxu0 %v11334_v23  ;;  %v11409_v23 = vld [vmem:[%s13005_s2 + $0x244] ss:$12 sps:$4 sm:$0xff]  }
 0x4ff   : > { %4221 = vmatprep.subr.bf16.mxu0 %v11339_v34  ;;  %v11410_v34 = vld [vmem:[%s13005_s2 + $0x2f0] ss:$12 sps:$4 sm:$0xff]  }
 0x500   : > { %v3498_v44 = vpop.xlane.xlu1 %3497 }
 0x501   : > { %v3499_v45 = vsub.f32 %v3495_v25, %v3498_v44 }
 0x502   : > { %4222 = vmatpush2.bf16.msra.mxu0 %v11337_v24 }
 0x503   : > { %v3500_v46 = vmul.f32 1.442695, %v3499_v45  ;;  %4223 = vmatprep.subr.bf16.mxu0 %v11342_v43  ;;  %v11343_v45 = vld [vmem:[%s13005_s2 + $0xc0] ss:$12 sps:$4 sm:$0xff]   ;;  %v11375_v43 = vld [vmem:[%s13005_s2 + $0x38] ss:$12 sps:$4 sm:$0xff]  }
 0x505   : > { %12250 = vpow2.f32 %v3500_v46  ;;  %v11345_v46 = vld [vmem:[%s13005_s2 + $0xc4] ss:$12 sps:$4 sm:$0xff]  }
 0x506   : > { %4224 = vmatpush2.bf16.msra.mxu0 %v11340_v42  ;;  %v11374_v42 = vld [vmem:[%s13005_s2 + $0xf8] ss:$12 sps:$4 sm:$0xff]  }
 0x507   : > { %4225 = vmatprep.subr.bf16.mxu0 %v11345_v46  ;;  %v11385_v46 = vld [vmem:[%s13005_s2 + $0x8] ss:$12 sps:$4 sm:$0xff]  }
 0x50a   : > { %v13459_v47 = vpop.eup %12248  ;;  %4226 = vmatpush2.bf16.msra.mxu0 %v11343_v45  ;;  %v11384_v45 = vld [vmem:[%s13005_s2 + $0xc8] ss:$12 sps:$4 sm:$0xff]  }
 0x50b   : > { %v3399_v50 = vsel %vm3185_vm3, %v13459_v47, 0.0 }
 0x50c   : > { %3400 = vadd.xlane.f32.xlu0 %v3399_v50  ;;  %v11349_v50 = vld [vmem:[%s13005_s2 + $0x170] ss:$12 sps:$4 sm:$0xff]  }
 0x50d   : > { %10487 = vmatprep.subr.bf16.mxu0 %v11349_v50 }
 0x512   : > { %v13463_v51 = vpop.eup %12250 }
 0x513   : > { %v3502_v52 = vsel %vm3185_vm3, %v13463_v51, 0.0 }
 0x514   : > { %3503 = vadd.xlane.f32.xlu1 %v3502_v52  ;;  %v11351_v52 = vld [vmem:[%s13005_s2 + $0x210] ss:$12 sps:$4 sm:$0xff]  }
 0x556   : > { %v3194_v33 = vpop.xlane.xlu0 %3193 }
 0x557   : > { %12252 = vrcp.f32 %v3194_v33  ;;  %v11398_v33 = vld [vmem:[%s13005_s2 + $0x288] ss:$12 sps:$4 sm:$0xff]  }
 0x55e   : > { %v3298_v22 = vpop.xlane.xlu1 %3297 }
 0x55f   : > { %12254 = vrcp.f32 %v3298_v22  ;;  %v11407_v22 = vld [vmem:[%s13005_s2 + $0x240] ss:$12 sps:$4 sm:$0xff]  }
 0x564   : > { %v12253_v25 = vpop.eup %12252 }
 0x565   : > { %v3196_v27 = vmul.f32 %v12253_v25, %v13451_v38  ;;  %v3454_v38 = vpack.c.bf16 %v13435_v62, %v13435_v62 }
 0x567   : > { %v3197_v28 = vpack.c.bf16 %v3196_v27, %v3196_v27  ;;  %v3512_v16 = vsel %vm3201_vm1, %v3454_v38, 0  ;;  %v11360_v38 = vld [vmem:[%s13005_s2 + $0x80] ss:$12 sps:$4 sm:$0xff]  }
 0x569   : > { %10672 = vmatmul.mubr.msk.bf16.vlgmr.msra.gmra.mxu1 %vm3185_vm3, %v3197_v28 }
 0x56a   : > { %10682 = vmatpush3.bf16.msra.mxu1 %v3306_v29  ;;  %10683 = vmatprep.mubr.msk.bf16.mxu1 %vm12678_vm0, %v12677_v48 }
 0x56b   : > { %10693 = vmatprep.subr.bf16.mxu1 %v12677_v48 }
 0x56c   : > { %v12255_v30 = vpop.eup %12254 }
 0x56d   : > { %v3300_v49 = vmul.f32 %v12255_v30, %v13455_v40  ;;  %v11350_v30 = vld [vmem:[%s13005_s2 + $0xb0] ss:$12 sps:$4 sm:$0xff]  }
 0x56f   : > { %v3301_v31 = vpack.c.bf16 %v3300_v49, %v3300_v49 }
 0x571   : > { %10684 = vmatmul.mubr.msk.bf16.vlgmr.msra.gmra.mxu1 %vm3185_vm3, %v3301_v31  ;;  %v11354_v31 = vld [vmem:[%s13005_s2 + $0x158] ss:$12 sps:$4 sm:$0xff]  }
 0x572   : > { %10694 = vmatpush3.bf16.msra.mxu1 %v3409_v32  ;;  %10695 = vmatprep.mubr.msk.bf16.mxu1 %vm12678_vm0, %v12677_v48 }
 0x573   : > { %10705 = vmatprep.subr.bf16.mxu1 %v12677_v48 }
 0x595   : > { %v3401_v36 = vpop.xlane.xlu0 %3400 }
 0x596   : > { %12256 = vrcp.f32 %v3401_v36  ;;  %v11355_v36 = vld [vmem:[%s13005_s2 + $0x98] ss:$12 sps:$4 sm:$0xff]  }
 0x59d   : > { %v3504_v37 = vpop.xlane.xlu1 %3503 }
 0x59e   : > { %12258 = vrcp.f32 %v3504_v37 }
 0x5a3   : > { %v12257_v59 = vpop.eup %12256 }
 0x5a4   : > { %v3403_v39 = vmul.f32 %v12257_v59, %v13459_v47  ;;  %v11346_v47 = vld [vmem:[%s13005_s2 + $0x228] ss:$12 sps:$4 sm:$0xff]   ;;  %v11359_v59 = vld [vmem:[%s13005_s2 + $0x140] ss:$12 sps:$4 sm:$0xff]  }
 0x5a6   : > { %v3404_v40 = vpack.c.bf16 %v3403_v39, %v3403_v39  ;;  %v11364_v39 = vld [vmem:[%s13005_s2 + $0x128] ss:$12 sps:$4 sm:$0xff]  }
 0x5a8   : > { %10696 = vmatmul.mubr.msk.bf16.vlgmr.msra.gmra.mxu1 %vm3185_vm3, %v3404_v40  ;;  %v11365_v40 = vld [vmem:[%s13005_s2 + $0x68] ss:$12 sps:$4 sm:$0xff]  }
 0x5a9   : > { %10706 = vmatpush3.bf16.msra.mxu1 %v3512_v16  ;;  %10707 = vmatprep.mubr.msk.bf16.mxu1 %vm12678_vm0, %v12677_v48  ;;  %v11348_v48 = vld [vmem:[%s13005_s2 + $0x22c] ss:$12 sps:$4 sm:$0xff]   ;;  %v11369_v16 = vld [vmem:[%s13005_s2 + $0x110] ss:$12 sps:$4 sm:$0xff]  }
 0x5aa   : > { %4236 = vmatprep.subr.bf16.mxu1 %v11348_v48 }
 0x5ab   : > { %v12259_v41 = vpop.eup %12258 }
 0x5ac   : > { %v3506_v62 = vmul.f32 %v12259_v41, %v13463_v51  ;;  %v11353_v51 = vld [vmem:[%s13005_s2 + $0x214] ss:$12 sps:$4 sm:$0xff]   ;;  %v11370_v41 = vld [vmem:[%s13005_s2 + $0x50] ss:$12 sps:$4 sm:$0xff]  }
 0x5ae   : > { %v3507_v44 = vpack.c.bf16 %v3506_v62, %v3506_v62  ;;  %v11379_v62 = vld [vmem:[%s13005_s2 + $0xe0] ss:$12 sps:$4 sm:$0xff]  }
 0x5b0   : > { %10708 = vmatmul.mubr.msk.bf16.vlgmr.msra.gmra.mxu1 %vm3185_vm3, %v3507_v44  ;;  %v11380_v44 = vld [vmem:[%s13005_s2 + $0x20] ss:$12 sps:$4 sm:$0xff]  }
 0x5b1   : > { %4237 = vmatpush1.bf16.msra.mxu1 %v11346_v47 }
 0x5b2   : > { %4238 = vmatprep.subr.bf16.mxu1 %v11353_v51 }
 0x5b5   : > { %4239 = vmatpush1.bf16.msra.mxu1 %v11351_v52 }
 0x5b6   : > { %4240 = vmatprep.subr.bf16.mxu1 %v11358_v54  ;;  %v11411_v54 = vld [vmem:[%s13005_s2 + $0x230] ss:$12 sps:$4 sm:$0xff]  }
 0x5b9   : > { %4241 = vmatpush1.bf16.msra.mxu1 %v11356_v53 }
 0x5ba   : > { %4242 = vmatprep.subr.bf16.mxu1 %v11363_v35 }
 0x5bd   : > { %4243 = vmatpush1.bf16.msra.mxu1 %v11361_v55 }
 0x5be   : > { %4244 = vmatprep.subr.bf16.mxu1 %v11368_v57 }
 0x5c1   : > { %4245 = vmatpush1.bf16.msra.mxu1 %v11366_v56  ;;  %v11412_v56 = vld [vmem:[%s13005_s2 + $0x2d8] ss:$12 sps:$4 sm:$0xff]  }
 0x5c2   : > { %4246 = vmatprep.subr.bf16.mxu1 %v11373_v60 }
 0x5c5   : > { %4247 = vmatpush1.bf16.msra.mxu1 %v11371_v58  ;;  %v11413_v58 = vld [vmem:[%s13005_s2 + $0x218] ss:$12 sps:$4 sm:$0xff]  }
 0x5c6   : > { %4248 = vmatprep.subr.bf16.mxu1 %v11378_v0  ;;  %v11415_v0 = vld [vmem:[%s13005_s2 + $0x200] ss:$12 sps:$4 sm:$0xff]  }
 0x5c9   : > { %4249 = vmatpush1.bf16.msra.mxu1 %v11376_v63  ;;  %v11414_v63 = vld [vmem:[%s13005_s2 + $0x2c0] ss:$12 sps:$4 sm:$0xff]  }
 0x5ca   : > { %4250 = vmatprep.subr.bf16.mxu1 %v11383_v2  ;;  %v11417_v2 = vld [vmem:[%s13005_s2 + $0x1e8] ss:$12 sps:$4 sm:$0xff]  }
 0x5cd   : > { %4251 = vmatpush1.bf16.msra.mxu1 %v11381_v1  ;;  %v11416_v1 = vld [vmem:[%s13005_s2 + $0x2a8] ss:$12 sps:$4 sm:$0xff]  }
 0x5ce   : > { %4252 = vmatprep.subr.bf16.mxu1 %v11388_v4  ;;  %v11419_v4 = vld [vmem:[%s13005_s2 + $0x1d0] ss:$12 sps:$4 sm:$0xff]  }
 0x5d1   : > { %4253 = vmatpush2.bf16.msra.mxu1 %v11386_v3  ;;  %v11418_v3 = vld [vmem:[%s13005_s2 + $0x290] ss:$12 sps:$4 sm:$0xff]  }
 0x5d2   : > { %4254 = vmatprep.subr.bf16.mxu1 %v11391_v7  ;;  %v11421_v7 = vld [vmem:[%s13005_s2 + $0x1b8] ss:$12 sps:$4 sm:$0xff]  }
 0x5d5   : > { %4255 = vmatpush2.bf16.msra.mxu1 %v11389_v6  ;;  %v11420_v6 = vld [vmem:[%s13005_s2 + $0x278] ss:$12 sps:$4 sm:$0xff]  }
 0x5d6   : > { %4256 = vmatprep.subr.bf16.mxu1 %v11394_v10  ;;  %v11422_v10 = vld [vmem:[%s13005_s2 + $0x260] ss:$12 sps:$4 sm:$0xff]  }
 0x5d9   : > { %4257 = vmatpush2.bf16.msra.mxu1 %v11392_v14  ;;  %v11423_v14 = vld [vmem:[%s13005_s2 + $0x1a0] ss:$12 sps:$4 sm:$0xff]  }
 0x5da   : > { %4258 = vmatprep.subr.bf16.mxu1 %v11397_v15  ;;  %v11424_v15 = vld [vmem:[%s13005_s2 + $0x248] ss:$12 sps:$4 sm:$0xff]  }
 0x5dd   : > { %4259 = vmatpush2.bf16.msra.mxu1 %v11395_v17  ;;  %v11425_v17 = vld [vmem:[%s13005_s2 + $0x188] ss:$12 sps:$4 sm:$0xff]  }
 0x5de   : > { %4260 = vmatprep.subr.bf16.mxu1 %v11400_v8 }
 0x5e1   : > { %4261 = vmatpush2.bf16.msra.mxu1 %v11398_v33 }
 0x5e2   : > { %4262 = vmatprep.subr.bf16.mxu1 %v11403_v18 }
 0x5e5   : > { %4263 = vmatpush2.bf16.msra.mxu1 %v11401_v19 }
 0x5e6   : > { %4264 = vmatprep.subr.bf16.mxu1 %v11406_v21 }
 0x5e9   : > { %4265 = vmatpush2.bf16.msra.mxu1 %v11404_v20 }
 0x5ea   : > { %4266 = vmatprep.subr.bf16.mxu1 %v11409_v23 }
 0x5ed   : > { %4267 = vmatpush2.bf16.msra.mxu1 %v11407_v22 }
 0x5ee   : > { %10509 = vmatprep.subr.bf16.mxu1 %v11410_v34 }
 0x629   : > { %v3239_v24 = vpop.f32.mrf.mxu1 }
 0x62a   : > { %v3245_v5 = vpack.c.bf16 %v3239_v24, %v3239_v24 }
 0x62b   : > { %v10673_v25 = vpop.f32.mrf.mxu1 }
 0x62d   : > { %v3242_v26 = vpop.f32.mrf.mxu1 }
 0x62f   : > { %v10674_v27 = vpop.f32.mrf.mxu1 }
 0x631   : > { %v3342_v28 = vpop.f32.mrf.mxu1 }
 0x632   : > { %v3348_v29 = vpack.c.bf16 %v3342_v28, %v3342_v28 }
 0x633   : > { %v10685_v49 = vpop.f32.mrf.mxu1 }
 0x634   : > { %4227 = vmatprep.mubr.bf16.mxu0 %v3348_v29 }
 0x635   : > { %v3345_v32 = vpop.f32.mrf.mxu1  ;;  %4228 = vmatmul.mubr.bf16.vlgmr.msra.gmra.mxu0 %v3245_v5 }
 0x636   : > { %10488 = vmatpush3.bf16.msra.mxu0 %v11350_v30  ;;  %4309 = vmatprep.mubr.bf16.mxu0 %v3348_v29  ;;  %v4360_v29 = vld [vmem:[%s677_s16] sm:$0x7] }
 0x637   : > { %v10686_v37 = vpop.f32.mrf.mxu1  ;;  %10489 = vmatprep.subr.bf16.mxu0 %v11354_v31  ;;  %v4369_v31 = vrot.slane %v4360_v29, %v13120_v11 }
 0x638   : > { %v12263_v37 = vld [vmem:[%s13041_s25] sm:$0xff] }
 0x63a   : > { %10490 = vmatpush3.bf16.msra.mxu0 %v11355_v36 }
 0x63b   : > { %10491 = vmatprep.subr.bf16.mxu0 %v11359_v59 }
 0x63e   : > { %10492 = vmatpush3.bf16.msra.mxu0 %v11360_v38  ;;  %v4365_v38 = vrot.slane %v4360_v29, %v13126_v13 }
 0x63f   : > { %10493 = vmatprep.subr.bf16.mxu0 %v11364_v39 }
 0x642   : > { %10494 = vmatpush3.bf16.msra.mxu0 %v11365_v40 }
 0x643   : > { %10495 = vmatprep.subr.bf16.mxu0 %v11369_v16 }
 0x646   : > { %10496 = vmatpush3.bf16.msra.mxu0 %v11370_v41 }
 0x647   : > { %10497 = vmatprep.subr.bf16.mxu0 %v11374_v42  ;;  %v4373_v42 = vrot.slane %v4360_v29, %v13123_v12  ;;  %v11465_v29 = vld [vmem:[%s13018_s12 + $0x4e0] ss:$48 sps:$4 sm:$0xff]  }
 0x64a   : > { %10498 = vmatpush3.bf16.msra.mxu0 %v11375_v43 }
 0x64b   : > { %10499 = vmatprep.subr.bf16.mxu0 %v11379_v62 }
 0x64e   : > { %10500 = vmatpush3.bf16.msra.mxu0 %v11380_v44  ;;  %v12264_v44 = vld [vmem:[%s13041_s25 + $0x10] sm:$0xff] }
 0x64f   : > { %10501 = vmatprep.subr.bf16.mxu0 %v11384_v45 }
 0x652   : > { %10502 = vmatpush3.bf16.msra.mxu0 %v11385_v46 }
 0x655   : > { %4310 = vmatmul.mubr.bf16.vlgmr.msra.gmra.mxu0 %v3245_v5  ;;  %v12262_v5 = vld [vmem:[%s13041_s25 + $0x8] sm:$0xff] }
 0x668   : > { %v3445_v48 = vpop.f32.mrf.mxu1 }
 0x669   : > { %v3451_v55 = vpack.c.bf16 %v3445_v48, %v3445_v48 }
 0x66a   : > { %v10697_v47 = vpop.f32.mrf.mxu1 }
 0x66c   : > { %v3448_v50 = vpop.f32.mrf.mxu1 }
 0x66d   : > { %v11426_v50 = vld [vmem:[%s13018_s12 + $0x2a0] ss:$48 sps:$4 sm:$0xff]  }
 0x66e   : > { %v10698_v51 = vpop.f32.mrf.mxu1 }
 0x66f   : > { %v11428_v51 = vld [vmem:[%s13018_s12 + $0x2a4] ss:$48 sps:$4 sm:$0xff]  }
 0x670   : > { %v3548_v52 = vpop.f32.mrf.mxu1  ;;  %6236 = vmatprep.subr.bf16.mxu0 %v11428_v51  ;;  %v11495_v51 = vld [vmem:[%s13018_s12 + $0x300] ss:$48 sps:$4 sm:$0xff]  }
 0x671   : > { %v3554_v53 = vpack.c.bf16 %v3548_v52, %v3548_v52  ;;  %v11431_v52 = vld [vmem:[%s13018_s12 + $0x244] ss:$48 sps:$4 sm:$0xff]   ;;  %6237 = vmatpush1.bf16.msra.mxu0 %v11426_v50  ;;  %v11492_v50 = vld [vmem:[%s13018_s12 + $0x600] ss:$48 sps:$4 sm:$0xff]  }
 0x672   : > { %v10709_v35 = vpop.f32.mrf.mxu1  ;;  %6238 = vmatprep.subr.bf16.mxu0 %v11431_v52  ;;  %v11500_v52 = vld [vmem:[%s13018_s12 + $0x2ac] ss:$48 sps:$4 sm:$0xff]  }
 0x673   : > { %4268 = vmatprep.mubr.bf16.mxu1 %v3554_v53  ;;  %v11452_v35 = vld [vmem:[%s13018_s12 + $0x8a4] ss:$48 sps:$4 sm:$0xff]  }
 0x674   : > { %v3551_v57 = vpop.f32.mrf.mxu1  ;;  %4269 = vmatmul.mubr.bf16.vlgmr.msra.gmra.mxu1 %v3451_v55 }
 0x675   : > { %10510 = vmatpush3.bf16.msra.mxu1 %v11411_v54  ;;  %4349 = vmatprep.mubr.bf16.mxu1 %v3554_v53  ;;  %v11429_v53 = vld [vmem:[%s13018_s12 + $0x240] ss:$48 sps:$4 sm:$0xff]   ;;  %v11434_v54 = vld [vmem:[%s13018_s12 + $0x1e4] ss:$48 sps:$4 sm:$0xff]  }
 0x676   : > { %v10710_v60 = vpop.f32.mrf.mxu1  ;;  %10511 = vmatprep.subr.bf16.mxu1 %v11412_v56  ;;  %6239 = vmatpush1.bf16.msra.mxu0 %v11429_v53  ;;  %v11432_v56 = vld [vmem:[%s13018_s12 + $0x1e0] ss:$48 sps:$4 sm:$0xff]   ;;  %v11458_v57 = vld [vmem:[%s13018_s12 + $0x844] ss:$48 sps:$4 sm:$0xff]   ;;  %v11503_v53 = vld [vmem:[%s13018_s12 + $0x8ac] ss:$48 sps:$4 sm:$0xff]  }
 0x677   : > { %6240 = vmatprep.subr.bf16.mxu0 %v11434_v54  ;;  %v11456_v60 = vld [vmem:[%s13018_s12 + $0x840] ss:$48 sps:$4 sm:$0xff]  }
 0x679   : > { %10512 = vmatpush3.bf16.msra.mxu1 %v11413_v58  ;;  %v11437_v58 = vld [vmem:[%s13018_s12 + $0x184] ss:$48 sps:$4 sm:$0xff]  }
 0x67a   : > { %10513 = vmatprep.subr.bf16.mxu1 %v11414_v63  ;;  %6241 = vmatpush1.bf16.msra.mxu0 %v11432_v56  ;;  %v11435_v63 = vld [vmem:[%s13018_s12 + $0x180] ss:$48 sps:$4 sm:$0xff]   ;;  %v4380_v56 = vld [vmem:[%s14472_s20] sm:$0x7] }
 0x67b   : > { %6242 = vmatprep.subr.bf16.mxu0 %v11437_v58  ;;  %v4411_v58 = vrot.slane %v4380_v56, %v13120_v11 }
 0x67d   : > { %10514 = vmatpush3.bf16.msra.mxu1 %v11415_v0  ;;  %v11440_v0 = vld [vmem:[%s13018_s12 + $0x124] ss:$48 sps:$4 sm:$0xff]  }
 0x67e   : > { %10515 = vmatprep.subr.bf16.mxu1 %v11416_v1  ;;  %6243 = vmatpush1.bf16.msra.mxu0 %v11435_v63  ;;  %v11438_v1 = vld [vmem:[%s13018_s12 + $0x120] ss:$48 sps:$4 sm:$0xff]   ;;  %v4407_v63 = vrot.slane %v4380_v56, %v13126_v13 }
 0x67f   : > { %6244 = vmatprep.subr.bf16.mxu0 %v11440_v0 }
 0x681   : > { %10516 = vmatpush3.bf16.msra.mxu1 %v11417_v2  ;;  %v11443_v2 = vld [vmem:[%s13018_s12 + $0xc4] ss:$48 sps:$4 sm:$0xff]  }
 0x682   : > { %10517 = vmatprep.subr.bf16.mxu1 %v11418_v3  ;;  %6245 = vmatpush1.bf16.msra.mxu0 %v11438_v1  ;;  %v11441_v3 = vld [vmem:[%s13018_s12 + $0xc0] ss:$48 sps:$4 sm:$0xff]  }
 0x683   : > { %6246 = vmatprep.subr.bf16.mxu0 %v11443_v2 }
 0x685   : > { %10518 = vmatpush3.bf16.msra.mxu1 %v11419_v4  ;;  %v11446_v4 = vld [vmem:[%s13018_s12 + $0x64] ss:$48 sps:$4 sm:$0xff]  }
 0x686   : > { %10519 = vmatprep.subr.bf16.mxu1 %v11420_v6  ;;  %6247 = vmatpush1.bf16.msra.mxu0 %v11441_v3  ;;  %v11444_v6 = vld [vmem:[%s13018_s12 + $0x60] ss:$48 sps:$4 sm:$0xff]  }
 0x687   : > { %6248 = vmatprep.subr.bf16.mxu0 %v11446_v4 }
 0x689   : > { %10520 = vmatpush3.bf16.msra.mxu1 %v11421_v7  ;;  %v11449_v7 = vld [vmem:[%s13018_s12 + $0x4] ss:$48 sps:$4 sm:$0xff]  }
 0x68a   : > { %10521 = vmatprep.subr.bf16.mxu1 %v11422_v10  ;;  %6249 = vmatpush1.bf16.msra.mxu0 %v11444_v6  ;;  %v11447_v10 = vld [vmem:[%s13018_s12] ss:$48 sps:$4 sm:$0xff]  }
 0x68b   : > { %6250 = vmatprep.subr.bf16.mxu0 %v11449_v7 }
 0x68d   : > { %10522 = vmatpush3.bf16.msra.mxu1 %v11423_v14  ;;  %v11455_v14 = vld [vmem:[%s13018_s12 + $0x5a4] ss:$48 sps:$4 sm:$0xff]  }
 0x68e   : > { %10523 = vmatprep.subr.bf16.mxu1 %v11424_v15  ;;  %6251 = vmatpush1.bf16.msra.mxu0 %v11447_v10  ;;  %v11453_v15 = vld [vmem:[%s13018_s12 + $0x5a0] ss:$48 sps:$4 sm:$0xff]  }
 0x68f   : > { %6252 = vmatprep.subr.bf16.mxu0 %v11455_v14 }
 0x691   : > { %10524 = vmatpush3.bf16.msra.mxu1 %v11425_v17  ;;  %v11461_v17 = vld [vmem:[%s13018_s12 + $0x544] ss:$48 sps:$4 sm:$0xff]  }
 0x692   : > { %6277 = vmatprep.subr.bf16.mxu1 %v11452_v35  ;;  %6253 = vmatpush2.bf16.msra.mxu0 %v11453_v15 }
 0x693   : > { %6254 = vmatprep.subr.bf16.mxu0 %v11461_v17 }
 0x694   : > { %4350 = vmatmul.mubr.bf16.vlgmr.msra.gmra.mxu1 %v3451_v55  ;;  %v11450_v55 = vld [vmem:[%s13018_s12 + $0x8a0] ss:$48 sps:$4 sm:$0xff]  }
 0x695   : > { %6309 = vmatprep.mubr.bf16.mxu1 %v12676_v61  ;;  %6278 = vmatpush1.bf16.msra.mxu1 %v11450_v55 }
 0x696   : > { %6279 = vmatprep.subr.bf16.mxu1 %v11458_v57  ;;  %v4381_v57 = vld [vmem:[%s14473_s15] sm:$0x7] }
 0x697   : > { %v4430_v1 = vrot.slane %v4381_v57, %v13120_v11  ;;  %v4434_v2 = vrot.slane %v4381_v57, %v13123_v12  ;;  %v4426_v7 = vrot.slane %v4381_v57, %v13126_v13  ;;  %v11552_v57 = vld [vmem:[%s13018_s12 + $0x548] ss:$48 sps:$4 sm:$0xff]  }
 0x699   : > { %6280 = vmatpush1.bf16.msra.mxu1 %v11456_v60  ;;  %v4415_v60 = vrot.slane %v4380_v56, %v13123_v12  ;;  %v11557_v56 = vld [vmem:[%s13018_s12 + $0x254] ss:$48 sps:$4 sm:$0xff]  }
 0x6f5   : > { %v4229_v8 = vpop.f32.mrf.mxu0 }
 0x6f7   : > { %v4231_v33 = vpop.f32.mrf.mxu0 }
 0x6f9   : > { %v4233_v18 = vpop.f32.mrf.mxu0 }
 0x6fb   : > { %v4234_v19 = vpop.f32.mrf.mxu0 }
 0x715   : > { %v10503_v20 = vpop.f32.mrf.mxu0 }
 0x717   : > { %v10504_v21 = vpop.f32.mrf.mxu0 }
 0x718   : > { %v10505_v36 = vadd.f32 %v10504_v21, %v10503_v20 }
 0x719   : > { %v10506_v22 = vpop.f32.mrf.mxu0 }
 0x71b   : > { %v10507_v23 = vpop.f32.mrf.mxu0 }
 0x734   : > { %v4270_v34 = vpop.f32.mrf.mxu1 }
 0x735   : > { %v4271_v28 = vadd.f32 %v4270_v34, %v4229_v8  ;;  %v11459_v8 = vld [vmem:[%s13018_s12 + $0x540] ss:$48 sps:$4 sm:$0xff]  }
 0x736   : > { %v4272_v24 = vpop.f32.mrf.mxu1  ;;  %6255 = vmatpush2.bf16.msra.mxu0 %v11459_v8 }
 0x737   : > { %v4273_v27 = vadd.f32 %v4272_v24, %v4231_v33  ;;  %v4357_v59 = vadd.f32 %v12263_v37, %v4271_v28  ;;  %v11467_v28 = vld [vmem:[%s13018_s12 + $0x4e4] ss:$48 sps:$4 sm:$0xff]  }
 0x738   : > { %v4274_v25 = vpop.f32.mrf.mxu1  ;;  %6256 = vmatprep.subr.bf16.mxu0 %v11467_v28  ;;  %v11479_v37 = vld [vmem:[%s13018_s12 + $0x424] ss:$48 sps:$4 sm:$0xff]   ;;  %v11510_v28 = vld [vmem:[%s13018_s12 + $0x1e8] ss:$48 sps:$4 sm:$0xff]  }
 0x739   : > { %v4358_v49 = vadd.f32 %v12262_v5, %v4273_v27  ;;  %v13598_v62 = vadd.f32 %v4365_v38, %v4357_v59  ;;  %v11462_v27 = vld [vmem:[%s13018_s12 + $0x7e0] ss:$48 sps:$4 sm:$0xff]   ;;  %v11482_v38 = vld [vmem:[%s13018_s12 + $0x6c4] ss:$48 sps:$4 sm:$0xff]  }
 0x73a   : > { %v4275_v26 = vpop.f32.mrf.mxu1  ;;  %6257 = vmatpush2.bf16.msra.mxu0 %v11465_v29  ;;  %v11468_v5 = vld [vmem:[%s13018_s12 + $0x780] ss:$48 sps:$4 sm:$0xff]   ;;  %v11513_v29 = vld [vmem:[%s13018_s12 + $0x7e8] ss:$48 sps:$4 sm:$0xff]  }
 0x73b   : > { %v13595_v16 = vadd.f32 %v4369_v31, %v4358_v49  ;;  %v11464_v26 = vld [vmem:[%s13018_s12 + $0x7e4] ss:$48 sps:$4 sm:$0xff]   ;;  %v11471_v49 = vld [vmem:[%s13018_s12 + $0x480] ss:$48 sps:$4 sm:$0xff]  }
 0x73c   : > { %6281 = vmatprep.subr.bf16.mxu1 %v11464_v26  ;;  %v11473_v31 = vld [vmem:[%s13018_s12 + $0x484] ss:$48 sps:$4 sm:$0xff]   ;;  %v11477_v59 = vld [vmem:[%s13018_s12 + $0x420] ss:$48 sps:$4 sm:$0xff]   ;;  %v11512_v26 = vld [vmem:[%s13018_s12 + $0x1ec] ss:$48 sps:$4 sm:$0xff]  }
 0x73d   : > { %v4382_v48 = vadd.f32 %v13595_v16, %v13598_v62  ;;  %6282 = vmatpush1.bf16.msra.mxu1 %v11462_v27  ;;  %6258 = vmatprep.subr.bf16.mxu0 %v11473_v31  ;;  %v11515_v27 = vld [vmem:[%s13018_s12 + $0x7ec] ss:$48 sps:$4 sm:$0xff]   ;;  %v11519_v31 = vld [vmem:[%s13018_s12 + $0x788] ss:$48 sps:$4 sm:$0xff]  }
 0x73e   : > { %6259 = vmatpush2.bf16.msra.mxu0 %v11471_v49  ;;  %v11516_v49 = vld [vmem:[%s13018_s12 + $0x188] ss:$48 sps:$4 sm:$0xff]  }
 0x73f   : > { %6260 = vmatprep.subr.bf16.mxu0 %v11479_v37  ;;  %v11522_v37 = vld [vmem:[%s13018_s12 + $0x128] ss:$48 sps:$4 sm:$0xff]  }
 0x742   : > { %6261 = vmatpush2.bf16.msra.mxu0 %v11477_v59  ;;  %v11525_v59 = vld [vmem:[%s13018_s12 + $0x728] ss:$48 sps:$4 sm:$0xff]  }
 0x754   : > { %v10525_v30 = vpop.f32.mrf.mxu1 }
 0x756   : > { %v10526_v32 = vpop.f32.mrf.mxu1 }
 0x757   : > { %v10527_v39 = vadd.f32 %v10526_v32, %v10525_v30  ;;  %v11470_v30 = vld [vmem:[%s13018_s12 + $0x784] ss:$48 sps:$4 sm:$0xff]  }
 0x758   : > { %v10528_v40 = vpop.f32.mrf.mxu1  ;;  %6283 = vmatprep.subr.bf16.mxu1 %v11470_v30  ;;  %v11476_v32 = vld [vmem:[%s13018_s12 + $0x724] ss:$48 sps:$4 sm:$0xff]   ;;  %v11518_v30 = vld [vmem:[%s13018_s12 + $0x18c] ss:$48 sps:$4 sm:$0xff]  }
 0x759   : > { %v4352_v41 = vadd.f32 %v10527_v39, %v10505_v36  ;;  %6284 = vmatpush1.bf16.msra.mxu1 %v11468_v5  ;;  %v11474_v36 = vld [vmem:[%s13018_s12 + $0x720] ss:$48 sps:$4 sm:$0xff]   ;;  %v11485_v39 = vld [vmem:[%s13018_s12 + $0x3c4] ss:$48 sps:$4 sm:$0xff]   ;;  %v11521_v5 = vld [vmem:[%s13018_s12 + $0x78c] ss:$48 sps:$4 sm:$0xff]  }
 0x75a   : > { %v10529_v43 = vpop.f32.mrf.mxu1  ;;  %6285 = vmatprep.subr.bf16.mxu1 %v11476_v32  ;;  %v11480_v40 = vld [vmem:[%s13018_s12 + $0x6c0] ss:$48 sps:$4 sm:$0xff]   ;;  %6262 = vmatprep.subr.bf16.mxu0 %v11485_v39  ;;  %v11524_v32 = vld [vmem:[%s13018_s12 + $0x12c] ss:$48 sps:$4 sm:$0xff]  }
 0x75b   : > { %v4359_v45 = vadd.f32 %v12264_v44, %v4352_v41  ;;  %v11483_v41 = vld [vmem:[%s13018_s12 + $0x3c0] ss:$48 sps:$4 sm:$0xff]   ;;  %v11491_v43 = vld [vmem:[%s13018_s12 + $0x364] ss:$48 sps:$4 sm:$0xff]   ;;  %v11533_v39 = vld [vmem:[%s13018_s12 + $0x6cc] ss:$48 sps:$4 sm:$0xff]  }
 0x75c   : > { %v11486_v44 = vld [vmem:[%s13018_s12 + $0x660] ss:$48 sps:$4 sm:$0xff]   ;;  %6263 = vmatpush2.bf16.msra.mxu0 %v11483_v41  ;;  %v11531_v41 = vld [vmem:[%s13018_s12 + $0x6c8] ss:$48 sps:$4 sm:$0xff]  }
 0x75d   : > { %v13601_v46 = vadd.f32 %v4373_v42, %v4359_v45  ;;  %6286 = vmatpush1.bf16.msra.mxu1 %v11474_v36  ;;  %v11488_v42 = vld [vmem:[%s13018_s12 + $0x664] ss:$48 sps:$4 sm:$0xff]   ;;  %v11489_v45 = vld [vmem:[%s13018_s12 + $0x360] ss:$48 sps:$4 sm:$0xff]   ;;  %6264 = vmatprep.subr.bf16.mxu0 %v11491_v43  ;;  %v11527_v36 = vld [vmem:[%s13018_s12 + $0x72c] ss:$48 sps:$4 sm:$0xff]  }
 0x75e   : > { %6287 = vmatprep.subr.bf16.mxu1 %v11482_v38  ;;  %v11530_v38 = vld [vmem:[%s13018_s12 + $0xcc] ss:$48 sps:$4 sm:$0xff]  }
 0x75f   : > { %v4383_v47 = vadd.f32 %v4382_v48, %v13601_v46  ;;  %v11494_v48 = vld [vmem:[%s13018_s12 + $0x604] ss:$48 sps:$4 sm:$0xff]   ;;  %v11539_v43 = vld [vmem:[%s13018_s12 + $0x66c] ss:$48 sps:$4 sm:$0xff]  }
 0x760   : > { %6265 = vmatpush2.bf16.msra.mxu0 %v11489_v45  ;;  %v11537_v45 = vld [vmem:[%s13018_s12 + $0x668] ss:$48 sps:$4 sm:$0xff]  }
 0x761   : > { %4384 = vadd.xlane.f32.xlu0 %v4383_v47  ;;  %6288 = vmatpush1.bf16.msra.mxu1 %v11480_v40  ;;  %v11497_v47 = vld [vmem:[%s13018_s12 + $0x304] ss:$48 sps:$4 sm:$0xff]   ;;  %v11528_v40 = vld [vmem:[%s13018_s12 + $0xc8] ss:$48 sps:$4 sm:$0xff]  }
 0x762   : > { %6289 = vmatprep.subr.bf16.mxu1 %v11488_v42  ;;  %6266 = vmatprep.subr.bf16.mxu0 %v11497_v47  ;;  %v11536_v42 = vld [vmem:[%s13018_s12 + $0x6c] ss:$48 sps:$4 sm:$0xff]  }
 0x763   : > { %v11545_v47 = vld [vmem:[%s13018_s12 + $0x60c] ss:$48 sps:$4 sm:$0xff]  }
 0x764   : > { %6267 = vmatpush2.bf16.msra.mxu0 %v11495_v51  ;;  %v11543_v51 = vld [vmem:[%s13018_s12 + $0x608] ss:$48 sps:$4 sm:$0xff]  }
 0x765   : > { %6290 = vmatpush1.bf16.msra.mxu1 %v11486_v44  ;;  %6359 = vmatprep.subr.bf16.mxu0 %v11503_v53  ;;  %v11534_v44 = vld [vmem:[%s13018_s12 + $0x68] ss:$48 sps:$4 sm:$0xff]   ;;  %v11551_v53 = vld [vmem:[%s13018_s12 + $0x2b4] ss:$48 sps:$4 sm:$0xff]  }
 0x766   : > { %6291 = vmatprep.subr.bf16.mxu1 %v11494_v48  ;;  %v11542_v48 = vld [vmem:[%s13018_s12 + $0xc] ss:$48 sps:$4 sm:$0xff]  }
 0x769   : > { %6292 = vmatpush1.bf16.msra.mxu1 %v11492_v50  ;;  %v11540_v50 = vld [vmem:[%s13018_s12 + $0x8] ss:$48 sps:$4 sm:$0xff]  }
 0x76a   : > { %6318 = vmatprep.subr.bf16.mxu1 %v11500_v52  ;;  %v11548_v52 = vld [vmem:[%s13018_s12 + $0x5ac] ss:$48 sps:$4 sm:$0xff]  }
 0x7ea   : > { %v4385_v33 = vpop.xlane.xlu0 %4384 }
 0x7eb   : > { %v4386_v18 = vmul.f32 0.0026041667, %v4385_v33 }
 0x7ed   : > { %v13631_v19 = vsub.f32 %v13598_v62, %v4386_v18  ;;  %v13634_v20 = vsub.f32 %v13595_v16, %v4386_v18  ;;  %v13637_v21 = vsub.f32 %v13601_v46, %v4386_v18  ;;  %v11498_v18 = vld [vmem:[%s13018_s12 + $0x2a8] ss:$48 sps:$4 sm:$0xff]  }
 0x7ef   : > { %v4390_v22 = vmul.f32 %v13631_v19, %v13631_v19  ;;  %v4391_v23 = vmul.f32 %v13634_v20, %v13634_v20  ;;  %v4392_v34 = vmul.f32 %v13637_v21, %v13637_v21 }
 0x7f1   : > { %v4393_v24 = vadd.f32 %v4391_v23, %v4390_v22 }
 0x7f3   : > { %v4394_v25 = vadd.f32 %v4393_v24, %v4392_v34  ;;  %v11509_v34 = vld [vmem:[%s13018_s12 + $0x84c] ss:$48 sps:$4 sm:$0xff]   ;;  %v11504_v24 = vld [vmem:[%s13018_s12 + $0x248] ss:$48 sps:$4 sm:$0xff]  }
 0x7f5   : > { %4395 = vadd.xlane.f32.xlu1 %v4394_v25  ;;  %v11507_v25 = vld [vmem:[%s13018_s12 + $0x848] ss:$48 sps:$4 sm:$0xff]  }
 0x87e   : > { %v4396_v54 = vpop.xlane.xlu1 %4395 }
 0x87f   : > { %v4397_v55 = vmul.f32 0.0026041667, %v4396_v54  ;;  %v11546_v54 = vld [vmem:[%s13018_s12 + $0x5a8] ss:$48 sps:$4 sm:$0xff]  }
 0x881   : > { %v4398_v35 = vadd.f32 1e-05, %v4397_v55  ;;  %v11549_v55 = vld [vmem:[%s13018_s12 + $0x2b0] ss:$48 sps:$4 sm:$0xff]  }
 0x883   : > { %12260 = vrsqrt.f32 %v4398_v35  ;;  %v11554_v35 = vld [vmem:[%s13018_s12 + $0x54c] ss:$48 sps:$4 sm:$0xff]  }
 0x890   : > { %v12261_v0 = vpop.eup %12260 }
 0x891   : > { %v4401_v3 = vmul.f32 %v12261_v0, %v13634_v20  ;;  %v4402_v4 = vmul.f32 %v12261_v0, %v13637_v21  ;;  %v4400_v6 = vmul.f32 %v12261_v0, %v13631_v19  ;;  %v11501_v21 = vld [vmem:[%s13018_s12 + $0x8a8] ss:$48 sps:$4 sm:$0xff]   ;;  %v11506_v19 = vld [vmem:[%s13018_s12 + $0x24c] ss:$48 sps:$4 sm:$0xff]  }
 0x892   : > { %v11558_v0 = vld [vmem:[%s13018_s12 + $0x4e8] ss:$48 sps:$4 sm:$0xff]  }
 0x893   : > { %v4420_v10 = vmul.f32 %v4411_v58, %v4401_v3  ;;  %v4421_v14 = vmul.f32 %v4415_v60, %v4402_v4  ;;  %v4419_v15 = vmul.f32 %v4407_v63, %v4400_v6  ;;  %v11555_v58 = vld [vmem:[%s13018_s12 + $0x250] ss:$48 sps:$4 sm:$0xff]   ;;  %v11560_v60 = vld [vmem:[%s13018_s12 + $0x4ec] ss:$48 sps:$4 sm:$0xff]   ;;  %v11563_v63 = vld [vmem:[%s13018_s12 + $0x1f4] ss:$48 sps:$4 sm:$0xff]  }
 0x894   : > { %v11569_v3 = vld [vmem:[%s13018_s12 + $0x194] ss:$48 sps:$4 sm:$0xff]   ;;  %v11564_v4 = vld [vmem:[%s13018_s12 + $0x488] ss:$48 sps:$4 sm:$0xff]   ;;  %v11567_v6 = vld [vmem:[%s13018_s12 + $0x190] ss:$48 sps:$4 sm:$0xff]  }
 0x895   : > { %v4439_v17 = vadd.f32 %v4430_v1, %v4420_v10  ;;  %v4440_v8 = vadd.f32 %v4434_v2, %v4421_v14  ;;  %v4438_v33 = vadd.f32 %v4426_v7, %v4419_v15  ;;  %v11561_v1 = vld [vmem:[%s13018_s12 + $0x1f0] ss:$48 sps:$4 sm:$0xff]   ;;  %v11566_v2 = vld [vmem:[%s13018_s12 + $0x48c] ss:$48 sps:$4 sm:$0xff]   ;;  %v11575_v10 = vld [vmem:[%s13018_s12 + $0x134] ss:$48 sps:$4 sm:$0xff]  }
 0x896   : > { %v11572_v7 = vld [vmem:[%s13018_s12 + $0x42c] ss:$48 sps:$4 sm:$0xff]   ;;  %v11570_v14 = vld [vmem:[%s13018_s12 + $0x428] ss:$48 sps:$4 sm:$0xff]   ;;  %v11573_v15 = vld [vmem:[%s13018_s12 + $0x130] ss:$48 sps:$4 sm:$0xff]  }
 0x897   : > { %v13685_v22 = vpack.c.bf16 %v4439_v17, %v4439_v17  ;;  %v13687_v20 = vpack.c.bf16 %v4440_v8, %v4440_v8  ;;  %v13690_v23 = vpack.c.bf16 %v4438_v33, %v4438_v33  ;;  %v11578_v17 = vld [vmem:[%s13018_s12 + $0x3cc] ss:$48 sps:$4 sm:$0xff]   ;;  %v11581_v8 = vld [vmem:[%s13018_s12 + $0xd4] ss:$48 sps:$4 sm:$0xff]   ;;  %v11576_v33 = vld [vmem:[%s13018_s12 + $0x3c8] ss:$48 sps:$4 sm:$0xff]  }
 0x899   : > { %6268 = vmatprep.mubr.bf16.mxu0 %v13685_v22  ;;  %6310 = vmatmul.mubr.bf16.vlgmr.msra.gmra.mxu1 %v13687_v20 }
 0x89a   : > { %6319 = vmatpush1.bf16.msra.mxu1 %v11498_v18  ;;  %6269 = vmatmul.mubr.bf16.vlgmr.msra.gmra.mxu0 %v13690_v23  ;;  %v11579_v18 = vld [vmem:[%s13018_s12 + $0xd0] ss:$48 sps:$4 sm:$0xff]  }
 0x89b   : > { %6350 = vmatprep.mubr.bf16.mxu1 %v13685_v22  ;;  %6360 = vmatpush1.bf16.msra.mxu0 %v11501_v21  ;;  %v11584_v21 = vld [vmem:[%s13018_s12 + $0x36c] ss:$48 sps:$4 sm:$0xff]  }
 0x89c   : > { %6320 = vmatprep.subr.bf16.mxu1 %v11506_v19  ;;  %6361 = vmatprep.subr.bf16.mxu0 %v11509_v34  ;;  %v11587_v19 = vld [vmem:[%s13018_s12 + $0x74] ss:$48 sps:$4 sm:$0xff]   ;;  %v11582_v34 = vld [vmem:[%s13018_s12 + $0x368] ss:$48 sps:$4 sm:$0xff]  }
 0x89d   : > { %6391 = vmatprep.mubr.bf16.mxu0 %v12676_v61 }
 0x89e   : > { %6321 = vmatpush1.bf16.msra.mxu1 %v11504_v24  ;;  %v11585_v24 = vld [vmem:[%s13018_s12 + $0x70] ss:$48 sps:$4 sm:$0xff]  }
 0x89f   : > { %6362 = vmatpush1.bf16.msra.mxu0 %v11507_v25  ;;  %6322 = vmatprep.subr.bf16.mxu1 %v11512_v26  ;;  %v11590_v25 = vld [vmem:[%s13018_s12 + $0x30c] ss:$48 sps:$4 sm:$0xff]   ;;  %v11593_v26 = vld [vmem:[%s13018_s12 + $0x14] ss:$48 sps:$4 sm:$0xff]  }
 0x8a0   : > { %6363 = vmatprep.subr.bf16.mxu0 %v11515_v27  ;;  %v11588_v27 = vld [vmem:[%s13018_s12 + $0x308] ss:$48 sps:$4 sm:$0xff]  }
 0x8a2   : > { %6323 = vmatpush1.bf16.msra.mxu1 %v11510_v28  ;;  %v11591_v28 = vld [vmem:[%s13018_s12 + $0x10] ss:$48 sps:$4 sm:$0xff]  }
 0x8a3   : > { %6364 = vmatpush1.bf16.msra.mxu0 %v11513_v29  ;;  %6324 = vmatprep.subr.bf16.mxu1 %v11518_v30  ;;  %v11596_v29 = vld [vmem:[%s13018_s12 + $0x8b4] ss:$48 sps:$4 sm:$0xff]  }
 0x8a4   : > { %6365 = vmatprep.subr.bf16.mxu0 %v11521_v5  ;;  %v11599_v30 = vld [vmem:[%s13018_s12 + $0x5b4] ss:$48 sps:$4 sm:$0xff]   ;;  %v11594_v5 = vld [vmem:[%s13018_s12 + $0x8b0] ss:$48 sps:$4 sm:$0xff]  }
 0x8a6   : > { %6325 = vmatpush1.bf16.msra.mxu1 %v11516_v49  ;;  %v11597_v49 = vld [vmem:[%s13018_s12 + $0x5b0] ss:$48 sps:$4 sm:$0xff]  }
 0x8a7   : > { %6366 = vmatpush1.bf16.msra.mxu0 %v11519_v31  ;;  %6326 = vmatprep.subr.bf16.mxu1 %v11524_v32  ;;  %v11602_v31 = vld [vmem:[%s13018_s12 + $0x854] ss:$48 sps:$4 sm:$0xff]  }
 0x8a8   : > { %6367 = vmatprep.subr.bf16.mxu0 %v11527_v36  ;;  %v11605_v32 = vld [vmem:[%s13018_s12 + $0x554] ss:$48 sps:$4 sm:$0xff]   ;;  %v11600_v36 = vld [vmem:[%s13018_s12 + $0x850] ss:$48 sps:$4 sm:$0xff]  }
 0x8aa   : > { %6327 = vmatpush1.bf16.msra.mxu1 %v11522_v37  ;;  %v11603_v37 = vld [vmem:[%s13018_s12 + $0x550] ss:$48 sps:$4 sm:$0xff]  }
 0x8ab   : > { %6368 = vmatpush1.bf16.msra.mxu0 %v11525_v59  ;;  %6328 = vmatprep.subr.bf16.mxu1 %v11530_v38  ;;  %v11608_v59 = vld [vmem:[%s13018_s12 + $0x7f4] ss:$48 sps:$4 sm:$0xff]  }
 0x8ac   : > { %6369 = vmatprep.subr.bf16.mxu0 %v11533_v39  ;;  %v11611_v38 = vld [vmem:[%s13018_s12 + $0x4f4] ss:$48 sps:$4 sm:$0xff]   ;;  %v11606_v39 = vld [vmem:[%s13018_s12 + $0x7f0] ss:$48 sps:$4 sm:$0xff]  }
 0x8ae   : > { %6329 = vmatpush1.bf16.msra.mxu1 %v11528_v40  ;;  %v11609_v40 = vld [vmem:[%s13018_s12 + $0x4f0] ss:$48 sps:$4 sm:$0xff]  }
 0x8af   : > { %6370 = vmatpush1.bf16.msra.mxu0 %v11531_v41  ;;  %6330 = vmatprep.subr.bf16.mxu1 %v11536_v42  ;;  %v11614_v41 = vld [vmem:[%s13018_s12 + $0x794] ss:$48 sps:$4 sm:$0xff]  }
 0x8b0   : > { %6371 = vmatprep.subr.bf16.mxu0 %v11539_v43  ;;  %v11617_v42 = vld [vmem:[%s13018_s12 + $0x494] ss:$48 sps:$4 sm:$0xff]   ;;  %v11612_v43 = vld [vmem:[%s13018_s12 + $0x790] ss:$48 sps:$4 sm:$0xff]  }
 0x8b2   : > { %6331 = vmatpush1.bf16.msra.mxu1 %v11534_v44  ;;  %v11615_v44 = vld [vmem:[%s13018_s12 + $0x490] ss:$48 sps:$4 sm:$0xff]  }
 0x8b3   : > { %6372 = vmatpush1.bf16.msra.mxu0 %v11537_v45  ;;  %6332 = vmatprep.subr.bf16.mxu1 %v11542_v48  ;;  %v11620_v45 = vld [vmem:[%s13018_s12 + $0x734] ss:$48 sps:$4 sm:$0xff]  }
 0x8b4   : > { %6373 = vmatprep.subr.bf16.mxu0 %v11545_v47  ;;  %v11623_v48 = vld [vmem:[%s13018_s12 + $0x434] ss:$48 sps:$4 sm:$0xff]   ;;  %v11618_v47 = vld [vmem:[%s13018_s12 + $0x730] ss:$48 sps:$4 sm:$0xff]  }
 0x8b6   : > { %6333 = vmatpush1.bf16.msra.mxu1 %v11540_v50  ;;  %v11621_v50 = vld [vmem:[%s13018_s12 + $0x430] ss:$48 sps:$4 sm:$0xff]  }
 0x8b7   : > { %6374 = vmatpush1.bf16.msra.mxu0 %v11543_v51  ;;  %6334 = vmatprep.subr.bf16.mxu1 %v11548_v52  ;;  %v11626_v51 = vld [vmem:[%s13018_s12 + $0x6d4] ss:$48 sps:$4 sm:$0xff]  }
 0x8b8   : > { %6400 = vmatprep.subr.bf16.mxu0 %v11551_v53  ;;  %v11629_v52 = vld [vmem:[%s13018_s12 + $0x3d4] ss:$48 sps:$4 sm:$0xff]   ;;  %v11624_v53 = vld [vmem:[%s13018_s12 + $0x6d0] ss:$48 sps:$4 sm:$0xff]  }
 0x8ba   : > { %6335 = vmatpush2.bf16.msra.mxu1 %v11546_v54  ;;  %6392 = vmatmul.mubr.bf16.vlgmr.msra.gmra.mxu0 %v13687_v20  ;;  %v11627_v54 = vld [vmem:[%s13018_s12 + $0x3d0] ss:$48 sps:$4 sm:$0xff]  }
 0x8bb   : > { %6401 = vmatpush1.bf16.msra.mxu0 %v11549_v55  ;;  %6432 = vmatprep.mubr.bf16.mxu0 %v13685_v22  ;;  %v11632_v55 = vld [vmem:[%s13018_s12 + $0x674] ss:$48 sps:$4 sm:$0xff]  }
 0x8bc   : > { %6336 = vmatprep.subr.bf16.mxu1 %v11554_v35  ;;  %6402 = vmatprep.subr.bf16.mxu0 %v11557_v56  ;;  %v11635_v35 = vld [vmem:[%s13018_s12 + $0x374] ss:$48 sps:$4 sm:$0xff]   ;;  %v11630_v56 = vld [vmem:[%s13018_s12 + $0x670] ss:$48 sps:$4 sm:$0xff]  }
 0x8be   : > { %6337 = vmatpush2.bf16.msra.mxu1 %v11552_v57  ;;  %v11633_v57 = vld [vmem:[%s13018_s12 + $0x370] ss:$48 sps:$4 sm:$0xff]  }
 0x8bf   : > { %6403 = vmatpush1.bf16.msra.mxu0 %v11555_v58  ;;  %6338 = vmatprep.subr.bf16.mxu1 %v11560_v60  ;;  %v11638_v58 = vld [vmem:[%s13018_s12 + $0x614] ss:$48 sps:$4 sm:$0xff]  }
 0x8c0   : > { %6404 = vmatprep.subr.bf16.mxu0 %v11563_v63  ;;  %v11641_v60 = vld [vmem:[%s13018_s12 + $0x314] ss:$48 sps:$4 sm:$0xff]   ;;  %v11636_v63 = vld [vmem:[%s13018_s12 + $0x610] ss:$48 sps:$4 sm:$0xff]  }
 0x8c2   : > { %6339 = vmatpush2.bf16.msra.mxu1 %v11558_v0  ;;  %v11639_v0 = vld [vmem:[%s13018_s12 + $0x310] ss:$48 sps:$4 sm:$0xff]  }
 0x8c3   : > { %6405 = vmatpush1.bf16.msra.mxu0 %v11561_v1  ;;  %6340 = vmatprep.subr.bf16.mxu1 %v11566_v2  ;;  %v11644_v1 = vld [vmem:[%s13018_s12 + $0x2bc] ss:$48 sps:$4 sm:$0xff]  }
 0x8c4   : > { %6406 = vmatprep.subr.bf16.mxu0 %v11569_v3  ;;  %v11647_v2 = vld [vmem:[%s13018_s12 + $0x8bc] ss:$48 sps:$4 sm:$0xff]   ;;  %v11642_v3 = vld [vmem:[%s13018_s12 + $0x2b8] ss:$48 sps:$4 sm:$0xff]  }
 0x8c6   : > { %6341 = vmatpush2.bf16.msra.mxu1 %v11564_v4  ;;  %v11645_v4 = vld [vmem:[%s13018_s12 + $0x8b8] ss:$48 sps:$4 sm:$0xff]  }
 0x8c7   : > { %6407 = vmatpush1.bf16.msra.mxu0 %v11567_v6  ;;  %6342 = vmatprep.subr.bf16.mxu1 %v11572_v7  ;;  %v11650_v6 = vld [vmem:[%s13018_s12 + $0x25c] ss:$48 sps:$4 sm:$0xff]  }
 0x8c8   : > { %6408 = vmatprep.subr.bf16.mxu0 %v11575_v10  ;;  %v11653_v7 = vld [vmem:[%s13018_s12 + $0x85c] ss:$48 sps:$4 sm:$0xff]   ;;  %v11648_v10 = vld [vmem:[%s13018_s12 + $0x258] ss:$48 sps:$4 sm:$0xff]  }
 0x8ca   : > { %6343 = vmatpush2.bf16.msra.mxu1 %v11570_v14  ;;  %v11651_v14 = vld [vmem:[%s13018_s12 + $0x858] ss:$48 sps:$4 sm:$0xff]  }
 0x8cb   : > { %6409 = vmatpush1.bf16.msra.mxu0 %v11573_v15  ;;  %6344 = vmatprep.subr.bf16.mxu1 %v11578_v17  ;;  %v11656_v15 = vld [vmem:[%s13018_s12 + $0x1fc] ss:$48 sps:$4 sm:$0xff]  }
 0x8cc   : > { %6410 = vmatprep.subr.bf16.mxu0 %v11581_v8  ;;  %v11659_v17 = vld [vmem:[%s13018_s12 + $0x7fc] ss:$48 sps:$4 sm:$0xff]   ;;  %v11654_v8 = vld [vmem:[%s13018_s12 + $0x1f8] ss:$48 sps:$4 sm:$0xff]  }
 0x8ce   : > { %6345 = vmatpush2.bf16.msra.mxu1 %v11576_v33  ;;  %v11657_v33 = vld [vmem:[%s13018_s12 + $0x7f8] ss:$48 sps:$4 sm:$0xff]  }
 0x8cf   : > { %6411 = vmatpush1.bf16.msra.mxu0 %v11579_v18  ;;  %6346 = vmatprep.subr.bf16.mxu1 %v11584_v21  ;;  %v11662_v18 = vld [vmem:[%s13018_s12 + $0x19c] ss:$48 sps:$4 sm:$0xff]  }
 0x8d0   : > { %6412 = vmatprep.subr.bf16.mxu0 %v11587_v19  ;;  %v11665_v21 = vld [vmem:[%s13018_s12 + $0x79c] ss:$48 sps:$4 sm:$0xff]   ;;  %v11660_v19 = vld [vmem:[%s13018_s12 + $0x198] ss:$48 sps:$4 sm:$0xff]  }
 0x8d2   : > { %6347 = vmatpush2.bf16.msra.mxu1 %v11582_v34  ;;  %v11663_v34 = vld [vmem:[%s13018_s12 + $0x798] ss:$48 sps:$4 sm:$0xff]  }
 0x8d3   : > { %6413 = vmatpush1.bf16.msra.mxu0 %v11585_v24  ;;  %6348 = vmatprep.subr.bf16.mxu1 %v11590_v25  ;;  %v11668_v24 = vld [vmem:[%s13018_s12 + $0x13c] ss:$48 sps:$4 sm:$0xff]  }
 0x8d4   : > { %6414 = vmatprep.subr.bf16.mxu0 %v11593_v26  ;;  %v11671_v25 = vld [vmem:[%s13018_s12 + $0x73c] ss:$48 sps:$4 sm:$0xff]   ;;  %v11666_v26 = vld [vmem:[%s13018_s12 + $0x138] ss:$48 sps:$4 sm:$0xff]  }
 0x8d6   : > { %6349 = vmatpush2.bf16.msra.mxu1 %v11588_v27  ;;  %v11669_v27 = vld [vmem:[%s13018_s12 + $0x738] ss:$48 sps:$4 sm:$0xff]  }
 0x8d7   : > { %6415 = vmatpush1.bf16.msra.mxu0 %v11591_v28  ;;  %6441 = vmatprep.subr.bf16.mxu1 %v11596_v29  ;;  %v11674_v28 = vld [vmem:[%s13018_s12 + $0xdc] ss:$48 sps:$4 sm:$0xff]  }
 0x8d8   : > { %6416 = vmatprep.subr.bf16.mxu0 %v11599_v30  ;;  %v11677_v29 = vld [vmem:[%s13018_s12 + $0x6dc] ss:$48 sps:$4 sm:$0xff]   ;;  %v11672_v30 = vld [vmem:[%s13018_s12 + $0xd8] ss:$48 sps:$4 sm:$0xff]  }
 0x8d9   : > { %6351 = vmatmul.mubr.bf16.vlgmr.msra.gmra.mxu1 %v13690_v23 }
 0x8da   : > { %6442 = vmatpush1.bf16.msra.mxu1 %v11594_v5  ;;  %6473 = vmatprep.mubr.bf16.mxu1 %v12676_v61  ;;  %v11675_v5 = vld [vmem:[%s13018_s12 + $0x6d8] ss:$48 sps:$4 sm:$0xff]  }
 0x8db   : > { %6417 = vmatpush2.bf16.msra.mxu0 %v11597_v49  ;;  %6443 = vmatprep.subr.bf16.mxu1 %v11602_v31  ;;  %v11680_v49 = vld [vmem:[%s13018_s12 + $0x7c] ss:$48 sps:$4 sm:$0xff]  }
 0x8dc   : > { %6418 = vmatprep.subr.bf16.mxu0 %v11605_v32  ;;  %v11683_v31 = vld [vmem:[%s13018_s12 + $0x67c] ss:$48 sps:$4 sm:$0xff]   ;;  %v11678_v32 = vld [vmem:[%s13018_s12 + $0x78] ss:$48 sps:$4 sm:$0xff]  }
 0x8de   : > { %6444 = vmatpush1.bf16.msra.mxu1 %v11600_v36  ;;  %v11681_v36 = vld [vmem:[%s13018_s12 + $0x678] ss:$48 sps:$4 sm:$0xff]  }
 0x8df   : > { %6419 = vmatpush2.bf16.msra.mxu0 %v11603_v37  ;;  %6445 = vmatprep.subr.bf16.mxu1 %v11608_v59  ;;  %v11686_v37 = vld [vmem:[%s13018_s12 + $0x1c] ss:$48 sps:$4 sm:$0xff]  }
 0x8e0   : > { %6420 = vmatprep.subr.bf16.mxu0 %v11611_v38  ;;  %v11689_v59 = vld [vmem:[%s13018_s12 + $0x61c] ss:$48 sps:$4 sm:$0xff]   ;;  %v11684_v38 = vld [vmem:[%s13018_s12 + $0x18] ss:$48 sps:$4 sm:$0xff]  }
 0x8e2   : > { %6446 = vmatpush1.bf16.msra.mxu1 %v11606_v39  ;;  %v11687_v39 = vld [vmem:[%s13018_s12 + $0x618] ss:$48 sps:$4 sm:$0xff]  }
 0x8e3   : > { %6421 = vmatpush2.bf16.msra.mxu0 %v11609_v40  ;;  %6447 = vmatprep.subr.bf16.mxu1 %v11614_v41  ;;  %v11692_v40 = vld [vmem:[%s13018_s12 + $0x5bc] ss:$48 sps:$4 sm:$0xff]   ;;  %v11695_v41 = vld [vmem:[%s13018_s12 + $0x2c4] ss:$48 sps:$4 sm:$0xff]  }
 0x8e4   : > { %6422 = vmatprep.subr.bf16.mxu0 %v11617_v42  ;;  %v11690_v42 = vld [vmem:[%s13018_s12 + $0x5b8] ss:$48 sps:$4 sm:$0xff]  }
 0x8e6   : > { %6448 = vmatpush1.bf16.msra.mxu1 %v11612_v43  ;;  %v11693_v43 = vld [vmem:[%s13018_s12 + $0x2c0] ss:$48 sps:$4 sm:$0xff]  }
 0x8e7   : > { %6423 = vmatpush2.bf16.msra.mxu0 %v11615_v44  ;;  %6449 = vmatprep.subr.bf16.mxu1 %v11620_v45  ;;  %v11698_v44 = vld [vmem:[%s13018_s12 + $0x55c] ss:$48 sps:$4 sm:$0xff]   ;;  %v11701_v45 = vld [vmem:[%s13018_s12 + $0x264] ss:$48 sps:$4 sm:$0xff]  }
 0x8e8   : > { %6424 = vmatprep.subr.bf16.mxu0 %v11623_v48  ;;  %v11696_v48 = vld [vmem:[%s13018_s12 + $0x558] ss:$48 sps:$4 sm:$0xff]  }
 0x8ea   : > { %6450 = vmatpush1.bf16.msra.mxu1 %v11618_v47  ;;  %v11699_v47 = vld [vmem:[%s13018_s12 + $0x260] ss:$48 sps:$4 sm:$0xff]  }
 0x8eb   : > { %6425 = vmatpush2.bf16.msra.mxu0 %v11621_v50  ;;  %6451 = vmatprep.subr.bf16.mxu1 %v11626_v51  ;;  %v11704_v50 = vld [vmem:[%s13018_s12 + $0x4fc] ss:$48 sps:$4 sm:$0xff]   ;;  %v11707_v51 = vld [vmem:[%s13018_s12 + $0x204] ss:$48 sps:$4 sm:$0xff]  }
 0x8ec   : > { %6426 = vmatprep.subr.bf16.mxu0 %v11629_v52  ;;  %v11702_v52 = vld [vmem:[%s13018_s12 + $0x4f8] ss:$48 sps:$4 sm:$0xff]  }
 0x8ee   : > { %6452 = vmatpush1.bf16.msra.mxu1 %v11624_v53  ;;  %v11705_v53 = vld [vmem:[%s13018_s12 + $0x200] ss:$48 sps:$4 sm:$0xff]  }
 0x8ef   : > { %6427 = vmatpush2.bf16.msra.mxu0 %v11627_v54  ;;  %6453 = vmatprep.subr.bf16.mxu1 %v11632_v55  ;;  %v11710_v54 = vld [vmem:[%s13018_s12 + $0x49c] ss:$48 sps:$4 sm:$0xff]   ;;  %v11713_v55 = vld [vmem:[%s13018_s12 + $0x1a4] ss:$48 sps:$4 sm:$0xff]  }
 0x8f0   : > { %6428 = vmatprep.subr.bf16.mxu0 %v11635_v35  ;;  %v11708_v35 = vld [vmem:[%s13018_s12 + $0x498] ss:$48 sps:$4 sm:$0xff]  }
 0x8f2   : > { %6454 = vmatpush1.bf16.msra.mxu1 %v11630_v56  ;;  %v11711_v56 = vld [vmem:[%s13018_s12 + $0x1a0] ss:$48 sps:$4 sm:$0xff]  }
 0x8f3   : > { %6429 = vmatpush2.bf16.msra.mxu0 %v11633_v57  ;;  %6455 = vmatprep.subr.bf16.mxu1 %v11638_v58  ;;  %v11716_v57 = vld [vmem:[%s13018_s12 + $0x43c] ss:$48 sps:$4 sm:$0xff]   ;;  %v11719_v58 = vld [vmem:[%s13018_s12 + $0x144] ss:$48 sps:$4 sm:$0xff]  }
 0x8f4   : > { %6430 = vmatprep.subr.bf16.mxu0 %v11641_v60  ;;  %v11714_v60 = vld [vmem:[%s13018_s12 + $0x438] ss:$48 sps:$4 sm:$0xff]  }
 0x8f6   : > { %6456 = vmatpush1.bf16.msra.mxu1 %v11636_v63  ;;  %v11717_v63 = vld [vmem:[%s13018_s12 + $0x140] ss:$48 sps:$4 sm:$0xff]  }
 0x8f7   : > { %6431 = vmatpush2.bf16.msra.mxu0 %v11639_v0  ;;  %6482 = vmatprep.subr.bf16.mxu1 %v11644_v1  ;;  %v11722_v0 = vld [vmem:[%s13018_s12 + $0x3dc] ss:$48 sps:$4 sm:$0xff]   ;;  %v11725_v1 = vld [vmem:[%s13018_s12 + $0xe4] ss:$48 sps:$4 sm:$0xff]  }
 0x8f8   : > { %6523 = vmatprep.subr.bf16.mxu0 %v11647_v2  ;;  %v11720_v2 = vld [vmem:[%s13018_s12 + $0x3d8] ss:$48 sps:$4 sm:$0xff]  }
 0x8f9   : > { %6474 = vmatmul.mubr.bf16.vlgmr.msra.gmra.mxu1 %v13687_v20 }
 0x8fa   : > { %6433 = vmatmul.mubr.bf16.vlgmr.msra.gmra.mxu0 %v13690_v23  ;;  %6483 = vmatpush1.bf16.msra.mxu1 %v11642_v3  ;;  %v11723_v3 = vld [vmem:[%s13018_s12 + $0xe0] ss:$48 sps:$4 sm:$0xff]  }
 0x8fb   : > { %6514 = vmatprep.mubr.bf16.mxu1 %v13685_v22  ;;  %6524 = vmatpush1.bf16.msra.mxu0 %v11645_v4  ;;  %v11728_v4 = vld [vmem:[%s13018_s12 + $0x37c] ss:$48 sps:$4 sm:$0xff]  }
 0x8fc   : > { %6484 = vmatprep.subr.bf16.mxu1 %v11650_v6  ;;  %6525 = vmatprep.subr.bf16.mxu0 %v11653_v7  ;;  %v11731_v6 = vld [vmem:[%s13018_s12 + $0x84] ss:$48 sps:$4 sm:$0xff]   ;;  %v11726_v7 = vld [vmem:[%s13018_s12 + $0x378] ss:$48 sps:$4 sm:$0xff]  }
 0x8fd   : > { %6555 = vmatprep.mubr.bf16.mxu0 %v12676_v61 }
 0x8fe   : > { %6485 = vmatpush1.bf16.msra.mxu1 %v11648_v10  ;;  %v11729_v10 = vld [vmem:[%s13018_s12 + $0x80] ss:$48 sps:$4 sm:$0xff]  }
 0x8ff   : > { %6526 = vmatpush1.bf16.msra.mxu0 %v11651_v14  ;;  %6486 = vmatprep.subr.bf16.mxu1 %v11656_v15  ;;  %v11734_v14 = vld [vmem:[%s13018_s12 + $0x31c] ss:$48 sps:$4 sm:$0xff]   ;;  %v11737_v15 = vld [vmem:[%s13018_s12 + $0x24] ss:$48 sps:$4 sm:$0xff]  }
 0x900   : > { %6527 = vmatprep.subr.bf16.mxu0 %v11659_v17  ;;  %v11732_v17 = vld [vmem:[%s13018_s12 + $0x318] ss:$48 sps:$4 sm:$0xff]  }
 0x902   : > { %6487 = vmatpush1.bf16.msra.mxu1 %v11654_v8  ;;  %v11735_v8 = vld [vmem:[%s13018_s12 + $0x20] ss:$48 sps:$4 sm:$0xff]  }
 0x903   : > { %6528 = vmatpush1.bf16.msra.mxu0 %v11657_v33  ;;  %6488 = vmatprep.subr.bf16.mxu1 %v11662_v18  ;;  %v11740_v33 = vld [vmem:[%s13018_s12 + $0x8c4] ss:$48 sps:$4 sm:$0xff]  }
 0x904   : > { %6529 = vmatprep.subr.bf16.mxu0 %v11665_v21  ;;  %v11743_v18 = vld [vmem:[%s13018_s12 + $0x5c4] ss:$48 sps:$4 sm:$0xff]   ;;  %v11738_v21 = vld [vmem:[%s13018_s12 + $0x8c0] ss:$48 sps:$4 sm:$0xff]  }
 0x906   : > { %6489 = vmatpush1.bf16.msra.mxu1 %v11660_v19  ;;  %v11741_v19 = vld [vmem:[%s13018_s12 + $0x5c0] ss:$48 sps:$4 sm:$0xff]  }
 0x907   : > { %6530 = vmatpush1.bf16.msra.mxu0 %v11663_v34  ;;  %6490 = vmatprep.subr.bf16.mxu1 %v11668_v24  ;;  %v11746_v34 = vld [vmem:[%s13018_s12 + $0x864] ss:$48 sps:$4 sm:$0xff]  }
 0x908   : > { %6531 = vmatprep.subr.bf16.mxu0 %v11671_v25  ;;  %v11749_v24 = vld [vmem:[%s13018_s12 + $0x564] ss:$48 sps:$4 sm:$0xff]   ;;  %v11744_v25 = vld [vmem:[%s13018_s12 + $0x860] ss:$48 sps:$4 sm:$0xff]  }
 0x90a   : > { %6491 = vmatpush1.bf16.msra.mxu1 %v11666_v26  ;;  %v11747_v26 = vld [vmem:[%s13018_s12 + $0x560] ss:$48 sps:$4 sm:$0xff]  }
 0x90b   : > { %6532 = vmatpush1.bf16.msra.mxu0 %v11669_v27  ;;  %6492 = vmatprep.subr.bf16.mxu1 %v11674_v28  ;;  %v11752_v27 = vld [vmem:[%s13018_s12 + $0x804] ss:$48 sps:$4 sm:$0xff]  }
 0x90c   : > { %6533 = vmatprep.subr.bf16.mxu0 %v11677_v29  ;;  %v11755_v28 = vld [vmem:[%s13018_s12 + $0x504] ss:$48 sps:$4 sm:$0xff]   ;;  %v11750_v29 = vld [vmem:[%s13018_s12 + $0x800] ss:$48 sps:$4 sm:$0xff]  }
 0x90e   : > { %6493 = vmatpush1.bf16.msra.mxu1 %v11672_v30  ;;  %v11753_v30 = vld [vmem:[%s13018_s12 + $0x500] ss:$48 sps:$4 sm:$0xff]  }
 0x90f   : > { %6534 = vmatpush1.bf16.msra.mxu0 %v11675_v5  ;;  %6494 = vmatprep.subr.bf16.mxu1 %v11680_v49  ;;  %v11758_v5 = vld [vmem:[%s13018_s12 + $0x7a4] ss:$48 sps:$4 sm:$0xff]  }
 0x910   : > { %6535 = vmatprep.subr.bf16.mxu0 %v11683_v31  ;;  %v11761_v49 = vld [vmem:[%s13018_s12 + $0x4a4] ss:$48 sps:$4 sm:$0xff]   ;;  %v11756_v31 = vld [vmem:[%s13018_s12 + $0x7a0] ss:$48 sps:$4 sm:$0xff]  }
 0x912   : > { %6495 = vmatpush1.bf16.msra.mxu1 %v11678_v32  ;;  %v11759_v32 = vld [vmem:[%s13018_s12 + $0x4a0] ss:$48 sps:$4 sm:$0xff]  }
 0x913   : > { %6536 = vmatpush1.bf16.msra.mxu0 %v11681_v36  ;;  %6496 = vmatprep.subr.bf16.mxu1 %v11686_v37  ;;  %v11764_v36 = vld [vmem:[%s13018_s12 + $0x744] ss:$48 sps:$4 sm:$0xff]  }
 0x914   : > { %6537 = vmatprep.subr.bf16.mxu0 %v11689_v59  ;;  %v11767_v37 = vld [vmem:[%s13018_s12 + $0x444] ss:$48 sps:$4 sm:$0xff]   ;;  %v11762_v59 = vld [vmem:[%s13018_s12 + $0x740] ss:$48 sps:$4 sm:$0xff]  }
 0x916   : > { %6497 = vmatpush1.bf16.msra.mxu1 %v11684_v38  ;;  %v11765_v38 = vld [vmem:[%s13018_s12 + $0x440] ss:$48 sps:$4 sm:$0xff]  }
 0x917   : > { %6538 = vmatpush1.bf16.msra.mxu0 %v11687_v39  ;;  %6498 = vmatprep.subr.bf16.mxu1 %v11692_v40  ;;  %v11770_v39 = vld [vmem:[%s13018_s12 + $0x6e4] ss:$48 sps:$4 sm:$0xff]  }
 0x918   : > { %6564 = vmatprep.subr.bf16.mxu0 %v11695_v41  ;;  %v11773_v40 = vld [vmem:[%s13018_s12 + $0x3e4] ss:$48 sps:$4 sm:$0xff]   ;;  %v11768_v41 = vld [vmem:[%s13018_s12 + $0x6e0] ss:$48 sps:$4 sm:$0xff]  }
 0x91a   : > { %6499 = vmatpush2.bf16.msra.mxu1 %v11690_v42  ;;  %6556 = vmatmul.mubr.bf16.vlgmr.msra.gmra.mxu0 %v13687_v20  ;;  %v11771_v42 = vld [vmem:[%s13018_s12 + $0x3e0] ss:$48 sps:$4 sm:$0xff]  }
 0x91b   : > { %6565 = vmatpush1.bf16.msra.mxu0 %v11693_v43  ;;  %6596 = vmatprep.mubr.bf16.mxu0 %v13685_v22  ;;  %v11776_v43 = vld [vmem:[%s13018_s12 + $0x684] ss:$48 sps:$4 sm:$0xff]  }
 0x91c   : > { %6500 = vmatprep.subr.bf16.mxu1 %v11698_v44  ;;  %6566 = vmatprep.subr.bf16.mxu0 %v11701_v45  ;;  %v11779_v44 = vld [vmem:[%s13018_s12 + $0x384] ss:$48 sps:$4 sm:$0xff]   ;;  %v11774_v45 = vld [vmem:[%s13018_s12 + $0x680] ss:$48 sps:$4 sm:$0xff]  }
 0x91e   : > { %6501 = vmatpush2.bf16.msra.mxu1 %v11696_v48  ;;  %v11777_v48 = vld [vmem:[%s13018_s12 + $0x380] ss:$48 sps:$4 sm:$0xff]  }
 0x91f   : > { %6567 = vmatpush1.bf16.msra.mxu0 %v11699_v47  ;;  %6502 = vmatprep.subr.bf16.mxu1 %v11704_v50  ;;  %v11782_v47 = vld [vmem:[%s13018_s12 + $0x624] ss:$48 sps:$4 sm:$0xff]  }
 0x920   : > { %6568 = vmatprep.subr.bf16.mxu0 %v11707_v51  ;;  %v11785_v50 = vld [vmem:[%s13018_s12 + $0x324] ss:$48 sps:$4 sm:$0xff]   ;;  %v11780_v51 = vld [vmem:[%s13018_s12 + $0x620] ss:$48 sps:$4 sm:$0xff]  }
 0x922   : > { %6503 = vmatpush2.bf16.msra.mxu1 %v11702_v52  ;;  %v11783_v52 = vld [vmem:[%s13018_s12 + $0x320] ss:$48 sps:$4 sm:$0xff]  }
 0x923   : > { %6569 = vmatpush1.bf16.msra.mxu0 %v11705_v53  ;;  %6504 = vmatprep.subr.bf16.mxu1 %v11710_v54  ;;  %v11788_v53 = vld [vmem:[%s13018_s12 + $0x2cc] ss:$48 sps:$4 sm:$0xff]  }
 0x924   : > { %6570 = vmatprep.subr.bf16.mxu0 %v11713_v55  ;;  %v11791_v54 = vld [vmem:[%s13018_s12 + $0x8cc] ss:$48 sps:$4 sm:$0xff]  }
 0x925   : > { %v13900_v55 = vld [vmem:[%s13025_s23] sm:$0xff] }
 0x926   : > { %6505 = vmatpush2.bf16.msra.mxu1 %v11708_v35  ;;  %v11786_v35 = vld [vmem:[%s13018_s12 + $0x2c8] ss:$48 sps:$4 sm:$0xff]  }
 0x927   : > { %6571 = vmatpush1.bf16.msra.mxu0 %v11711_v56  ;;  %6506 = vmatprep.subr.bf16.mxu1 %v11716_v57  ;;  %v11789_v56 = vld [vmem:[%s13018_s12 + $0x8c8] ss:$48 sps:$4 sm:$0xff]   ;;  %v4739_v57 = vrot.slane %v13900_v55, %v13126_v13 }
 0x928   : > { %6572 = vmatprep.subr.bf16.mxu0 %v11719_v58  ;;  %v11794_v58 = vld [vmem:[%s13018_s12 + $0x26c] ss:$48 sps:$4 sm:$0xff]  }
 0x92a   : > { %6507 = vmatpush2.bf16.msra.mxu1 %v11714_v60  ;;  %v11797_v60 = vld [vmem:[%s13018_s12 + $0x86c] ss:$48 sps:$4 sm:$0xff]  }
 0x92b   : > { %6573 = vmatpush1.bf16.msra.mxu0 %v11717_v63  ;;  %6508 = vmatprep.subr.bf16.mxu1 %v11722_v0 }
 0x92c   : > { %6574 = vmatprep.subr.bf16.mxu0 %v11725_v1  ;;  %v11792_v1 = vld [vmem:[%s13018_s12 + $0x268] ss:$48 sps:$4 sm:$0xff]  }
 0x92e   : > { %6509 = vmatpush2.bf16.msra.mxu1 %v11720_v2 }
 0x92f   : > { %6575 = vmatpush1.bf16.msra.mxu0 %v11723_v3  ;;  %6510 = vmatprep.subr.bf16.mxu1 %v11728_v4  ;;  %v11795_v4 = vld [vmem:[%s13018_s12 + $0x868] ss:$48 sps:$4 sm:$0xff]  }
 0x930   : > { %6576 = vmatprep.subr.bf16.mxu0 %v11731_v6  ;;  %v11800_v6 = vld [vmem:[%s13018_s12 + $0x20c] ss:$48 sps:$4 sm:$0xff]  }
 0x932   : > { %6511 = vmatpush2.bf16.msra.mxu1 %v11726_v7 }
 0x933   : > { %6577 = vmatpush1.bf16.msra.mxu0 %v11729_v10  ;;  %6512 = vmatprep.subr.bf16.mxu1 %v11734_v14  ;;  %v11803_v10 = vld [vmem:[%s13018_s12 + $0x80c] ss:$48 sps:$4 sm:$0xff]  }
 0x934   : > { %6578 = vmatprep.subr.bf16.mxu0 %v11737_v15 }
 0x936   : > { %6513 = vmatpush2.bf16.msra.mxu1 %v11732_v17  ;;  %v11798_v17 = vld [vmem:[%s13018_s12 + $0x208] ss:$48 sps:$4 sm:$0xff]  }
 0x937   : > { %6579 = vmatpush1.bf16.msra.mxu0 %v11735_v8  ;;  %6605 = vmatprep.subr.bf16.mxu1 %v11740_v33  ;;  %v11801_v33 = vld [vmem:[%s13018_s12 + $0x808] ss:$48 sps:$4 sm:$0xff]  }
 0x938   : > { %6580 = vmatprep.subr.bf16.mxu0 %v11743_v18  ;;  %v11806_v18 = vld [vmem:[%s13018_s12 + $0x1ac] ss:$48 sps:$4 sm:$0xff]  }
 0x939   : > { %6515 = vmatmul.mubr.bf16.vlgmr.msra.gmra.mxu1 %v13690_v23 }
 0x93a   : > { %6606 = vmatpush1.bf16.msra.mxu1 %v11738_v21  ;;  %6637 = vmatprep.mubr.bf16.mxu1 %v12676_v61 }
 0x93b   : > { %6581 = vmatpush2.bf16.msra.mxu0 %v11741_v19  ;;  %6607 = vmatprep.subr.bf16.mxu1 %v11746_v34  ;;  %v11809_v19 = vld [vmem:[%s13018_s12 + $0x7ac] ss:$48 sps:$4 sm:$0xff]   ;;  %v11807_v34 = vld [vmem:[%s13018_s12 + $0x7a8] ss:$48 sps:$4 sm:$0xff]  }
 0x93c   : > { %6582 = vmatprep.subr.bf16.mxu0 %v11749_v24  ;;  %v11812_v24 = vld [vmem:[%s13018_s12 + $0x14c] ss:$48 sps:$4 sm:$0xff]  }
 0x93e   : > { %6608 = vmatpush1.bf16.msra.mxu1 %v11744_v25  ;;  %v11815_v25 = vld [vmem:[%s13018_s12 + $0x74c] ss:$48 sps:$4 sm:$0xff]  }
 0x93f   : > { %6583 = vmatpush2.bf16.msra.mxu0 %v11747_v26  ;;  %6609 = vmatprep.subr.bf16.mxu1 %v11752_v27  ;;  %v11810_v26 = vld [vmem:[%s13018_s12 + $0x148] ss:$48 sps:$4 sm:$0xff]  }
 0x940   : > { %6584 = vmatprep.subr.bf16.mxu0 %v11755_v28  ;;  %v11813_v27 = vld [vmem:[%s13018_s12 + $0x748] ss:$48 sps:$4 sm:$0xff]   ;;  %v11818_v28 = vld [vmem:[%s13018_s12 + $0xec] ss:$48 sps:$4 sm:$0xff]  }
 0x942   : > { %6610 = vmatpush1.bf16.msra.mxu1 %v11750_v29  ;;  %v11821_v29 = vld [vmem:[%s13018_s12 + $0x6ec] ss:$48 sps:$4 sm:$0xff]  }
 0x943   : > { %6585 = vmatpush2.bf16.msra.mxu0 %v11753_v30  ;;  %6611 = vmatprep.subr.bf16.mxu1 %v11758_v5  ;;  %v4743_v30 = vrot.slane %v13900_v55, %v13120_v11  ;;  %v11816_v5 = vld [vmem:[%s13018_s12 + $0xe8] ss:$48 sps:$4 sm:$0xff]  }
 0x944   : > { %6586 = vmatprep.subr.bf16.mxu0 %v11761_v49  ;;  %v11819_v49 = vld [vmem:[%s13018_s12 + $0x6e8] ss:$48 sps:$4 sm:$0xff]  }
 0x946   : > { %6612 = vmatpush1.bf16.msra.mxu1 %v11756_v31  ;;  %v11824_v31 = vld [vmem:[%s13018_s12 + $0x8c] ss:$48 sps:$4 sm:$0xff]  }
 0x947   : > { %6587 = vmatpush2.bf16.msra.mxu0 %v11759_v32  ;;  %6613 = vmatprep.subr.bf16.mxu1 %v11764_v36  ;;  %v11827_v32 = vld [vmem:[%s13018_s12 + $0x68c] ss:$48 sps:$4 sm:$0xff]  }
 0x948   : > { %6588 = vmatprep.subr.bf16.mxu0 %v11767_v37  ;;  %v11822_v37 = vld [vmem:[%s13018_s12 + $0x88] ss:$48 sps:$4 sm:$0xff]  }
 0x94a   : > { %6614 = vmatpush1.bf16.msra.mxu1 %v11762_v59  ;;  %v11825_v59 = vld [vmem:[%s13018_s12 + $0x688] ss:$48 sps:$4 sm:$0xff]  }
 0x94b   : > { %6589 = vmatpush2.bf16.msra.mxu0 %v11765_v38  ;;  %6615 = vmatprep.subr.bf16.mxu1 %v11770_v39  ;;  %v11830_v38 = vld [vmem:[%s13018_s12 + $0x2c] ss:$48 sps:$4 sm:$0xff]  }
 0x94c   : > { %6590 = vmatprep.subr.bf16.mxu0 %v11773_v40  ;;  %v11833_v39 = vld [vmem:[%s13018_s12 + $0x62c] ss:$48 sps:$4 sm:$0xff]  }
 0x94e   : > { %6616 = vmatpush1.bf16.msra.mxu1 %v11768_v41  ;;  %v11828_v41 = vld [vmem:[%s13018_s12 + $0x28] ss:$48 sps:$4 sm:$0xff]  }
 0x94f   : > { %6591 = vmatpush2.bf16.msra.mxu0 %v11771_v42  ;;  %6617 = vmatprep.subr.bf16.mxu1 %v11776_v43  ;;  %v11831_v42 = vld [vmem:[%s13018_s12 + $0x628] ss:$48 sps:$4 sm:$0xff]   ;;  %v11836_v43 = vld [vmem:[%s13018_s12 + $0x5cc] ss:$48 sps:$4 sm:$0xff]  }
 0x950   : > { %6592 = vmatprep.subr.bf16.mxu0 %v11779_v44  ;;  %v11839_v44 = vld [vmem:[%s13027_s21 + $0xac] ss:$12 sps:$4 sm:$0xff]  }
 0x952   : > { %6618 = vmatpush1.bf16.msra.mxu1 %v11774_v45 }
 0x953   : > { %6593 = vmatpush2.bf16.msra.mxu0 %v11777_v48  ;;  %6619 = vmatprep.subr.bf16.mxu1 %v11782_v47  ;;  %v11834_v48 = vld [vmem:[%s13018_s12 + $0x5c8] ss:$48 sps:$4 sm:$0xff]   ;;  %v11837_v47 = vld [vmem:[%s13027_s21 + $0xa8] ss:$12 sps:$4 sm:$0xff]  }
 0x954   : > { %6594 = vmatprep.subr.bf16.mxu0 %v11785_v50  ;;  %v11842_v50 = vld [vmem:[%s13018_s12 + $0x56c] ss:$48 sps:$4 sm:$0xff]  }
 0x956   : > { %6620 = vmatpush1.bf16.msra.mxu1 %v11780_v51  ;;  %v11845_v51 = vld [vmem:[%s13027_s21 + $0x94] ss:$12 sps:$4 sm:$0xff]  }
 0x957   : > { %6595 = vmatpush2.bf16.msra.mxu0 %v11783_v52  ;;  %6646 = vmatprep.subr.bf16.mxu1 %v11788_v53 }
 0x958   : > { %6687 = vmatprep.subr.bf16.mxu0 %v11791_v54  ;;  %v11840_v54 = vld [vmem:[%s13018_s12 + $0x568] ss:$48 sps:$4 sm:$0xff]  }
 0x959   : > { %6638 = vmatmul.mubr.bf16.vlgmr.msra.gmra.mxu1 %v13687_v20  ;;  %v6311_v63 = vpop.f32.mrf.mxu1 }
 0x95a   : > { %6597 = vmatmul.mubr.bf16.vlgmr.msra.gmra.mxu0 %v13690_v23  ;;  %6647 = vmatpush1.bf16.msra.mxu1 %v11786_v35  ;;  %v6270_v0 = vpop.f32.mrf.mxu0  ;;  %v11843_v35 = vld [vmem:[%s13027_s21 + $0x90] ss:$12 sps:$4 sm:$0xff]  }
 0x95b   : > { %6678 = vmatprep.mubr.bf16.mxu1 %v13685_v22  ;;  %v6271_v2 = vadd.f32 %v6270_v0, %v4739_v57  ;;  %6688 = vmatpush1.bf16.msra.mxu0 %v11789_v56  ;;  %v6313_v3 = vpop.f32.mrf.mxu1  ;;  %v11848_v56 = vld [vmem:[%s13018_s12 + $0x50c] ss:$48 sps:$4 sm:$0xff]  }
 0x95c   : > { %v6272_v7 = vpop.f32.mrf.mxu0  ;;  %6648 = vmatprep.subr.bf16.mxu1 %v11794_v58  ;;  %6689 = vmatprep.subr.bf16.mxu0 %v11797_v60  ;;  %v11851_v58 = vld [vmem:[%s13027_s21 + $0x7c] ss:$12 sps:$4 sm:$0xff]   ;;  %v11854_v0 = vld [vmem:[%s13018_s12 + $0x4ac] ss:$48 sps:$4 sm:$0xff]  }
 0x95d   : > { %v13915_v14 = vadd.f32 %v6311_v63, %v6271_v2  ;;  %v6315_v15 = vpop.f32.mrf.mxu1  ;;  %6719 = vmatprep.mubr.bf16.mxu0 %v12676_v61  ;;  %v11804_v61 = vld [vmem:[%s13018_s12 + $0x1a8] ss:$48 sps:$4 sm:$0xff]   ;;  %v6273_v36 = vadd.f32 %v6272_v7, %v4743_v30  ;;  %v11849_v63 = vld [vmem:[%s13027_s21 + $0x78] ss:$12 sps:$4 sm:$0xff]   ;;  %v11882_v30 = vld [vmem:[%s13027_s21 + $0x228] ss:$12 sps:$4 sm:$0xff]  }
 0x95e   : > { %6649 = vmatpush1.bf16.msra.mxu1 %v11792_v1  ;;  %v6274_v22 = vpop.f32.mrf.mxu0  ;;  %v11857_v2 = vld [vmem:[%s13027_s21 + $0x64] ss:$12 sps:$4 sm:$0xff]   ;;  %v11863_v7 = vld [vmem:[%s13027_s21 + $0x4c] ss:$12 sps:$4 sm:$0xff]   ;;  %v11861_v15 = vld [vmem:[%s13027_s21 + $0x48] ss:$12 sps:$4 sm:$0xff]  }
 0x95f   : > { %6690 = vmatpush1.bf16.msra.mxu0 %v11795_v4  ;;  %v6316_v8 = vpop.f32.mrf.mxu1  ;;  %6650 = vmatprep.subr.bf16.mxu1 %v11800_v6  ;;  %v6314_v40 = vadd.f32 %v6313_v3, %v6273_v36  ;;  %v11852_v3 = vld [vmem:[%s13018_s12 + $0x4a8] ss:$48 sps:$4 sm:$0xff]   ;;  %v11860_v6 = vld [vmem:[%s13018_s12 + $0x44c] ss:$48 sps:$4 sm:$0xff]  }
 0x960   : > { %v6275_v21 = vpop.f32.mrf.mxu0  ;;  %6691 = vmatprep.subr.bf16.mxu0 %v11803_v10  ;;  %v11855_v4 = vld [vmem:[%s13027_s21 + $0x60] ss:$12 sps:$4 sm:$0xff]   ;;  %v11866_v22 = vld [vmem:[%s13018_s12 + $0x3ec] ss:$48 sps:$4 sm:$0xff]  }
 0x961   : > { %v6729_v45 = vmax.f32 %v6314_v40, 0.0  ;;  %v11858_v10 = vld [vmem:[%s13018_s12 + $0x448] ss:$48 sps:$4 sm:$0xff]   ;;  %v11875_v21 = vld [vmem:[%s13027_s21 + $0x1c] ss:$12 sps:$4 sm:$0xff]  }
 0x962   : > { %6651 = vmatpush1.bf16.msra.mxu1 %v11798_v17  ;;  %v11869_v17 = vld [vmem:[%s13027_s21 + $0x34] ss:$12 sps:$4 sm:$0xff]  }
 0x963   : > { %6692 = vmatpush1.bf16.msra.mxu0 %v11801_v33  ;;  %6652 = vmatprep.subr.bf16.mxu1 %v11806_v18  ;;  %v13948_v52 = vpack.c.bf16 %v6729_v45, %v6729_v45  ;;  %v11864_v8 = vld [vmem:[%s13018_s12 + $0x3e8] ss:$48 sps:$4 sm:$0xff]   ;;  %v11872_v18 = vld [vmem:[%s13018_s12 + $0x38c] ss:$48 sps:$4 sm:$0xff]  }
 0x964   : > { %6693 = vmatprep.subr.bf16.mxu0 %v11809_v19  ;;  %v11867_v33 = vld [vmem:[%s13027_s21 + $0x30] ss:$12 sps:$4 sm:$0xff]   ;;  %v11897_v45 = vld [vmem:[%s13027_s21 + $0x138] ss:$12 sps:$4 sm:$0xff]  }
 0x965   : > { %v11870_v19 = vld [vmem:[%s13018_s12 + $0x388] ss:$48 sps:$4 sm:$0xff]  }
 0x966   : > { %6653 = vmatpush1.bf16.msra.mxu1 %v11804_v61  ;;  %v11873_v61 = vld [vmem:[%s13027_s21 + $0x18] ss:$12 sps:$4 sm:$0xff]  }
 0x967   : > { %6694 = vmatpush1.bf16.msra.mxu0 %v11807_v34  ;;  %6654 = vmatprep.subr.bf16.mxu1 %v11812_v24  ;;  %v11878_v34 = vld [vmem:[%s13018_s12 + $0x32c] ss:$48 sps:$4 sm:$0xff]  }
 0x968   : > { %6695 = vmatprep.subr.bf16.mxu0 %v11815_v25  ;;  %v11881_v24 = vld [vmem:[%s13027_s21 + $0x4] ss:$12 sps:$4 sm:$0xff]  }
 0x969   : > { %v11876_v25 = vld [vmem:[%s13018_s12 + $0x328] ss:$48 sps:$4 sm:$0xff]  }
 0x96a   : > { %6655 = vmatpush1.bf16.msra.mxu1 %v11810_v26  ;;  %v11879_v26 = vld [vmem:[%s13027_s21] ss:$12 sps:$4 sm:$0xff]  }
 0x96b   : > { %6696 = vmatpush1.bf16.msra.mxu0 %v11813_v27  ;;  %6656 = vmatprep.subr.bf16.mxu1 %v11818_v28  ;;  %v11884_v27 = vld [vmem:[%s13027_s21 + $0x22c] ss:$12 sps:$4 sm:$0xff]  }
 0x96c   : > { %6697 = vmatprep.subr.bf16.mxu0 %v11821_v29  ;;  %v11887_v28 = vld [vmem:[%s13027_s21 + $0x16c] ss:$12 sps:$4 sm:$0xff]   ;;  %v4750_v29 = vsub.s32 3, %v13115_v9 }
 0x96e   : > { %6657 = vmatpush1.bf16.msra.mxu1 %v11816_v5  ;;  %v11885_v5 = vld [vmem:[%s13027_s21 + $0x168] ss:$12 sps:$4 sm:$0xff]  }
 0x96f   : > { %6698 = vmatpush1.bf16.msra.mxu0 %v11819_v49  ;;  %6658 = vmatprep.subr.bf16.mxu1 %v11824_v31  ;;  %v11890_v49 = vld [vmem:[%s13027_s21 + $0x214] ss:$12 sps:$4 sm:$0xff]   ;;  %v4751_v31 = vrot.slane %v13900_v55, %v4750_v29 }
 0x970   : > { %6699 = vmatprep.subr.bf16.mxu0 %v11827_v32  ;;  %v11893_v32 = vld [vmem:[%s13027_s21 + $0x154] ss:$12 sps:$4 sm:$0xff]  }
 0x972   : > { %6659 = vmatpush1.bf16.msra.mxu1 %v11822_v37  ;;  %v11888_v37 = vld [vmem:[%s13027_s21 + $0x210] ss:$12 sps:$4 sm:$0xff]  }
 0x973   : > { %6700 = vmatpush1.bf16.msra.mxu0 %v11825_v59  ;;  %6660 = vmatprep.subr.bf16.mxu1 %v11830_v38  ;;  %v11891_v38 = vld [vmem:[%s13027_s21 + $0x150] ss:$12 sps:$4 sm:$0xff]  }
 0x974   : > { %6701 = vmatprep.subr.bf16.mxu0 %v11833_v39  ;;  %v11896_v39 = vld [vmem:[%s13027_s21 + $0x1fc] ss:$12 sps:$4 sm:$0xff]  }
 0x976   : > { %6661 = vmatpush1.bf16.msra.mxu1 %v11828_v41  ;;  %v11899_v41 = vld [vmem:[%s13027_s21 + $0x13c] ss:$12 sps:$4 sm:$0xff]  }
 0x977   : > { %6702 = vmatpush1.bf16.msra.mxu0 %v11831_v42  ;;  %6662 = vmatprep.subr.bf16.mxu1 %v11836_v43 }
 0x978   : > { %8689 = vmatprep.subr.bf16.mxu0 %v11839_v44 }
 0x97a   : > { %v13950_v53 = vpop.f32.mrf.mxu0  ;;  %6663 = vmatpush2.bf16.msra.mxu1 %v11834_v48  ;;  %6720 = vmatmul.mubr.bf16.vlgmr.msra.gmra.mxu0 %v13687_v20  ;;  %v11846_v20 = vld [vmem:[%s13018_s12 + $0x508] ss:$48 sps:$4 sm:$0xff]  }
 0x97b   : > { %8690 = vmatpush1.bf16.msra.mxu0 %v11837_v47  ;;  %8721 = vmatprep.mubr.bf16.mxu0 %v13948_v52  ;;  %v11902_v48 = vld [vmem:[%s13027_s21 + $0x1e4] ss:$12 sps:$4 sm:$0xff]  }
 0x97c   : > { %v13957_v57 = vpop.f32.mrf.mxu0  ;;  %6664 = vmatprep.subr.bf16.mxu1 %v11842_v50  ;;  %8691 = vmatprep.subr.bf16.mxu0 %v11845_v51  ;;  %v11905_v50 = vld [vmem:[%s13027_s21 + $0x124] ss:$12 sps:$4 sm:$0xff]  }
 0x97e   : > { %v6397_v60 = vpop.f32.mrf.mxu0  ;;  %6665 = vmatpush2.bf16.msra.mxu1 %v11840_v54  ;;  %v11900_v54 = vld [vmem:[%s13027_s21 + $0x1e0] ss:$12 sps:$4 sm:$0xff]  }
 0x97f   : > { %8692 = vmatpush1.bf16.msra.mxu0 %v11843_v35  ;;  %6666 = vmatprep.subr.bf16.mxu1 %v11848_v56  ;;  %v11903_v35 = vld [vmem:[%s13027_s21 + $0x120] ss:$12 sps:$4 sm:$0xff]   ;;  %v11909_v60 = vld [vmem:[%s13027_s21 + $0x108] ss:$12 sps:$4 sm:$0xff]  }
 0x980   : > { %v6398_v1 = vpop.f32.mrf.mxu0  ;;  %8693 = vmatprep.subr.bf16.mxu0 %v11851_v58  ;;  %v11908_v56 = vld [vmem:[%s13027_s21 + $0x1cc] ss:$12 sps:$4 sm:$0xff]   ;;  %v11906_v58 = vld [vmem:[%s13027_s21 + $0x1c8] ss:$12 sps:$4 sm:$0xff]  }
 0x981   : > { %v11915_v1 = vld [vmem:[%s13027_s21 + $0xf0] ss:$12 sps:$4 sm:$0xff]  }
 0x982   : > { %6667 = vmatpush2.bf16.msra.mxu1 %v11846_v20  ;;  %v11914_v20 = vld [vmem:[%s13027_s21 + $0x1b4] ss:$12 sps:$4 sm:$0xff]  }
 0x983   : > { %8694 = vmatpush1.bf16.msra.mxu0 %v11849_v63  ;;  %6668 = vmatprep.subr.bf16.mxu1 %v11854_v0  ;;  %v11917_v63 = vld [vmem:[%s13027_s21 + $0xf4] ss:$12 sps:$4 sm:$0xff]   ;;  %v11912_v0 = vld [vmem:[%s13027_s21 + $0x1b0] ss:$12 sps:$4 sm:$0xff]  }
 0x984   : > { %8695 = vmatprep.subr.bf16.mxu0 %v11857_v2  ;;  %v11920_v2 = vld [vmem:[%s13027_s21 + $0x19c] ss:$12 sps:$4 sm:$0xff]  }
 0x986   : > { %6669 = vmatpush2.bf16.msra.mxu1 %v11852_v3  ;;  %v11923_v3 = vld [vmem:[%s13027_s21 + $0xdc] ss:$12 sps:$4 sm:$0xff]  }
 0x987   : > { %8696 = vmatpush1.bf16.msra.mxu0 %v11855_v4  ;;  %6670 = vmatprep.subr.bf16.mxu1 %v11860_v6  ;;  %v11918_v4 = vld [vmem:[%s13027_s21 + $0x198] ss:$12 sps:$4 sm:$0xff]  }
 0x988   : > { %8697 = vmatprep.subr.bf16.mxu0 %v11863_v7  ;;  %v11921_v6 = vld [vmem:[%s13027_s21 + $0xd8] ss:$12 sps:$4 sm:$0xff]  }
 0x989   : > { %v11926_v7 = vld [vmem:[%s13027_s21 + $0x184] ss:$12 sps:$4 sm:$0xff]  }
 0x98a   : > { %6671 = vmatpush2.bf16.msra.mxu1 %v11858_v10  ;;  %v11929_v10 = vld [vmem:[%s13027_s21 + $0xc4] ss:$12 sps:$4 sm:$0xff]  }
 0x98b   : > { %8698 = vmatpush1.bf16.msra.mxu0 %v11861_v15  ;;  %6672 = vmatprep.subr.bf16.mxu1 %v11866_v22  ;;  %v11924_v15 = vld [vmem:[%s13027_s21 + $0x180] ss:$12 sps:$4 sm:$0xff]  }
 0x98c   : > { %8699 = vmatprep.subr.bf16.mxu0 %v11869_v17  ;;  %v11927_v22 = vld [vmem:[%s13027_s21 + $0xc0] ss:$12 sps:$4 sm:$0xff]  }
 0x98d   : > { %v11932_v17 = vld [vmem:[%s13027_s21 + $0x2ec] ss:$12 sps:$4 sm:$0xff]  }
 0x98e   : > { %6673 = vmatpush2.bf16.msra.mxu1 %v11864_v8  ;;  %v6728_v8 = vmax.f32 %v13915_v14, 0.0 }
 0x98f   : > { %8700 = vmatpush1.bf16.msra.mxu0 %v11867_v33  ;;  %6674 = vmatprep.subr.bf16.mxu1 %v11872_v18  ;;  %v11935_v33 = vld [vmem:[%s13027_s21 + $0x3ac] ss:$12 sps:$4 sm:$0xff]   ;;  %v4758_v18 = vsub.s32 5, %v13115_v9 }
 0x990   : > { %8701 = vmatprep.subr.bf16.mxu0 %v11875_v21  ;;  %v11930_v21 = vld [vmem:[%s13027_s21 + $0x2e8] ss:$12 sps:$4 sm:$0xff]  }
 0x991   : > { %v4759_v14 = vrot.slane %v13900_v55, %v4758_v18  ;;  %v11981_v18 = vld [vmem:[%s13027_s21 + $0x468] ss:$12 sps:$4 sm:$0xff]  }
 0x992   : > { %6675 = vmatpush2.bf16.msra.mxu1 %v11870_v19  ;;  %v11933_v19 = vld [vmem:[%s13027_s21 + $0x3a8] ss:$12 sps:$4 sm:$0xff]  }
 0x993   : > { %8702 = vmatpush1.bf16.msra.mxu0 %v11873_v61  ;;  %6676 = vmatprep.subr.bf16.mxu1 %v11878_v34  ;;  %v11938_v61 = vld [vmem:[%s13027_s21 + $0x2d4] ss:$12 sps:$4 sm:$0xff]   ;;  %v14032_v34 = vpack.c.bf16 %v6728_v8, %v6728_v8 }
 0x994   : > { %8703 = vmatprep.subr.bf16.mxu0 %v11881_v24  ;;  %v11941_v24 = vld [vmem:[%s13027_s21 + $0x394] ss:$12 sps:$4 sm:$0xff]  }
 0x995   : > { %v11978_v8 = vld [vmem:[%s13027_s21 + $0x528] ss:$12 sps:$4 sm:$0xff]  }
 0x996   : > { %6677 = vmatpush2.bf16.msra.mxu1 %v11876_v25 }
 0x997   : > { %8704 = vmatpush1.bf16.msra.mxu0 %v11879_v26  ;;  %8730 = vmatprep.subr.bf16.mxu1 %v11884_v27  ;;  %v11936_v27 = vld [vmem:[%s13027_s21 + $0x2d0] ss:$12 sps:$4 sm:$0xff]  }
 0x998   : > { %8705 = vmatprep.subr.bf16.mxu0 %v11887_v28 }
 0x999   : > { %v13992_v36 = vpop.f32.mrf.mxu1  ;;  %6679 = vmatmul.mubr.bf16.vlgmr.msra.gmra.mxu1 %v13690_v23  ;;  %v11894_v23 = vld [vmem:[%s13027_s21 + $0x1f8] ss:$12 sps:$4 sm:$0xff]  }
 0x99a   : > { %8731 = vmatpush1.bf16.msra.mxu1 %v11882_v30  ;;  %v11939_v30 = vld [vmem:[%s13027_s21 + $0x390] ss:$12 sps:$4 sm:$0xff]  }
 0x99b   : > { %v6354_v59 = vpop.f32.mrf.mxu1  ;;  %8706 = vmatpush2.bf16.msra.mxu0 %v11885_v5  ;;  %8732 = vmatprep.subr.bf16.mxu1 %v11890_v49  ;;  %v11944_v5 = vld [vmem:[%s13027_s21 + $0x2bc] ss:$12 sps:$4 sm:$0xff]  }
 0x99c   : > { %v6355_v40 = vadd.f32 %v6354_v59, %v4751_v31  ;;  %8707 = vmatprep.subr.bf16.mxu0 %v11893_v32  ;;  %v11947_v31 = vld [vmem:[%s13027_s21 + $0x37c] ss:$12 sps:$4 sm:$0xff]  }
 0x99d   : > { %v6356_v42 = vpop.f32.mrf.mxu1 }
 0x99e   : > { %v6396_v43 = vadd.f32 %v13957_v57, %v6355_v40  ;;  %8733 = vmatpush1.bf16.msra.mxu1 %v11888_v37  ;;  %v11911_v57 = vld [vmem:[%s13027_s21 + $0x10c] ss:$12 sps:$4 sm:$0xff]   ;;  %v11950_v42 = vld [vmem:[%s13027_s21 + $0x2a4] ss:$12 sps:$4 sm:$0xff]  }
 0x99f   : > { %v6357_v44 = vpop.f32.mrf.mxu1  ;;  %8708 = vmatpush2.bf16.msra.mxu0 %v11891_v38  ;;  %8734 = vmatprep.subr.bf16.mxu1 %v11896_v39  ;;  %v11942_v38 = vld [vmem:[%s13027_s21 + $0x2b8] ss:$12 sps:$4 sm:$0xff]  }
 0x9a0   : > { %v6731_v47 = vmax.f32 %v6396_v43, 0.0  ;;  %8709 = vmatprep.subr.bf16.mxu0 %v11899_v41  ;;  %v11945_v41 = vld [vmem:[%s13027_s21 + $0x378] ss:$12 sps:$4 sm:$0xff]  }
 0x9a2   : > { %v14004_v51 = vpack.c.bf16 %v6731_v47, %v6731_v47  ;;  %8735 = vmatpush1.bf16.msra.mxu1 %v11894_v23  ;;  %v11953_v23 = vld [vmem:[%s13027_s21 + $0x364] ss:$12 sps:$4 sm:$0xff]   ;;  %v11951_v47 = vld [vmem:[%s13027_s21 + $0x360] ss:$12 sps:$4 sm:$0xff]  }
 0x9a3   : > { %8710 = vmatpush2.bf16.msra.mxu0 %v11897_v45  ;;  %8736 = vmatprep.subr.bf16.mxu1 %v11902_v48  ;;  %v11948_v45 = vld [vmem:[%s13027_s21 + $0x2a0] ss:$12 sps:$4 sm:$0xff]  }
 0x9a4   : > { %8762 = vmatprep.mubr.bf16.mxu1 %v14004_v51  ;;  %8711 = vmatprep.subr.bf16.mxu0 %v11905_v50  ;;  %v11956_v50 = vld [vmem:[%s13027_s21 + $0x28c] ss:$12 sps:$4 sm:$0xff]  }
 0x9a6   : > { %8737 = vmatpush1.bf16.msra.mxu1 %v11900_v54  ;;  %v11959_v54 = vld [vmem:[%s13027_s21 + $0x34c] ss:$12 sps:$4 sm:$0xff]  }
 0x9a7   : > { %8712 = vmatpush2.bf16.msra.mxu0 %v11903_v35  ;;  %8738 = vmatprep.subr.bf16.mxu1 %v11908_v56  ;;  %v11954_v35 = vld [vmem:[%s13027_s21 + $0x288] ss:$12 sps:$4 sm:$0xff]   ;;  %v4747_v56 = vrot.slane %v13900_v55, %v13123_v12 }
 0x9a8   : > { %8713 = vmatprep.subr.bf16.mxu0 %v11911_v57  ;;  %v11957_v57 = vld [vmem:[%s13027_s21 + $0x348] ss:$12 sps:$4 sm:$0xff]  }
 0x9aa   : > { %8739 = vmatpush1.bf16.msra.mxu1 %v11906_v58  ;;  %v11962_v58 = vld [vmem:[%s13027_s21 + $0x274] ss:$12 sps:$4 sm:$0xff]  }
 0x9ab   : > { %8714 = vmatpush2.bf16.msra.mxu0 %v11909_v60  ;;  %8740 = vmatprep.subr.bf16.mxu1 %v11914_v20  ;;  %v11965_v60 = vld [vmem:[%s13027_s21 + $0x334] ss:$12 sps:$4 sm:$0xff]   ;;  %v11960_v20 = vld [vmem:[%s13027_s21 + $0x270] ss:$12 sps:$4 sm:$0xff]  }
 0x9ac   : > { %8715 = vmatprep.subr.bf16.mxu0 %v11917_v63  ;;  %v6353_v63 = vadd.f32 %v13992_v36, %v4747_v56  ;;  %v11977_v36 = vld [vmem:[%s13027_s21 + $0x304] ss:$12 sps:$4 sm:$0xff]  }
 0x9ae   : > { %8741 = vmatpush1.bf16.msra.mxu1 %v11912_v0  ;;  %v11963_v0 = vld [vmem:[%s13027_s21 + $0x330] ss:$12 sps:$4 sm:$0xff]  }
 0x9af   : > { %8716 = vmatpush2.bf16.msra.mxu0 %v11915_v1  ;;  %8742 = vmatprep.subr.bf16.mxu1 %v11920_v2  ;;  %v11968_v1 = vld [vmem:[%s13027_s21 + $0x25c] ss:$12 sps:$4 sm:$0xff]  }
 0x9b0   : > { %8717 = vmatprep.subr.bf16.mxu0 %v11923_v3  ;;  %v11971_v2 = vld [vmem:[%s13027_s21 + $0x31c] ss:$12 sps:$4 sm:$0xff]   ;;  %v11966_v3 = vld [vmem:[%s13027_s21 + $0x258] ss:$12 sps:$4 sm:$0xff]  }
 0x9b2   : > { %8743 = vmatpush1.bf16.msra.mxu1 %v11918_v4  ;;  %v6394_v4 = vadd.f32 %v13950_v53, %v6353_v63  ;;  %v11983_v53 = vld [vmem:[%s13027_s21 + $0x46c] ss:$12 sps:$4 sm:$0xff]  }
 0x9b3   : > { %8718 = vmatpush2.bf16.msra.mxu0 %v11921_v6  ;;  %8744 = vmatprep.subr.bf16.mxu1 %v11926_v7  ;;  %v11969_v6 = vld [vmem:[%s13027_s21 + $0x318] ss:$12 sps:$4 sm:$0xff]  }
 0x9b4   : > { %8719 = vmatprep.subr.bf16.mxu0 %v11929_v10  ;;  %v11974_v7 = vld [vmem:[%s13027_s21 + $0x244] ss:$12 sps:$4 sm:$0xff]   ;;  %v11972_v10 = vld [vmem:[%s13027_s21 + $0x240] ss:$12 sps:$4 sm:$0xff]  }
 0x9b6   : > { %8745 = vmatpush1.bf16.msra.mxu1 %v11924_v15  ;;  %v6730_v15 = vmax.f32 %v6394_v4, 0.0  ;;  %v12031_v4 = vld [vmem:[%s13027_s21 + $0x6ac] ss:$12 sps:$4 sm:$0xff]  }
 0x9b7   : > { %8720 = vmatpush2.bf16.msra.mxu0 %v11927_v22  ;;  %8746 = vmatprep.subr.bf16.mxu1 %v11932_v17  ;;  %v11975_v22 = vld [vmem:[%s13027_s21 + $0x300] ss:$12 sps:$4 sm:$0xff]  }
 0x9b8   : > { %8771 = vmatprep.subr.bf16.mxu0 %v11935_v33  ;;  %v11980_v17 = vld [vmem:[%s13027_s21 + $0x52c] ss:$12 sps:$4 sm:$0xff]   ;;  %v14077_v33 = vpack.c.bf16 %v6730_v15, %v6730_v15 }
 0x9b9   : > { %v14035_v25 = vpop.f32.mrf.mxu1 }
 0x9ba   : > { %v14038_v26 = vpop.f32.mrf.mxu0  ;;  %8722 = vmatmul.mubr.bf16.vlgmr.msra.gmra.mxu0 %v14032_v34  ;;  %8747 = vmatpush2.bf16.msra.mxu1 %v11930_v21  ;;  %v11986_v21 = vld [vmem:[%s13027_s21 + $0x514] ss:$12 sps:$4 sm:$0xff]  }
 0x9bb   : > { %v6477_v28 = vpop.f32.mrf.mxu1  ;;  %8772 = vmatpush1.bf16.msra.mxu0 %v11933_v19  ;;  %8748 = vmatprep.subr.bf16.mxu1 %v11938_v61  ;;  %v11989_v19 = vld [vmem:[%s13027_s21 + $0x454] ss:$12 sps:$4 sm:$0xff]  }
 0x9bc   : > { %v6436_v49 = vpop.f32.mrf.mxu0  ;;  %8773 = vmatprep.subr.bf16.mxu0 %v11941_v24  ;;  %v11984_v24 = vld [vmem:[%s13027_s21 + $0x510] ss:$12 sps:$4 sm:$0xff]  }
 0x9bd   : > { %v6437_v32 = vadd.f32 %v6436_v49, %v4759_v14  ;;  %v6479_v37 = vpop.f32.mrf.mxu1  ;;  %v11987_v14 = vld [vmem:[%s13027_s21 + $0x450] ss:$12 sps:$4 sm:$0xff]   ;;  %v11990_v49 = vld [vmem:[%s13027_s21 + $0x4f8] ss:$12 sps:$4 sm:$0xff]  }
 0x9be   : > { %v6438_v59 = vpop.f32.mrf.mxu0  ;;  %8749 = vmatpush2.bf16.msra.mxu1 %v11936_v27  ;;  %v11992_v27 = vld [vmem:[%s13027_s21 + $0x4fc] ss:$12 sps:$4 sm:$0xff]  }
 0x9bf   : > { %v6478_v39 = vadd.f32 %v6477_v28, %v6437_v32  ;;  %v6480_v40 = vpop.f32.mrf.mxu1  ;;  %8774 = vmatpush1.bf16.msra.mxu0 %v11939_v30  ;;  %8750 = vmatprep.subr.bf16.mxu1 %v11944_v5  ;;  %v11995_v30 = vld [vmem:[%s13027_s21 + $0x43c] ss:$12 sps:$4 sm:$0xff]   ;;  %v11998_v32 = vld [vmem:[%s13027_s21 + $0x4e4] ss:$12 sps:$4 sm:$0xff]  }
 0x9c0   : > { %v6439_v43 = vpop.f32.mrf.mxu0  ;;  %8775 = vmatprep.subr.bf16.mxu0 %v11947_v31  ;;  %v11993_v31 = vld [vmem:[%s13027_s21 + $0x438] ss:$12 sps:$4 sm:$0xff]  }
 0x9c1   : > { %v6733_v44 = vmax.f32 %v6478_v39, 0.0  ;;  %v12001_v59 = vld [vmem:[%s13027_s21 + $0x424] ss:$12 sps:$4 sm:$0xff]   ;;  %v11999_v39 = vld [vmem:[%s13027_s21 + $0x420] ss:$12 sps:$4 sm:$0xff]  }
 0x9c2   : > { %8751 = vmatpush2.bf16.msra.mxu1 %v11942_v38  ;;  %v11996_v38 = vld [vmem:[%s13027_s21 + $0x4e0] ss:$12 sps:$4 sm:$0xff]   ;;  %v12002_v43 = vld [vmem:[%s13027_s21 + $0x4c8] ss:$12 sps:$4 sm:$0xff]  }
 0x9c3   : > { %v14050_v48 = vpack.c.bf16 %v6733_v44, %v6733_v44  ;;  %8776 = vmatpush1.bf16.msra.mxu0 %v11945_v41  ;;  %8752 = vmatprep.subr.bf16.mxu1 %v11950_v42  ;;  %v12004_v40 = vld [vmem:[%s13027_s21 + $0x4cc] ss:$12 sps:$4 sm:$0xff]   ;;  %v4754_v41 = vsub.s32 4, %v13115_v9  ;;  %v12010_v44 = vld [vmem:[%s13027_s21 + $0x4b4] ss:$12 sps:$4 sm:$0xff]  }
 0x9c4   : > { %8777 = vmatprep.subr.bf16.mxu0 %v11953_v23  ;;  %v12007_v42 = vld [vmem:[%s13027_s21 + $0x40c] ss:$12 sps:$4 sm:$0xff]   ;;  %v12005_v23 = vld [vmem:[%s13027_s21 + $0x408] ss:$12 sps:$4 sm:$0xff]  }
 0x9c5   : > { %8803 = vmatprep.mubr.bf16.mxu0 %v14050_v48 }
 0x9c6   : > { %8753 = vmatpush2.bf16.msra.mxu1 %v11948_v45  ;;  %v4755_v45 = vrot.slane %v13900_v55, %v4754_v41  ;;  %v12055_v41 = vld [vmem:[%s13027_s21 + $0x64c] ss:$12 sps:$4 sm:$0xff]  }
 0x9c7   : > { %8778 = vmatpush1.bf16.msra.mxu0 %v11951_v47  ;;  %8754 = vmatprep.subr.bf16.mxu1 %v11956_v50  ;;  %v12013_v47 = vld [vmem:[%s13027_s21 + $0x3f4] ss:$12 sps:$4 sm:$0xff]   ;;  %v12008_v50 = vld [vmem:[%s13027_s21 + $0x4b0] ss:$12 sps:$4 sm:$0xff]  }
 0x9c8   : > { %8779 = vmatprep.subr.bf16.mxu0 %v11959_v54  ;;  %v12011_v54 = vld [vmem:[%s13027_s21 + $0x3f0] ss:$12 sps:$4 sm:$0xff]   ;;  %v6435_v56 = vadd.f32 %v14038_v26, %v4755_v45  ;;  %v12020_v26 = vld [vmem:[%s13027_s21 + $0x480] ss:$12 sps:$4 sm:$0xff]  }
 0x9c9   : > { %v12061_v45 = vld [vmem:[%s13027_s21 + $0x634] ss:$12 sps:$4 sm:$0xff]  }
 0x9ca   : > { %8755 = vmatpush2.bf16.msra.mxu1 %v11954_v35  ;;  %v12016_v35 = vld [vmem:[%s13027_s21 + $0x49c] ss:$12 sps:$4 sm:$0xff]   ;;  %v6476_v63 = vadd.f32 %v14035_v25, %v6435_v56  ;;  %v12062_v56 = vld [vmem:[%s13027_s21 + $0x558] ss:$12 sps:$4 sm:$0xff]  }
 0x9cb   : > { %8780 = vmatpush1.bf16.msra.mxu0 %v11957_v57  ;;  %8756 = vmatprep.subr.bf16.mxu1 %v11962_v58  ;;  %v12019_v57 = vld [vmem:[%s13027_s21 + $0x3dc] ss:$12 sps:$4 sm:$0xff]   ;;  %v12014_v58 = vld [vmem:[%s13027_s21 + $0x498] ss:$12 sps:$4 sm:$0xff]  }
 0x9cc   : > { %8781 = vmatprep.subr.bf16.mxu0 %v11965_v60  ;;  %v12017_v60 = vld [vmem:[%s13027_s21 + $0x3d8] ss:$12 sps:$4 sm:$0xff]   ;;  %v12029_v25 = vld [vmem:[%s13027_s21 + $0x6a8] ss:$12 sps:$4 sm:$0xff]  }
 0x9ce   : > { %8757 = vmatpush2.bf16.msra.mxu1 %v11960_v20  ;;  %v12022_v20 = vld [vmem:[%s13027_s21 + $0x484] ss:$12 sps:$4 sm:$0xff]  }
 0x9cf   : > { %8782 = vmatpush1.bf16.msra.mxu0 %v11963_v0  ;;  %8758 = vmatprep.subr.bf16.mxu1 %v11968_v1  ;;  %v12025_v0 = vld [vmem:[%s13027_s21 + $0x3c4] ss:$12 sps:$4 sm:$0xff]   ;;  %v12023_v1 = vld [vmem:[%s13027_s21 + $0x3c0] ss:$12 sps:$4 sm:$0xff]  }
 0x9d0   : > { %8783 = vmatprep.subr.bf16.mxu0 %v11971_v2  ;;  %v12028_v2 = vld [vmem:[%s13027_s21 + $0x5ec] ss:$12 sps:$4 sm:$0xff]  }
 0x9d2   : > { %8759 = vmatpush2.bf16.msra.mxu1 %v11966_v3  ;;  %v6732_v3 = vmax.f32 %v6476_v63, 0.0  ;;  %v12068_v63 = vld [vmem:[%s13027_s21 + $0x540] ss:$12 sps:$4 sm:$0xff]  }
 0x9d3   : > { %8784 = vmatpush1.bf16.msra.mxu0 %v11969_v6  ;;  %8760 = vmatprep.subr.bf16.mxu1 %v11974_v7  ;;  %v4766_v6 = vsub.s32 7, %v13115_v9  ;;  %v12026_v7 = vld [vmem:[%s13027_s21 + $0x5e8] ss:$12 sps:$4 sm:$0xff]  }
 0x9d4   : > { %8785 = vmatprep.subr.bf16.mxu0 %v11977_v36  ;;  %v12034_v36 = vld [vmem:[%s13027_s21 + $0x5d4] ss:$12 sps:$4 sm:$0xff]  }
 0x9d5   : > { %v4767_v15 = vrot.slane %v13900_v55, %v4766_v6  ;;  %v12091_v6 = vld [vmem:[%s13027_s21 + $0x814] ss:$12 sps:$4 sm:$0xff]  }
 0x9d6   : > { %8761 = vmatpush2.bf16.msra.mxu1 %v11972_v10  ;;  %v14123_v10 = vpack.c.bf16 %v6732_v3, %v6732_v3 }
 0x9d7   : > { %8786 = vmatpush1.bf16.msra.mxu0 %v11975_v22  ;;  %8812 = vmatprep.subr.bf16.mxu1 %v11980_v17  ;;  %v12037_v22 = vld [vmem:[%s13027_s21 + $0x694] ss:$12 sps:$4 sm:$0xff]  }
 0x9d8   : > { %8787 = vmatprep.subr.bf16.mxu0 %v11983_v53  ;;  %v12032_v53 = vld [vmem:[%s13027_s21 + $0x5d0] ss:$12 sps:$4 sm:$0xff]  }
 0x9d9   : > { %8763 = vmatmul.mubr.bf16.vlgmr.msra.gmra.mxu1 %v14077_v33 }
 0x9da   : > { %v14083_v61 = vpop.f32.mrf.mxu0  ;;  %8813 = vmatpush1.bf16.msra.mxu1 %v11978_v8 }
 0x9db   : > { %8788 = vmatpush2.bf16.msra.mxu0 %v11981_v18  ;;  %8814 = vmatprep.subr.bf16.mxu1 %v11986_v21  ;;  %v12035_v18 = vld [vmem:[%s13027_s21 + $0x690] ss:$12 sps:$4 sm:$0xff]  }
 0x9dc   : > { %v14088_v28 = vpop.f32.mrf.mxu0  ;;  %8789 = vmatprep.subr.bf16.mxu0 %v11989_v19  ;;  %v12040_v21 = vld [vmem:[%s13027_s21 + $0x5bc] ss:$12 sps:$4 sm:$0xff]  }
 0x9de   : > { %v6561_v5 = vpop.f32.mrf.mxu0  ;;  %8815 = vmatpush1.bf16.msra.mxu1 %v11984_v24  ;;  %v12043_v24 = vld [vmem:[%s13027_s21 + $0x67c] ss:$12 sps:$4 sm:$0xff]  }
 0x9df   : > { %8790 = vmatpush2.bf16.msra.mxu0 %v11987_v14  ;;  %8816 = vmatprep.subr.bf16.mxu1 %v11992_v27 }
 0x9e0   : > { %v6562_v37 = vpop.f32.mrf.mxu0  ;;  %8791 = vmatprep.subr.bf16.mxu0 %v11995_v30  ;;  %v12038_v30 = vld [vmem:[%s13027_s21 + $0x5b8] ss:$12 sps:$4 sm:$0xff]  }
 0x9e1   : > { %v12049_v37 = vld [vmem:[%s13027_s21 + $0x664] ss:$12 sps:$4 sm:$0xff]  }
 0x9e2   : > { %8817 = vmatpush1.bf16.msra.mxu1 %v11990_v49  ;;  %v12041_v49 = vld [vmem:[%s13027_s21 + $0x678] ss:$12 sps:$4 sm:$0xff]  }
 0x9e3   : > { %8792 = vmatpush2.bf16.msra.mxu0 %v11993_v31  ;;  %8818 = vmatprep.subr.bf16.mxu1 %v11998_v32  ;;  %v12046_v31 = vld [vmem:[%s13027_s21 + $0x5a4] ss:$12 sps:$4 sm:$0xff]  }
 0x9e4   : > { %8793 = vmatprep.subr.bf16.mxu0 %v12001_v59 }
 0x9e6   : > { %8819 = vmatpush1.bf16.msra.mxu1 %v11996_v38  ;;  %v4762_v38 = vsub.s32 6, %v13115_v9  ;;  %v12166_v9 = vld [vmem:[%s13027_s21 + $0x440] ss:$12 sps:$4 sm:$0xff]  }
 0x9e7   : > { %8794 = vmatpush2.bf16.msra.mxu0 %v11999_v39  ;;  %8820 = vmatprep.subr.bf16.mxu1 %v12004_v40  ;;  %v12047_v39 = vld [vmem:[%s13027_s21 + $0x660] ss:$12 sps:$4 sm:$0xff]  }
 0x9e8   : > { %8795 = vmatprep.subr.bf16.mxu0 %v12007_v42  ;;  %v12052_v40 = vld [vmem:[%s13027_s21 + $0x58c] ss:$12 sps:$4 sm:$0xff]   ;;  %v12050_v42 = vld [vmem:[%s13027_s21 + $0x588] ss:$12 sps:$4 sm:$0xff]  }
 0x9ea   : > { %8821 = vmatpush1.bf16.msra.mxu1 %v12002_v43  ;;  %v4763_v43 = vrot.slane %v13900_v55, %v4762_v38  ;;  %v12067_v55 = vld [vmem:[%s13027_s21 + $0x61c] ss:$12 sps:$4 sm:$0xff]  }
 0x9eb   : > { %8796 = vmatpush2.bf16.msra.mxu0 %v12005_v23  ;;  %8822 = vmatprep.subr.bf16.mxu1 %v12010_v44  ;;  %v12053_v23 = vld [vmem:[%s13027_s21 + $0x648] ss:$12 sps:$4 sm:$0xff]  }
 0x9ec   : > { %8797 = vmatprep.subr.bf16.mxu0 %v12013_v47  ;;  %v12058_v44 = vld [vmem:[%s13027_s21 + $0x574] ss:$12 sps:$4 sm:$0xff]   ;;  %v12056_v47 = vld [vmem:[%s13027_s21 + $0x570] ss:$12 sps:$4 sm:$0xff]  }
 0x9ee   : > { %8823 = vmatpush1.bf16.msra.mxu1 %v12008_v50 }
 0x9ef   : > { %8798 = vmatpush2.bf16.msra.mxu0 %v12011_v54  ;;  %8824 = vmatprep.subr.bf16.mxu1 %v12016_v35  ;;  %v12059_v54 = vld [vmem:[%s13027_s21 + $0x630] ss:$12 sps:$4 sm:$0xff]  }
 0x9f0   : > { %8799 = vmatprep.subr.bf16.mxu0 %v12019_v57  ;;  %v12064_v35 = vld [vmem:[%s13027_s21 + $0x55c] ss:$12 sps:$4 sm:$0xff]  }
 0x9f2   : > { %8825 = vmatpush1.bf16.msra.mxu1 %v12014_v58  ;;  %v12065_v58 = vld [vmem:[%s13027_s21 + $0x618] ss:$12 sps:$4 sm:$0xff]  }
 0x9f3   : > { %8800 = vmatpush2.bf16.msra.mxu0 %v12017_v60  ;;  %8826 = vmatprep.subr.bf16.mxu1 %v12022_v20  ;;  %v12070_v60 = vld [vmem:[%s13027_s21 + $0x544] ss:$12 sps:$4 sm:$0xff]  }
 0x9f4   : > { %8801 = vmatprep.subr.bf16.mxu0 %v12025_v0  ;;  %v12073_v20 = vld [vmem:[%s13027_s21 + $0x604] ss:$12 sps:$4 sm:$0xff]  }
 0x9f6   : > { %8827 = vmatpush1.bf16.msra.mxu1 %v12020_v26  ;;  %v12071_v26 = vld [vmem:[%s13027_s21 + $0x600] ss:$12 sps:$4 sm:$0xff]  }
 0x9f7   : > { %8802 = vmatpush2.bf16.msra.mxu0 %v12023_v1  ;;  %8828 = vmatprep.subr.bf16.mxu1 %v12028_v2  ;;  %v12085_v1 = vld [vmem:[%s13027_s21 + $0x82c] ss:$12 sps:$4 sm:$0xff]   ;;  %v12083_v2 = vld [vmem:[%s13027_s21 + $0x828] ss:$12 sps:$4 sm:$0xff]  }
 0x9f8   : > { %8853 = vmatprep.subr.bf16.mxu0 %v12031_v4  ;;  %v12074_v4 = vld [vmem:[%s13027_s21 + $0x768] ss:$12 sps:$4 sm:$0xff]  }
 0x9f9   : > { %v6516_v17 = vpop.f32.mrf.mxu1 }
 0x9fa   : > { %8804 = vmatmul.mubr.bf16.vlgmr.msra.gmra.mxu0 %v14123_v10  ;;  %8829 = vmatpush2.bf16.msra.mxu1 %v12026_v7  ;;  %v6517_v50 = vadd.f32 %v6516_v17, %v4763_v43  ;;  %v14169_v7 = vld [vmem:[%s13025_s23 + $0x8] sm:$0xf]  ;;  %v12094_v43 = vld [vmem:[%s13027_s21 + $0x70c] ss:$12 sps:$4 sm:$0xff]  }
 0x9fb   : > { %v6518_v8 = vpop.f32.mrf.mxu1  ;;  %8854 = vmatpush1.bf16.msra.mxu0 %v12029_v25  ;;  %8830 = vmatprep.subr.bf16.mxu1 %v12034_v36  ;;  %v12079_v25 = vld [vmem:[%s13027_s21 + $0x754] ss:$12 sps:$4 sm:$0xff]   ;;  %v12089_v17 = vld [vmem:[%s13027_s21 + $0x810] ss:$12 sps:$4 sm:$0xff]  }
 0x9fc   : > { %v6519_v19 = vadd.f32 %v6518_v8, %v4767_v15  ;;  %8855 = vmatprep.subr.bf16.mxu0 %v12037_v22  ;;  %v6558_v57 = vadd.f32 %v14083_v61, %v6517_v50  ;;  %v12076_v61 = vld [vmem:[%s13027_s21 + $0x76c] ss:$12 sps:$4 sm:$0xff]   ;;  %v4775_v15 = vrot.slane %v14169_v7, %v13120_v11  ;;  %v12077_v8 = vld [vmem:[%s13027_s21 + $0x750] ss:$12 sps:$4 sm:$0xff]   ;;  %v12100_v50 = vld [vmem:[%s13027_s21 + $0x6f4] ss:$12 sps:$4 sm:$0xff]  }
 0x9fd   : > { %v6520_v14 = vpop.f32.mrf.mxu1 }
 0x9fe   : > { %v6560_v27 = vadd.f32 %v14088_v28, %v6519_v19  ;;  %8831 = vmatpush2.bf16.msra.mxu1 %v12032_v53  ;;  %v12044_v28 = vld [vmem:[%s13027_s21 + $0x5a0] ss:$12 sps:$4 sm:$0xff]   ;;  %v6734_v0 = vmax.f32 %v6558_v57, 0.0  ;;  %v12082_v19 = vld [vmem:[%s13027_s21 + $0x73c] ss:$12 sps:$4 sm:$0xff]  }
 0x9ff   : > { %v6521_v5 = vpop.f32.mrf.mxu1  ;;  %8856 = vmatpush1.bf16.msra.mxu0 %v12035_v18  ;;  %8832 = vmatprep.subr.bf16.mxu1 %v12040_v21  ;;  %v12097_v18 = vld [vmem:[%s13027_s21 + $0x7fc] ss:$12 sps:$4 sm:$0xff]  }
 0xa00   : > { %v6735_v32 = vmax.f32 %v6560_v27, 0.0  ;;  %8857 = vmatprep.subr.bf16.mxu0 %v12043_v24  ;;  %v14164_v3 = vpack.c.bf16 %v6734_v0, %v6734_v0  ;;  %v12106_v57 = vld [vmem:[%s13027_s21 + $0x6dc] ss:$12 sps:$4 sm:$0xff]   ;;  %v12112_v0 = vld [vmem:[%s13027_s21 + $0x6c4] ss:$12 sps:$4 sm:$0xff]  }
 0xa02   : > { %v14137_v59 = vpack.c.bf16 %v6735_v32, %v6735_v32  ;;  %8833 = vmatpush2.bf16.msra.mxu1 %v12038_v30  ;;  %v12095_v30 = vld [vmem:[%s13027_s21 + $0x7f8] ss:$12 sps:$4 sm:$0xff]  }
 0xa03   : > { %8858 = vmatpush1.bf16.msra.mxu0 %v12041_v49  ;;  %8834 = vmatprep.subr.bf16.mxu1 %v12046_v31  ;;  %v12080_v31 = vld [vmem:[%s13027_s21 + $0x738] ss:$12 sps:$4 sm:$0xff]  }
 0xa04   : > { %8844 = vmatprep.mubr.bf16.mxu1 %v14137_v59  ;;  %8859 = vmatprep.subr.bf16.mxu0 %v12049_v37  ;;  %v12103_v32 = vld [vmem:[%s13027_s21 + $0x7e4] ss:$12 sps:$4 sm:$0xff]  }
 0xa06   : > { %8835 = vmatpush2.bf16.msra.mxu1 %v12044_v28  ;;  %v12088_v28 = vld [vmem:[%s13027_s21 + $0x724] ss:$12 sps:$4 sm:$0xff]  }
 0xa07   : > { %8860 = vmatpush1.bf16.msra.mxu0 %v12047_v39  ;;  %8836 = vmatprep.subr.bf16.mxu1 %v12052_v40  ;;  %v12101_v39 = vld [vmem:[%s13027_s21 + $0x7e0] ss:$12 sps:$4 sm:$0xff]  }
 0xa08   : > { %8861 = vmatprep.subr.bf16.mxu0 %v12055_v41  ;;  %v12086_v41 = vld [vmem:[%s13027_s21 + $0x720] ss:$12 sps:$4 sm:$0xff]  }
 0xa0a   : > { %8837 = vmatpush2.bf16.msra.mxu1 %v12050_v42  ;;  %v12109_v42 = vld [vmem:[%s13027_s21 + $0x7cc] ss:$12 sps:$4 sm:$0xff]  }
 0xa0b   : > { %8862 = vmatpush1.bf16.msra.mxu0 %v12053_v23  ;;  %8838 = vmatprep.subr.bf16.mxu1 %v12058_v44  ;;  %v12107_v23 = vld [vmem:[%s13027_s21 + $0x7c8] ss:$12 sps:$4 sm:$0xff]  }
 0xa0c   : > { %8863 = vmatprep.subr.bf16.mxu0 %v12061_v45  ;;  %v12092_v44 = vld [vmem:[%s13027_s21 + $0x708] ss:$12 sps:$4 sm:$0xff]  }
 0xa0d   : > { %v12115_v45 = vld [vmem:[%s13027_s21 + $0x7b4] ss:$12 sps:$4 sm:$0xff]  }
 0xa0e   : > { %8839 = vmatpush2.bf16.msra.mxu1 %v12056_v47  ;;  %v4771_v47 = vrot.slane %v14169_v7, %v13126_v13 }
 0xa0f   : > { %8864 = vmatpush1.bf16.msra.mxu0 %v12059_v54  ;;  %8840 = vmatprep.subr.bf16.mxu1 %v12064_v35  ;;  %v12113_v54 = vld [vmem:[%s13027_s21 + $0x7b0] ss:$12 sps:$4 sm:$0xff]  }
 0xa10   : > { %8865 = vmatprep.subr.bf16.mxu0 %v12067_v55  ;;  %v12098_v35 = vld [vmem:[%s13027_s21 + $0x6f0] ss:$12 sps:$4 sm:$0xff]  }
 0xa11   : > { %v12120_v55 = vld [vmem:[%s13027_s21 + $0x79c] ss:$12 sps:$4 sm:$0xff]  }
 0xa12   : > { %8841 = vmatpush2.bf16.msra.mxu1 %v12062_v56 }
 0xa13   : > { %8866 = vmatpush1.bf16.msra.mxu0 %v12065_v58  ;;  %8842 = vmatprep.subr.bf16.mxu1 %v12070_v60  ;;  %v12118_v58 = vld [vmem:[%s13027_s21 + $0x798] ss:$12 sps:$4 sm:$0xff]  }
 0xa14   : > { %8867 = vmatprep.subr.bf16.mxu0 %v12073_v20  ;;  %v12104_v60 = vld [vmem:[%s13027_s21 + $0x6d8] ss:$12 sps:$4 sm:$0xff]  }
 0xa15   : > { %v12125_v20 = vld [vmem:[%s13027_s21 + $0x784] ss:$12 sps:$4 sm:$0xff]  }
 0xa16   : > { %8843 = vmatpush2.bf16.msra.mxu1 %v12068_v63 }
 0xa17   : > { %8868 = vmatpush1.bf16.msra.mxu0 %v12071_v26  ;;  %8894 = vmatprep.subr.bf16.mxu1 %v12085_v1  ;;  %v12123_v26 = vld [vmem:[%s13027_s21 + $0x780] ss:$12 sps:$4 sm:$0xff]  }
 0xa18   : > { %8869 = vmatprep.subr.bf16.mxu0 %v12076_v61  ;;  %v12110_v1 = vld [vmem:[%s13027_s21 + $0x6c0] ss:$12 sps:$4 sm:$0xff]  }
 0xa19   : > { %v14172_v36 = vpop.f32.mrf.mxu1  ;;  %8845 = vmatmul.mubr.bf16.vlgmr.msra.gmra.mxu1 %v14164_v3  ;;  %v12130_v61 = vld [vmem:[%s13027_s21 + $0x8ec] ss:$12 sps:$4 sm:$0xff]  }
 0xa1a   : > { %v6598_v22 = vpop.f32.mrf.mxu0  ;;  %8895 = vmatpush1.bf16.msra.mxu1 %v12083_v2 }
 0xa1b   : > { %v6641_v53 = vpop.f32.mrf.mxu1  ;;  %8870 = vmatpush2.bf16.msra.mxu0 %v12074_v4  ;;  %8896 = vmatprep.subr.bf16.mxu1 %v12091_v6  ;;  %v6599_v56 = vadd.f32 %v6598_v22, %v4771_v47  ;;  %v12116_v4 = vld [vmem:[%s13027_s21 + $0x170] ss:$12 sps:$4 sm:$0xff]   ;;  %v12128_v6 = vld [vmem:[%s13027_s21 + $0x8e8] ss:$12 sps:$4 sm:$0xff]   ;;  %v12147_v47 = vld [vmem:[%s13027_s21 + $0x20] ss:$12 sps:$4 sm:$0xff]  }
 0xa1c   : > { %v6600_v21 = vpop.f32.mrf.mxu0  ;;  %8871 = vmatprep.subr.bf16.mxu0 %v12079_v25  ;;  %v12117_v25 = vld [vmem:[%s13027_s21 + $0xb0] ss:$12 sps:$4 sm:$0xff]   ;;  %v12135_v22 = vld [vmem:[%s13027_s21 + $0x8d4] ss:$12 sps:$4 sm:$0xff]  }
 0xa1d   : > { %v6601_v24 = vadd.f32 %v6600_v21, %v4775_v15  ;;  %v6643_v14 = vpop.f32.mrf.mxu1  ;;  %v6640_v63 = vadd.f32 %v14172_v36, %v6599_v56  ;;  %v12121_v15 = vld [vmem:[%s13027_s21 + $0x158] ss:$12 sps:$4 sm:$0xff]   ;;  %v12168_v56 = vld [vmem:[%s13027_s21 + $0x2f0] ss:$12 sps:$4 sm:$0xff]  }
 0xa1e   : > { %v6602_v27 = vpop.f32.mrf.mxu0  ;;  %8897 = vmatpush1.bf16.msra.mxu1 %v12089_v17  ;;  %v12138_v14 = vld [vmem:[%s13027_s21 + $0x8b8] ss:$12 sps:$4 sm:$0xff]  }
 0xa1f   : > { %v6642_v5 = vadd.f32 %v6641_v53, %v6601_v24  ;;  %v6644_v49 = vpop.f32.mrf.mxu1  ;;  %8872 = vmatpush2.bf16.msra.mxu0 %v12077_v8  ;;  %8898 = vmatprep.subr.bf16.mxu1 %v12097_v18  ;;  %v6736_v2 = vmax.f32 %v6640_v63, 0.0  ;;  %v12133_v53 = vld [vmem:[%s13027_s21 + $0x8d0] ss:$12 sps:$4 sm:$0xff]   ;;  %v12122_v8 = vld [vmem:[%s13027_s21 + $0x98] ss:$12 sps:$4 sm:$0xff]  }
 0xa20   : > { %v6603_v37 = vpop.f32.mrf.mxu0  ;;  %8873 = vmatprep.subr.bf16.mxu0 %v12082_v19  ;;  %v12140_v18 = vld [vmem:[%s13027_s21 + $0x8bc] ss:$12 sps:$4 sm:$0xff]   ;;  %v12126_v19 = vld [vmem:[%s13027_s21 + $0x140] ss:$12 sps:$4 sm:$0xff]   ;;  %v12161_v63 = vld [vmem:[%s13027_s21 + $0x458] ss:$12 sps:$4 sm:$0xff]  }
 0xa21   : > { %v6737_v38 = vmax.f32 %v6642_v5, 0.0  ;;  %v14213_v36 = vpack.c.bf16 %v6736_v2, %v6736_v2  ;;  %v12127_v27 = vld [vmem:[%s13027_s21 + $0x80] ss:$12 sps:$4 sm:$0xff]   ;;  %v12131_v5 = vld [vmem:[%s13027_s21 + $0x128] ss:$12 sps:$4 sm:$0xff]  }
 0xa22   : > { %8899 = vmatpush1.bf16.msra.mxu1 %v12095_v30  ;;  %v12143_v49 = vld [vmem:[%s13027_s21 + $0x8a0] ss:$12 sps:$4 sm:$0xff]   ;;  %v12136_v37 = vld [vmem:[%s13027_s21 + $0x110] ss:$12 sps:$4 sm:$0xff]  }
 0xa23   : > { %v14186_v40 = vpack.c.bf16 %v6737_v38, %v6737_v38  ;;  %8874 = vmatpush2.bf16.msra.mxu0 %v12080_v31  ;;  %8900 = vmatprep.subr.bf16.mxu1 %v12103_v32  ;;  %v12132_v31 = vld [vmem:[%s13027_s21 + $0x68] ss:$12 sps:$4 sm:$0xff]   ;;  %v12150_v32 = vld [vmem:[%s13027_s21 + $0x88c] ss:$12 sps:$4 sm:$0xff]   ;;  %v12137_v38 = vld [vmem:[%s13027_s21 + $0x50] ss:$12 sps:$4 sm:$0xff]  }
 0xa24   : > { %8875 = vmatprep.subr.bf16.mxu0 %v12088_v28  ;;  %v12148_v28 = vld [vmem:[%s13027_s21 + $0x888] ss:$12 sps:$4 sm:$0xff]  }
 0xa25   : > { %8885 = vmatprep.mubr.bf16.mxu0 %v14186_v40 }
 0xa26   : > { %8901 = vmatpush1.bf16.msra.mxu1 %v12101_v39  ;;  %v12155_v39 = vld [vmem:[%s13027_s21 + $0x874] ss:$12 sps:$4 sm:$0xff]  }
 0xa27   : > { %8876 = vmatpush2.bf16.msra.mxu0 %v12086_v41  ;;  %8902 = vmatprep.subr.bf16.mxu1 %v12109_v42  ;;  %v12141_v41 = vld [vmem:[%s13027_s21 + $0xf8] ss:$12 sps:$4 sm:$0xff]   ;;  %v12153_v42 = vld [vmem:[%s13027_s21 + $0x870] ss:$12 sps:$4 sm:$0xff]  }
 0xa28   : > { %8877 = vmatprep.subr.bf16.mxu0 %v12094_v43  ;;  %v12142_v43 = vld [vmem:[%s13027_s21 + $0x38] ss:$12 sps:$4 sm:$0xff]  }
 0xa2a   : > { %8903 = vmatpush1.bf16.msra.mxu1 %v12107_v23  ;;  %v12160_v23 = vld [vmem:[%s13027_s21 + $0x85c] ss:$12 sps:$4 sm:$0xff]  }
 0xa2b   : > { %8878 = vmatpush2.bf16.msra.mxu0 %v12092_v44  ;;  %8904 = vmatprep.subr.bf16.mxu1 %v12115_v45  ;;  %v12146_v44 = vld [vmem:[%s13027_s21 + $0xe0] ss:$12 sps:$4 sm:$0xff]   ;;  %v12158_v45 = vld [vmem:[%s13027_s21 + $0x858] ss:$12 sps:$4 sm:$0xff]  }
 0xa2c   : > { %8879 = vmatprep.subr.bf16.mxu0 %v12100_v50  ;;  %v12165_v50 = vld [vmem:[%s13027_s21 + $0x844] ss:$12 sps:$4 sm:$0xff]  }
 0xa2e   : > { %8905 = vmatpush1.bf16.msra.mxu1 %v12113_v54  ;;  %v12151_v54 = vld [vmem:[%s13027_s21 + $0xc8] ss:$12 sps:$4 sm:$0xff]  }
 0xa2f   : > { %8880 = vmatpush2.bf16.msra.mxu0 %v12098_v35  ;;  %8906 = vmatprep.subr.bf16.mxu1 %v12120_v55  ;;  %v12163_v35 = vld [vmem:[%s13027_s21 + $0x840] ss:$12 sps:$4 sm:$0xff]   ;;  %v12152_v55 = vld [vmem:[%s13027_s21 + $0x8] ss:$12 sps:$4 sm:$0xff]  }
 0xa30   : > { %8881 = vmatprep.subr.bf16.mxu0 %v12106_v57  ;;  %v12156_v57 = vld [vmem:[%s13027_s21 + $0x470] ss:$12 sps:$4 sm:$0xff]  }
 0xa32   : > { %8907 = vmatpush1.bf16.msra.mxu1 %v12118_v58  ;;  %v4779_v58 = vrot.slane %v14169_v7, %v13123_v12 }
 0xa33   : > { %8882 = vmatpush2.bf16.msra.mxu0 %v12104_v60  ;;  %8908 = vmatprep.subr.bf16.mxu1 %v12125_v20  ;;  %v12157_v60 = vld [vmem:[%s13027_s21 + $0x3b0] ss:$12 sps:$4 sm:$0xff]   ;;  %v4783_v20 = vrot.slane %v14169_v7, %v4750_v29 }
 0xa34   : > { %8883 = vmatprep.subr.bf16.mxu0 %v12112_v0 }
 0xa36   : > { %8909 = vmatpush1.bf16.msra.mxu1 %v12123_v26 }
 0xa37   : > { %8884 = vmatpush2.bf16.msra.mxu0 %v12110_v1  ;;  %8910 = vmatprep.subr.bf16.mxu1 %v12130_v61  ;;  %v12162_v61 = vld [vmem:[%s13027_s21 + $0x398] ss:$12 sps:$4 sm:$0xff]  }
 0xa38   : > { %10531 = vmatprep.subr.bf16.mxu0 %v12116_v4 }
 0xa3a   : > { %v14217_v17 = vpop.f32.mrf.mxu0  ;;  %8886 = vmatmul.mubr.bf16.vlgmr.msra.gmra.mxu0 %v14213_v36  ;;  %8911 = vmatpush2.bf16.msra.mxu1 %v12128_v6 }
 0xa3b   : > { %10532 = vmatpush3.bf16.msra.mxu0 %v12117_v25  ;;  %8967 = vmatprep.mubr.bf16.mxu0 %v13948_v52  ;;  %v12145_v52 = vld [vmem:[%s13027_s21 + $0x8a4] ss:$12 sps:$4 sm:$0xff]   ;;  %v12167_v25 = vld [vmem:[%s13027_s21 + $0x380] ss:$12 sps:$4 sm:$0xff]  }
 0xa3c   : > { %v14224_v21 = vpop.f32.mrf.mxu0  ;;  %10533 = vmatprep.subr.bf16.mxu0 %v12121_v15  ;;  %8912 = vmatprep.subr.bf16.mxu1 %v12135_v22 }
 0xa3e   : > { %v6725_v24 = vpop.f32.mrf.mxu0  ;;  %8913 = vmatpush2.bf16.msra.mxu1 %v12133_v53 }
 0xa3f   : > { %10534 = vmatpush3.bf16.msra.mxu0 %v12122_v8  ;;  %8914 = vmatprep.subr.bf16.mxu1 %v12140_v18  ;;  %v12171_v8 = vld [vmem:[%s13027_s21 + $0x368] ss:$12 sps:$4 sm:$0xff]   ;;  %v12172_v18 = vld [vmem:[%s13027_s21 + $0x2d8] ss:$12 sps:$4 sm:$0xff]   ;;  %v12175_v24 = vld [vmem:[%s13027_s21 + $0x350] ss:$12 sps:$4 sm:$0xff]  }
 0xa40   : > { %v6726_v30 = vpop.f32.mrf.mxu0  ;;  %10535 = vmatprep.subr.bf16.mxu0 %v12126_v19  ;;  %v12173_v19 = vld [vmem:[%s13027_s21 + $0x218] ss:$12 sps:$4 sm:$0xff]  }
 0xa41   : > { %v12179_v30 = vld [vmem:[%s13027_s21 + $0x338] ss:$12 sps:$4 sm:$0xff]  }
 0xa42   : > { %8915 = vmatpush2.bf16.msra.mxu1 %v12138_v14  ;;  %v12176_v14 = vld [vmem:[%s13027_s21 + $0x2c0] ss:$12 sps:$4 sm:$0xff]  }
 0xa43   : > { %10536 = vmatpush3.bf16.msra.mxu0 %v12127_v27  ;;  %8916 = vmatprep.subr.bf16.mxu1 %v12145_v52  ;;  %v12178_v27 = vld [vmem:[%s13027_s21 + $0x3f8] ss:$12 sps:$4 sm:$0xff]   ;;  %v12177_v52 = vld [vmem:[%s13027_s21 + $0x200] ss:$12 sps:$4 sm:$0xff]  }
 0xa44   : > { %10537 = vmatprep.subr.bf16.mxu0 %v12131_v5  ;;  %v12180_v5 = vld [vmem:[%s13027_s21 + $0x2a8] ss:$12 sps:$4 sm:$0xff]  }
 0xa46   : > { %8917 = vmatpush2.bf16.msra.mxu1 %v12143_v49  ;;  %v12181_v49 = vld [vmem:[%s13027_s21 + $0x1e8] ss:$12 sps:$4 sm:$0xff]  }
 0xa47   : > { %10538 = vmatpush3.bf16.msra.mxu0 %v12132_v31  ;;  %8918 = vmatprep.subr.bf16.mxu1 %v12150_v32  ;;  %v12183_v31 = vld [vmem:[%s13027_s21 + $0x320] ss:$12 sps:$4 sm:$0xff]   ;;  %v12184_v32 = vld [vmem:[%s13027_s21 + $0x290] ss:$12 sps:$4 sm:$0xff]  }
 0xa48   : > { %10539 = vmatprep.subr.bf16.mxu0 %v12136_v37  ;;  %v12186_v37 = vld [vmem:[%s13027_s21 + $0x3c8] ss:$12 sps:$4 sm:$0xff]  }
 0xa4a   : > { %8919 = vmatpush2.bf16.msra.mxu1 %v12148_v28  ;;  %v12185_v28 = vld [vmem:[%s13027_s21 + $0x1d0] ss:$12 sps:$4 sm:$0xff]  }
 0xa4b   : > { %10540 = vmatpush3.bf16.msra.mxu0 %v12137_v38  ;;  %8920 = vmatprep.subr.bf16.mxu1 %v12155_v39  ;;  %v12187_v38 = vld [vmem:[%s13027_s21 + $0x308] ss:$12 sps:$4 sm:$0xff]   ;;  %v12188_v39 = vld [vmem:[%s13027_s21 + $0x278] ss:$12 sps:$4 sm:$0xff]  }
 0xa4c   : > { %10541 = vmatprep.subr.bf16.mxu0 %v12141_v41  ;;  %v12190_v41 = vld [vmem:[%s13027_s21 + $0x770] ss:$12 sps:$4 sm:$0xff]  }
 0xa4e   : > { %8921 = vmatpush2.bf16.msra.mxu1 %v12153_v42  ;;  %v12189_v42 = vld [vmem:[%s13027_s21 + $0x1b8] ss:$12 sps:$4 sm:$0xff]  }
 0xa4f   : > { %10542 = vmatpush3.bf16.msra.mxu0 %v12142_v43  ;;  %8922 = vmatprep.subr.bf16.mxu1 %v12160_v23  ;;  %v12191_v43 = vld [vmem:[%s13027_s21 + $0x6b0] ss:$12 sps:$4 sm:$0xff]   ;;  %v12192_v23 = vld [vmem:[%s13027_s21 + $0x260] ss:$12 sps:$4 sm:$0xff]  }
 0xa50   : > { %10543 = vmatprep.subr.bf16.mxu0 %v12146_v44  ;;  %v12194_v44 = vld [vmem:[%s13027_s21 + $0x758] ss:$12 sps:$4 sm:$0xff]  }
 0xa52   : > { %8923 = vmatpush2.bf16.msra.mxu1 %v12158_v45 }
 0xa53   : > { %10544 = vmatpush3.bf16.msra.mxu0 %v12147_v47  ;;  %8924 = vmatprep.subr.bf16.mxu1 %v12165_v50  ;;  %v12193_v47 = vld [vmem:[%s13027_s21 + $0x1a0] ss:$12 sps:$4 sm:$0xff]   ;;  %v12195_v50 = vld [vmem:[%s13027_s21 + $0x698] ss:$12 sps:$4 sm:$0xff]  }
 0xa54   : > { %10545 = vmatprep.subr.bf16.mxu0 %v12151_v54  ;;  %v12196_v54 = vld [vmem:[%s13027_s21 + $0x248] ss:$12 sps:$4 sm:$0xff]  }
 0xa56   : > { %8925 = vmatpush2.bf16.msra.mxu1 %v12163_v35 }
 0xa57   : > { %10546 = vmatpush3.bf16.msra.mxu0 %v12152_v55  ;;  %10553 = vmatprep.subr.bf16.mxu1 %v12168_v56  ;;  %v12198_v55 = vld [vmem:[%s13027_s21 + $0x740] ss:$12 sps:$4 sm:$0xff]  }
 0xa58   : > { %10575 = vmatprep.subr.bf16.mxu0 %v12156_v57  ;;  %v12199_v57 = vld [vmem:[%s13027_s21 + $0x680] ss:$12 sps:$4 sm:$0xff]  }
 0xa59   : > { %v6680_v0 = vpop.f32.mrf.mxu1 }
 0xa5a   : > { %v6681_v26 = vadd.f32 %v6680_v0, %v4779_v58  ;;  %8968 = vmatmul.mubr.bf16.vlgmr.msra.gmra.mxu0 %v14032_v34  ;;  %v12204_v0 = vld [vmem:[%s13027_s21 + $0x5d8] ss:$12 sps:$4 sm:$0xff]  }
 0xa5b   : > { %v6682_v1 = vpop.f32.mrf.mxu1  ;;  %10576 = vmatpush3.bf16.msra.mxu0 %v12157_v60  ;;  %9047 = vmatprep.mubr.bf16.mxu0 %v14050_v48  ;;  %v12170_v48 = vld [vmem:[%s13027_s21 + $0x428] ss:$12 sps:$4 sm:$0xff]  }
 0xa5c   : > { %v6722_v2 = vadd.f32 %v14217_v17, %v6681_v26  ;;  %v6683_v4 = vadd.f32 %v6682_v1, %v4783_v20  ;;  %10577 = vmatprep.subr.bf16.mxu0 %v12161_v63  ;;  %v12169_v17 = vld [vmem:[%s13027_s21 + $0x230] ss:$12 sps:$4 sm:$0xff]   ;;  %v12202_v60 = vld [vmem:[%s13027_s21 + $0x728] ss:$12 sps:$4 sm:$0xff]   ;;  %v12205_v1 = vld [vmem:[%s13027_s21 + $0x518] ss:$12 sps:$4 sm:$0xff]  }
 0xa5d   : > { %v6684_v29 = vpop.f32.mrf.mxu1  ;;  %v12201_v20 = vld [vmem:[%s13027_s21 + $0x530] ss:$12 sps:$4 sm:$0xff]   ;;  %v12203_v63 = vld [vmem:[%s13027_s21 + $0x668] ss:$12 sps:$4 sm:$0xff]  }
 0xa5e   : > { %v6724_v7 = vadd.f32 %v14224_v21, %v6683_v4  ;;  %v6738_v6 = vmax.f32 %v6722_v2, 0.0  ;;  %v12174_v21 = vld [vmem:[%s13027_s21 + $0x410] ss:$12 sps:$4 sm:$0xff]   ;;  %v12208_v2 = vld [vmem:[%s13027_s21 + $0x5c0] ss:$12 sps:$4 sm:$0xff]  }
 0xa5f   : > { %v6685_v34 = vpop.f32.mrf.mxu1  ;;  %10578 = vmatpush3.bf16.msra.mxu0 %v12162_v61  ;;  %v12206_v26 = vld [vmem:[%s13027_s21 + $0x710] ss:$12 sps:$4 sm:$0xff]   ;;  %v12210_v4 = vld [vmem:[%s13027_s21 + $0x6f8] ss:$12 sps:$4 sm:$0xff]   ;;  %v12212_v29 = vld [vmem:[%s13027_s21 + $0x5a8] ss:$12 sps:$4 sm:$0xff]  }
 0xa60   : > { %v6739_v15 = vmax.f32 %v6724_v7, 0.0  ;;  %10579 = vmatprep.subr.bf16.mxu0 %v12166_v9  ;;  %v14269_v53 = vpack.c.bf16 %v6738_v6, %v6738_v6  ;;  %v12207_v61 = vld [vmem:[%s13027_s21 + $0x650] ss:$12 sps:$4 sm:$0xff]   ;;  %v12209_v9 = vld [vmem:[%s13027_s21 + $0x500] ss:$12 sps:$4 sm:$0xff]  }
 0xa61   : > { %v12213_v7 = vld [vmem:[%s13027_s21 + $0x4e8] ss:$12 sps:$4 sm:$0xff]   ;;  %v12215_v6 = vld [vmem:[%s13027_s21 + $0x620] ss:$12 sps:$4 sm:$0xff]   ;;  %v12216_v34 = vld [vmem:[%s13027_s21 + $0x590] ss:$12 sps:$4 sm:$0xff]  }
 0xa62   : > { %v14266_v22 = vpack.c.bf16 %v6739_v15, %v6739_v15  ;;  %v14331_v15 = vld [vmem:[%s731_s29] sm:$0x7] }
 0xa63   : > { %10580 = vmatpush3.bf16.msra.mxu0 %v12167_v25  ;;  %v12218_v25 = vld [vmem:[%s13027_s21 + $0x6c8] ss:$12 sps:$4 sm:$0xff]  }
 0xa64   : > { %8926 = vmatprep.mubr.bf16.mxu1 %v14266_v22  ;;  %10581 = vmatprep.subr.bf16.mxu0 %v12170_v48  ;;  %v12217_v48 = vld [vmem:[%s13027_s21 + $0x4d0] ss:$12 sps:$4 sm:$0xff]  }
 0xa65   : > { %8927 = vmatmul.mubr.bf16.vlgmr.msra.gmra.mxu1 %v14269_v53 }
 0xa66   : > { %10554 = vmatpush3.bf16.msra.mxu1 %v12169_v17  ;;  %9007 = vmatprep.mubr.bf16.mxu1 %v14004_v51  ;;  %v12182_v51 = vld [vmem:[%s13027_s21 + $0x3e0] ss:$12 sps:$4 sm:$0xff]   ;;  %v12219_v17 = vld [vmem:[%s13027_s21 + $0x608] ss:$12 sps:$4 sm:$0xff]  }
 0xa67   : > { %10582 = vmatpush3.bf16.msra.mxu0 %v12171_v8  ;;  %10555 = vmatprep.subr.bf16.mxu1 %v12172_v18  ;;  %v12220_v8 = vld [vmem:[%s13027_s21 + $0x578] ss:$12 sps:$4 sm:$0xff]   ;;  %v7141_v18 = vrot.slane %v14331_v15, %v13126_v13  ;;  %v12223_v13 = vld [vmem:[%s13027_s21 + $0x4a0] ss:$12 sps:$4 sm:$0xff]  }
 0xa68   : > { %10583 = vmatprep.subr.bf16.mxu0 %v12174_v21  ;;  %v7145_v21 = vrot.slane %v14331_v15, %v13120_v11 }
 0xa6a   : > { %10556 = vmatpush3.bf16.msra.mxu1 %v12173_v19  ;;  %v12221_v19 = vld [vmem:[%s13027_s21 + $0x4b8] ss:$12 sps:$4 sm:$0xff]  }
 0xa6b   : > { %10584 = vmatpush3.bf16.msra.mxu0 %v12175_v24  ;;  %10557 = vmatprep.subr.bf16.mxu1 %v12176_v14  ;;  %v12222_v24 = vld [vmem:[%s13027_s21 + $0x560] ss:$12 sps:$4 sm:$0xff]  }
 0xa6c   : > { %10585 = vmatprep.subr.bf16.mxu0 %v12178_v27 }
 0xa6e   : > { %10558 = vmatpush3.bf16.msra.mxu1 %v12177_v52 }
 0xa6f   : > { %10586 = vmatpush3.bf16.msra.mxu0 %v12179_v30  ;;  %10559 = vmatprep.subr.bf16.mxu1 %v12180_v5  ;;  %v12224_v5 = vld [vmem:[%s13027_s21 + $0x548] ss:$12 sps:$4 sm:$0xff]  }
 0xa70   : > { %10587 = vmatprep.subr.bf16.mxu0 %v12182_v51 }
 0xa72   : > { %10560 = vmatpush3.bf16.msra.mxu1 %v12181_v49 }
 0xa73   : > { %10588 = vmatpush3.bf16.msra.mxu0 %v12183_v31  ;;  %10561 = vmatprep.subr.bf16.mxu1 %v12184_v32  ;;  %v12225_v31 = vld [vmem:[%s13027_s21 + $0x488] ss:$12 sps:$4 sm:$0xff]  }
 0xa74   : > { %10589 = vmatprep.subr.bf16.mxu0 %v12186_v37  ;;  %v12226_v37 = vld [vmem:[%s13027_s21 + $0x8f0] ss:$12 sps:$4 sm:$0xff]  }
 0xa76   : > { %10562 = vmatpush3.bf16.msra.mxu1 %v12185_v28  ;;  %v12227_v28 = vld [vmem:[%s13027_s21 + $0x830] ss:$12 sps:$4 sm:$0xff]  }
 0xa77   : > { %10590 = vmatpush3.bf16.msra.mxu0 %v12187_v38  ;;  %10563 = vmatprep.subr.bf16.mxu1 %v12188_v39  ;;  %v12229_v38 = vld [vmem:[%s13027_s21 + $0x818] ss:$12 sps:$4 sm:$0xff]   ;;  %v12230_v39 = vld [vmem:[%s13027_s21 + $0x8c0] ss:$12 sps:$4 sm:$0xff]  }
 0xa78   : > { %10619 = vmatprep.subr.bf16.mxu0 %v12190_v41  ;;  %v12231_v41 = vld [vmem:[%s13027_s21 + $0x800] ss:$12 sps:$4 sm:$0xff]  }
 0xa7a   : > { %10564 = vmatpush3.bf16.msra.mxu1 %v12189_v42  ;;  %v14297_v45 = vpop.f32.mrf.mxu0  ;;  %9048 = vmatmul.mubr.bf16.vlgmr.msra.gmra.mxu0 %v14123_v10  ;;  %v12197_v10 = vld [vmem:[%s13027_s21 + $0x188] ss:$12 sps:$4 sm:$0xff]  }
 0xa7b   : > { %10620 = vmatpush3.bf16.msra.mxu0 %v12191_v43  ;;  %9127 = vmatprep.mubr.bf16.mxu0 %v14186_v40  ;;  %v12200_v40 = vld [vmem:[%s13027_s21 + $0x5f0] ss:$12 sps:$4 sm:$0xff]   ;;  %v8724_v14 = vadd.f32 %v14297_v45, %v7141_v18  ;;  %v12232_v42 = vld [vmem:[%s13027_s21 + $0x8a8] ss:$12 sps:$4 sm:$0xff]   ;;  %v12238_v45 = vld [vmem:[%s13027_s21 + $0x860] ss:$12 sps:$4 sm:$0xff]  }
 0xa7c   : > { %v14304_v35 = vpop.f32.mrf.mxu0  ;;  %10565 = vmatprep.subr.bf16.mxu1 %v12192_v23  ;;  %10621 = vmatprep.subr.bf16.mxu0 %v12194_v44  ;;  %v12233_v43 = vld [vmem:[%s13027_s21 + $0x7e8] ss:$12 sps:$4 sm:$0xff]   ;;  %v12234_v23 = vld [vmem:[%s13027_s21 + $0x890] ss:$12 sps:$4 sm:$0xff]   ;;  %v12237_v44 = vld [vmem:[%s13027_s21 + $0x7b8] ss:$12 sps:$4 sm:$0xff]  }
 0xa7d   : > { %v8726_v52 = vadd.f32 %v14304_v35, %v7145_v21  ;;  %v12240_v35 = vld [vmem:[%s13027_s21 + $0x848] ss:$12 sps:$4 sm:$0xff]  }
 0xa7e   : > { %10566 = vmatpush3.bf16.msra.mxu1 %v12193_v47  ;;  %v8727_v56 = vpop.f32.mrf.mxu0 }
 0xa7f   : > { %10622 = vmatpush3.bf16.msra.mxu0 %v12195_v50  ;;  %10567 = vmatprep.subr.bf16.mxu1 %v12196_v54  ;;  %v12239_v50 = vld [vmem:[%s13027_s21 + $0x7a0] ss:$12 sps:$4 sm:$0xff]  }
 0xa80   : > { %v8728_v58 = vpop.f32.mrf.mxu0  ;;  %10623 = vmatprep.subr.bf16.mxu0 %v12198_v55 }
 0xa82   : > { %10568 = vmatpush3.bf16.msra.mxu1 %v12197_v10 }
 0xa83   : > { %10624 = vmatpush3.bf16.msra.mxu0 %v12199_v57  ;;  %10597 = vmatprep.subr.bf16.mxu1 %v12200_v40  ;;  %v12241_v57 = vld [vmem:[%s13027_s21 + $0x788] ss:$12 sps:$4 sm:$0xff]  }
 0xa84   : > { %10625 = vmatprep.subr.bf16.mxu0 %v12202_v60 }
 0xa85   : > { %9008 = vmatmul.mubr.bf16.vlgmr.msra.gmra.mxu1 %v14077_v33  ;;  %v12211_v33 = vld [vmem:[%s13027_s21 + $0x638] ss:$12 sps:$4 sm:$0xff]  }
 0xa86   : > { %10598 = vmatpush3.bf16.msra.mxu1 %v12201_v20  ;;  %9087 = vmatprep.mubr.bf16.mxu1 %v14137_v59  ;;  %v12214_v59 = vld [vmem:[%s13027_s21 + $0x6e0] ss:$12 sps:$4 sm:$0xff]  }
 0xa87   : > { %10626 = vmatpush3.bf16.msra.mxu0 %v12203_v63  ;;  %10599 = vmatprep.subr.bf16.mxu1 %v12204_v0 }
 0xa88   : > { %10627 = vmatprep.subr.bf16.mxu0 %v12206_v26 }
 0xa8a   : > { %10600 = vmatpush3.bf16.msra.mxu1 %v12205_v1 }
 0xa8b   : > { %10628 = vmatpush3.bf16.msra.mxu0 %v12207_v61  ;;  %10601 = vmatprep.subr.bf16.mxu1 %v12208_v2 }
 0xa8c   : > { %10629 = vmatprep.subr.bf16.mxu0 %v12210_v4 }
 0xa8e   : > { %10602 = vmatpush3.bf16.msra.mxu1 %v12209_v9 }
 0xa8f   : > { %10630 = vmatpush3.bf16.msra.mxu0 %v12211_v33  ;;  %10603 = vmatprep.subr.bf16.mxu1 %v12212_v29 }
 0xa90   : > { %10631 = vmatprep.subr.bf16.mxu0 %v12214_v59 }
 0xa92   : > { %10604 = vmatpush3.bf16.msra.mxu1 %v12213_v7 }
 0xa93   : > { %10632 = vmatpush3.bf16.msra.mxu0 %v12215_v6  ;;  %10605 = vmatprep.subr.bf16.mxu1 %v12216_v34 }
 0xa94   : > { %10633 = vmatprep.subr.bf16.mxu0 %v12218_v25 }
 0xa96   : > { %10606 = vmatpush3.bf16.msra.mxu1 %v12217_v48 }
 0xa97   : > { %10634 = vmatpush3.bf16.msra.mxu0 %v12219_v17  ;;  %10607 = vmatprep.subr.bf16.mxu1 %v12220_v8 }
 0xa99   : > { %v8764_v27 = vpop.f32.mrf.mxu1 }
 0xa9a   : > { %v8765_v30 = vadd.f32 %v8764_v27, %v8724_v14  ;;  %10608 = vmatpush3.bf16.msra.mxu1 %v12221_v19  ;;  %9128 = vmatmul.mubr.bf16.vlgmr.msra.gmra.mxu0 %v14213_v36  ;;  %v12228_v36 = vld [vmem:[%s13027_s21 + $0x8d8] ss:$12 sps:$4 sm:$0xff]  }
 0xa9b   : > { %v8766_v11 = vpop.f32.mrf.mxu1  ;;  %10609 = vmatprep.subr.bf16.mxu1 %v12222_v24 }
 0xa9c   : > { %v8767_v51 = vadd.f32 %v8766_v11, %v8726_v52 }
 0xa9d   : > { %v8768_v49 = vpop.f32.mrf.mxu1 }
 0xa9e   : > { %10610 = vmatpush3.bf16.msra.mxu1 %v12223_v13  ;;  %v7149_v13 = vrot.slane %v14331_v15, %v13123_v12 }
 0xa9f   : > { %v8769_v32 = vpop.f32.mrf.mxu1  ;;  %10611 = vmatprep.subr.bf16.mxu1 %v12224_v5 }
 0xaa2   : > { %10612 = vmatpush3.bf16.msra.mxu1 %v12225_v31 }
 0xaa3   : > { %10641 = vmatprep.subr.bf16.mxu1 %v12226_v37 }
 0xaa5   : > { %9088 = vmatmul.mubr.bf16.vlgmr.msra.gmra.mxu1 %v14164_v3  ;;  %v12235_v3 = vld [vmem:[%s13027_s21 + $0x7d0] ss:$12 sps:$4 sm:$0xff]  }
 0xaa6   : > { %10642 = vmatpush3.bf16.msra.mxu1 %v12227_v28  ;;  %9167 = vmatprep.mubr.bf16.mxu1 %v14266_v22  ;;  %v12236_v22 = vld [vmem:[%s13027_s21 + $0x878] ss:$12 sps:$4 sm:$0xff]  }
 0xaa7   : > { %10643 = vmatprep.subr.bf16.mxu1 %v12228_v36 }
 0xaaa   : > { %10644 = vmatpush3.bf16.msra.mxu1 %v12229_v38 }
 0xaab   : > { %10645 = vmatprep.subr.bf16.mxu1 %v12230_v39 }
 0xaae   : > { %10646 = vmatpush3.bf16.msra.mxu1 %v12231_v41 }
 0xaaf   : > { %10647 = vmatprep.subr.bf16.mxu1 %v12232_v42 }
 0xab2   : > { %10648 = vmatpush3.bf16.msra.mxu1 %v12233_v43 }
 0xab3   : > { %10649 = vmatprep.subr.bf16.mxu1 %v12234_v23 }
 0xab6   : > { %10650 = vmatpush3.bf16.msra.mxu1 %v12235_v3 }
 0xab7   : > { %10651 = vmatprep.subr.bf16.mxu1 %v12236_v22 }
 0xaba   : > { %10652 = vmatpush3.bf16.msra.mxu1 %v12237_v44  ;;  %v8805_v47 = vpop.f32.mrf.mxu0 }
 0xabb   : > { %v8806_v54 = vadd.f32 %v8805_v47, %v8765_v30  ;;  %10653 = vmatprep.subr.bf16.mxu1 %v12238_v45 }
 0xabc   : > { %v8807_v55 = vpop.f32.mrf.mxu0 }
 0xabd   : > { %v8808_v56 = vadd.f32 %v8807_v55, %v8767_v51 }
 0xabe   : > { %10654 = vmatpush3.bf16.msra.mxu1 %v12239_v50  ;;  %v8809_v10 = vpop.f32.mrf.mxu0 }
 0xabf   : > { %10655 = vmatprep.subr.bf16.mxu1 %v12240_v35 }
 0xac0   : > { %v8810_v40 = vpop.f32.mrf.mxu0 }
 0xac2   : > { %10656 = vmatpush3.bf16.msra.mxu1 %v12241_v57 }
 0xac5   : > { %9168 = vmatmul.mubr.bf16.vlgmr.msra.gmra.mxu1 %v14269_v53 }
 0xad9   : > { %v8846_v58 = vpop.f32.mrf.mxu1 }
 0xada   : > { %v8847_v60 = vadd.f32 %v8846_v58, %v8806_v54 }
 0xadb   : > { %v8848_v20 = vpop.f32.mrf.mxu1 }
 0xadc   : > { %v8849_v63 = vadd.f32 %v8848_v20, %v8808_v56 }
 0xadd   : > { %v8850_v0 = vpop.f32.mrf.mxu1 }
 0xadf   : > { %v8851_v26 = vpop.f32.mrf.mxu1 }
 0xafa   : > { %v8887_v1 = vpop.f32.mrf.mxu0 }
 0xafb   : > { %v8888_v6 = vadd.f32 %v8887_v1, %v8847_v60 }
 0xafc   : > { %v8889_v61 = vpop.f32.mrf.mxu0 }
 0xafd   : > { %v8890_v53 = vadd.f32 %v8889_v61, %v8849_v63 }
 0xafe   : > { %v8891_v2 = vpop.f32.mrf.mxu0 }
 0xb00   : > { %v8892_v4 = vpop.f32.mrf.mxu0 }
 0xb1a   : > { %v10547_v9 = vpop.f32.mrf.mxu0 }
 0xb1c   : > { %v10548_v33 = vpop.f32.mrf.mxu0 }
 0xb1d   : > { %v10549_v29 = vadd.f32 %v10548_v33, %v10547_v9 }
 0xb1e   : > { %v10550_v59 = vpop.f32.mrf.mxu0 }
 0xb1f   : > { %v8970_v51 = vadd.f32 %v10549_v29, %v7149_v13 }
 0xb20   : > { %v10551_v7 = vpop.f32.mrf.mxu0 }
 0xb25   : > { %v8928_v34 = vpop.f32.mrf.mxu1 }
 0xb26   : > { %v8929_v25 = vadd.f32 %v8928_v34, %v8888_v6 }
 0xb27   : > { %v8930_v48 = vpop.f32.mrf.mxu1 }
 0xb28   : > { %v9175_v17 = vadd.f32 %v8929_v25, %v13598_v62  ;;  %v8931_v8 = vadd.f32 %v8930_v48, %v8890_v53 }
 0xb29   : > { %v8932_v18 = vpop.f32.mrf.mxu1 }
 0xb2a   : > { %9178 = vst [vmem:[%s13041_s25] sm:$0xff] %v9175_v17  ;;  %v9176_v21 = vadd.f32 %v8931_v8, %v13595_v16 }
 0xb2b   : > { %v8933_v19 = vpop.f32.mrf.mxu1 }
 0xb2c   : > { %9179 = vst [vmem:[%s13041_s25 + $0x8] sm:$0xff] %v9176_v21 }
 0xb3a   : > { %v10591_v24 = vpop.f32.mrf.mxu0 }
 0xb3c   : > { %v10592_v14 = vpop.f32.mrf.mxu0 }
 0xb3d   : > { %v10593_v27 = vadd.f32 %v10592_v14, %v10591_v24 }
 0xb3e   : > { %v10594_v52 = vpop.f32.mrf.mxu0 }
 0xb40   : > { %v10595_v30 = vpop.f32.mrf.mxu0 }
 0xb45   : > { %v10569_v11 = vpop.f32.mrf.mxu1 }
 0xb47   : > { %v10570_v5 = vpop.f32.mrf.mxu1 }
 0xb48   : > { %v10571_v49 = vadd.f32 %v10570_v5, %v10569_v11 }
 0xb49   : > { %v10572_v62 = vpop.f32.mrf.mxu1 }
 0xb4a   : > { %v9010_v31 = vadd.f32 %v10571_v49, %v8970_v51 }
 0xb4b   : > { %v10573_v32 = vpop.f32.mrf.mxu1 }
 0xb4c   : > { %v9050_v37 = vadd.f32 %v10593_v27, %v9010_v31 }
 0xb5a   : > { %v10635_v28 = vpop.f32.mrf.mxu0 }
 0xb5c   : > { %v10636_v16 = vpop.f32.mrf.mxu0 }
 0xb5d   : > { %v10637_v15 = vadd.f32 %v10636_v16, %v10635_v28 }
 0xb5e   : > { %v10638_v36 = vpop.f32.mrf.mxu0 }
 0xb60   : > { %v10639_v38 = vpop.f32.mrf.mxu0 }
 0xb65   : > { %v10613_v39 = vpop.f32.mrf.mxu1 }
 0xb67   : > { %v10614_v41 = vpop.f32.mrf.mxu1 }
 0xb68   : > { %v10615_v23 = vadd.f32 %v10614_v41, %v10613_v39 }
 0xb69   : > { %v10616_v42 = vpop.f32.mrf.mxu1 }
 0xb6a   : > { %v9090_v3 = vadd.f32 %v10615_v23, %v9050_v37 }
 0xb6b   : > { %v10617_v43 = vpop.f32.mrf.mxu1 }
 0xb6c   : > { %v9130_v44 = vadd.f32 %v10637_v15, %v9090_v3 }
 0xb85   : > { %v10657_v12 = vpop.f32.mrf.mxu1 }
 0xb87   : > { %v10658_v22 = vpop.f32.mrf.mxu1 }
 0xb88   : > { %v10659_v45 = vadd.f32 %v10658_v22, %v10657_v12 }
 0xb89   : > { %v10660_v47 = vpop.f32.mrf.mxu1 }
 0xb8a   : > { %v9170_v50 = vadd.f32 %v10659_v45, %v9130_v44 }
 0xb8b   : > { %v10661_v54 = vpop.f32.mrf.mxu1 }
 0xb8c   : > { %v9177_v35 = vadd.f32 %v9170_v50, %v13601_v46 }
 0xb8e   : > { %9180 = vst [vmem:[%s13041_s25 + $0x10] sm:$0xff] %v9177_v35 }
 0xb8f PF: > { %s14474_s30 = sld [smem:[#allocation30_spill]]  ;;  %s14481_s24 = smov %s12651_s26 }
 0xb90   : > { %s14475_s21 = sld [smem:[#allocation25_spill]] }
 0xb91   : > { %s14476_s22 = sld [smem:[#allocation26_spill]] }
 0xb92   : > { %s14477_s23 = sld [smem:[#allocation33_spill]] }
 0xb93   : > { %s14478_s25 = sld [smem:[#allocation29_spill]] }
 0xb94   : > { %s14479_s6 = sld [smem:[#allocation31_spill]] }
 0xb95   : > { %s40_s28 = sadd.s32 1, %s14474_s30   ;;  %s14480_s27 = sld [smem:[#allocation32_spill]] }
 0xb96   : > { %p37_p9 = scmp.ge.s32.totalorder %s40_s28, 10  }
 0xb98   :  { %39 = sbr.rel (!%p37_p9) target bundleno = 22 (0x16), region = 235 }
 0xb9a   : > { %s14482_s26 = smov %s14479_s6 }
 0xb9d   :  { %9202 = vsyncpa [#allocation3], 1 }
 0xb9e   :  { %9204 = vsyncpa [#allocation3 + $0x1], 1 }
 0xb9f   :  { %9205 = vsyncpa [#allocation5], 1 }
 0xba0   :  { %9207 = vsyncpa [#allocation5 + $0x1], 1 }
 0xba1   :  { %9208 = vsyncpa [#allocation8], 1 }
 0xba2   :  { %9210 = vsyncpa [#allocation8 + $0x1], 1 }
 0xba3   :  { %9211 = vsyncpa [#allocation11], 1 }
 0xba4   :  { %9213 = vsyncpa [#allocation11 + $0x1], 1 }
 0xba5   :  { %9214 = vsyncpa [#allocation14], 1 }
 0xba6   :  { %9216 = vsyncpa [#allocation14 + $0x1], 1 }
 0xba7   :  { %9217 = vsyncpa [#allocation17], 1 }
 0xba8   :  { %9219 = vsyncpa [#allocation17 + $0x1], 1 }

</bundles_post_ra>
